<compile_context>
chip_gen: v7x
topology: tpu7x:2x2x1
jax: 0.10.0
libtpu: 0.0.40
codegen_flags: <defaults>
</compile_context>

<pallas_src>
import math

import jax
import jax.numpy as jnp
from jax.experimental import pallas as pl
from jax.experimental.pallas import tpu as pltpu

# ----------------------------------------------------------------------------
# Spherical-harmonics constants (standard eval_sh as in NeRF-SH / PlenOctrees)
# ----------------------------------------------------------------------------
C0 = 0.28209479177387814
C1 = 0.4886025119029199
C2 = (1.0925484305920792, -1.0925484305920792, 0.31539156525252005,
      -1.0925484305920792, 0.5462742152960396)
C3 = (-0.5900435899266435, 2.890611442640554, -0.4570457994644658,
      0.3731763325901154, -0.4570457994644658, 1.445305721320277,
      -0.5900435899266435)


def _sh_terms(x, y, z, deg):
    """SH basis terms as a list of arrays shaped like x.  Supports deg <= 3."""
    assert deg <= 3, "deg-4 SH terms not implemented"
    terms = [C0 * jnp.ones_like(x)]
    if deg > 0:
        terms += [-C1 * y, C1 * z, -C1 * x]
        if deg > 1:
            xx, yy, zz = x * x, y * y, z * z
            xy, yz, xz = x * y, y * z, x * z
            terms += [C2[0] * xy, C2[1] * yz, C2[2] * (2.0 * zz - xx - yy),
                      C2[3] * xz, C2[4] * (xx - yy)]
            if deg > 2:
                terms += [C3[0] * y * (3.0 * xx - yy),
                          C3[1] * xy * z,
                          C3[2] * y * (4.0 * zz - xx - yy),
                          C3[3] * z * (2.0 * zz - 3.0 * xx - 3.0 * yy),
                          C3[4] * x * (4.0 * zz - xx - yy),
                          C3[5] * z * (xx - yy),
                          C3[6] * x * (xx - 3.0 * yy)]
                # TODO(synk): deg-4 SH terms not implemented (MLP_deg <= 3 here)
    return terms


def _round_up(v, m):
    return (v + m - 1) // m * m


# ----------------------------------------------------------------------------
# Pallas kernel: one lane-tile of packed samples runs the whole MLP + SH eval.
# Activations are (P*features, TN): P sample groups stacked on the sublane
# axis, samples of each group on the 128-wide lane axis.
# ----------------------------------------------------------------------------
def _make_kernel(depth, skips, deg, pack, wmeta, bmeta):
    P = pack
    bf16 = jnp.bfloat16
    f32 = jnp.float32

    def kernel(x_ref, d_ref, w_ref, b_ref, out_ref):
        def w_of(name):                       # static slice of the bf16 weight slab
            off, r, c = wmeta[name]
            return w_ref[off:off + r, 0:c]

        def b_of(name):                       # static slice of the f32 bias slab
            off, r = bmeta[name]
            return b_ref[off:off + r, :]

        x_bf = x_ref[...]                     # (P*Cin_p, TN) bf16

        # ---- xyz trunk (skip concat done as split matmul on block-diag weights)
        h = None
        for i in range(depth):
            b = b_of(f"l{i}")
            if i != 0 and i in skips:
                acc = (jnp.dot(w_of(f"l{i}_h"), h.astype(bf16),
                               preferred_element_type=f32)
                       + jnp.dot(w_of(f"l{i}_x"), x_bf,
                                 preferred_element_type=f32))
            else:
                hb = x_bf if i == 0 else h.astype(bf16)
                acc = jnp.dot(w_of(f"l{i}"), hb, preferred_element_type=f32)
            h = jnp.maximum(acc + b, 0.0)     # (P*W, TN) f32

        # ---- fused hidden layer of the sigma & sh heads ----
        hh = jnp.maximum(
            jnp.dot(w_of("head1"), h.astype(bf16), preferred_element_type=f32)
            + b_of("head1"), 0.0)             # (P*2W, TN) f32
        hh_bf = hh.astype(bf16)

        # sh rows ordered (c*K + k)*P + p ; sigma rows ordered p
        sh = jnp.dot(w_of("sh2"), hh_bf, preferred_element_type=f32) + b_of("sh2")
        sigma = jnp.dot(w_of("sig2"), hh_bf, preferred_element_type=f32) + b_of("sig2")

        # ---- SH basis computed in-kernel from raw dirs (component-major packed)
        dx = d_ref[0 * P:1 * P, :]            # (P, TN)
        dy = d_ref[1 * P:2 * P, :]
        dz = d_ref[2 * P:3 * P, :]
        basis = jnp.concatenate(_sh_terms(dx, dy, dz, deg), axis=0)   # (K*P, TN)
        basis3 = jnp.concatenate([basis, basis, basis], axis=0)       # (3K*P, TN)

        # rgb_c = sum_k basis_k * sh_{c,k}  via 0/1 selector matmul (bf16)
        rgb = jax.nn.sigmoid(
            jnp.dot(w_of("sel"), (basis3 * sh).astype(bf16),
                    preferred_element_type=f32))                      # (3P, TN)

        out_ref[0:P, :] = sigma               # rows p            -> sigma
        out_ref[P:4 * P, :] = rgb             # rows P + c*P + p  -> rgb

    return kernel


# ----------------------------------------------------------------------------
# Wrapper: sample packing, block-diagonal weight construction, slab packing,
# padding, pallas_call, unpacking.
# ----------------------------------------------------------------------------
def coarse_fine_nerf_forward(x, dirs, params, *, depth, skips, deg,
                             tile_n=2048, pack=8):
    """x: (N, C_in) embedded xyz; dirs: (N, 3); params: list of (W(in,out), b(out,)).

    Returns (N, 4) = [sigma, rgb] per sample, matching CorseFine_NeRF.forward.
    """
    assert deg <= 3, "deg-4 SH terms not implemented"
    assert 0 not in skips, "skip at layer 0 is not supported (matches PyTorch)"
    P = pack
    assert tile_n % (128 * P) == 0, "tile_n must be a multiple of 128*pack"

    f32, bf16 = jnp.float32, jnp.bfloat16
    N, c_in = x.shape
    K = (deg + 1) ** 2
    n_sh = 3 * K
    width = params[0][0].shape[1]

    n_pad = pl.cdiv(N, tile_n) * tile_n
    npp = n_pad // P                      # packed columns (samples per group)
    tnp = tile_n // P                     # packed lane-tile per grid step
    c_in_p = _round_up(c_in, 16)          # pad features for clean bf16 tiling

    # ---- pack inputs: sample groups folded onto the sublane axis ----
    # x_packed[p*c_in_p + c, j] = x[p*npp + j, c]   (bf16; only feeds matmuls)
    xp = jnp.pad(x.astype(bf16), ((0, n_pad - N), (0, c_in_p - c_in)))
    x_packed = xp.reshape(P, npp, c_in_p).transpose(0, 2, 1).reshape(P * c_in_p, npp)
    # dirs component-major: dirs_cm[c*P + p, j] = dirs[p*npp + j, c]   (f32)
    dp = jnp.pad(dirs.astype(f32), ((0, n_pad - N), (0, 0)))
    dirs_cm = dp.reshape(P, npp, 3).transpose(2, 0, 1).reshape(3 * P, npp)

    # ---- block-diagonal / permuted weight construction ----
    def bdiag(a):                         # (out, in) -> (P*out, P*in)
        return jnp.kron(jnp.eye(P, dtype=a.dtype), a)

    w_entries, b_entries = [], []
    idx = 0
    for i in range(depth):
        w, b = params[idx]; idx += 1
        wt = w.T.astype(f32)                                  # (out, in)
        if i != 0 and i in skips:
            # forward concatenates [x, h]: first c_in input cols belong to x
            wx = jnp.pad(wt[:, :c_in], ((0, 0), (0, c_in_p - c_in)))
            wh = wt[:, c_in:]
            w_entries += [(f"l{i}_h", bdiag(wh)), (f"l{i}_x", bdiag(wx))]
        else:
            if i == 0:
                wt = jnp.pad(wt, ((0, 0), (0, c_in_p - c_in)))
            w_entries.append((f"l{i}", bdiag(wt)))
        b_entries.append((f"l{i}", jnp.tile(b.reshape(-1, 1).astype(f32), (P, 1))))

    (w_s1, b_s1) = params[idx]; idx += 1      # sigma: Linear(W, W)
    (w_s2, b_s2) = params[idx]; idx += 1      # sigma: Linear(W, 1)
    (w_h1, b_h1) = params[idx]; idx += 1      # sh:    Linear(W, W)
    (w_h2, b_h2) = params[idx]; idx += 1      # sh:    Linear(W, 3K)

    # fused hidden head: per block rows [0:W]=sh hidden, [W:2W]=sigma hidden
    a1 = jnp.concatenate([w_h1.T, w_s1.T], axis=0).astype(f32)          # (2W, W)
    w_entries.append(("head1", bdiag(a1)))
    b_entries.append(("head1",
                      jnp.tile(jnp.concatenate([b_h1, b_s1]).reshape(-1, 1).astype(f32),
                               (P, 1))))
    # sh output layer: rows permuted to (c*K + k)*P + p so they line up with the
    # component-major basis built in-kernel
    bsh = jnp.concatenate([w_h2.T.astype(f32), jnp.zeros((n_sh, width), f32)], axis=1)
    w_sh2 = (bdiag(bsh).reshape(P, n_sh, 2 * width * P)
             .transpose(1, 0, 2).reshape(n_sh * P, 2 * width * P))
    w_entries.append(("sh2", w_sh2))
    b_entries.append(("sh2", jnp.repeat(b_h2.astype(f32), P).reshape(-1, 1)))
    # sigma output layer: one row per sample group
    bsg = jnp.concatenate([jnp.zeros((1, width), f32), w_s2.T.astype(f32)], axis=1)
    w_entries.append(("sig2", bdiag(bsg)))                              # (P, 2W*P)
    b_entries.append(("sig2", jnp.tile(b_s2.reshape(-1, 1).astype(f32), (P, 1))))
    # rgb selector: rgb[c*P+p] = sum_k pelem[(c*K+k)*P + p]  (0/1, exact in bf16)
    s0 = jnp.zeros((3, n_sh), f32)
    for c in range(3):
        s0 = s0.at[c, c * K:(c + 1) * K].set(1.0)
    w_entries.append(("sel", jnp.kron(s0, jnp.eye(P, dtype=f32))))      # (3P, 3K*P)

    # ---- consolidate into ONE bf16 weight slab + ONE f32 bias slab ----
    max_c = _round_up(max(a.shape[1] for _, a in w_entries), 128)
    wmeta, w_rows, off = {}, [], 0
    for name, a in w_entries:
        r, c = a.shape
        rp = _round_up(r, 16)                 # bf16-friendly row alignment
        wmeta[name] = (off, r, c)
        w_rows.append(jnp.pad(a, ((0, rp - r), (0, max_c - c))))
        off += rp
    w_slab = jnp.concatenate(w_rows, axis=0).astype(bf16)

    bmeta, b_rows, boff = {}, [], 0
    for name, a in b_entries:
        r = a.shape[0]
        rp = _round_up(r, 8)
        bmeta[name] = (boff, r)
        b_rows.append(jnp.pad(a, ((0, rp - r), (0, 0))))
        boff += rp
    b_slab = jnp.concatenate(b_rows, axis=0)                            # (Rb, 1) f32

    kernel = _make_kernel(depth, tuple(skips), deg, P, wmeta, bmeta)

    out_packed = pl.pallas_call(
        kernel,
        out_shape=jax.ShapeDtypeStruct((4 * P, npp), f32),
        grid_spec=pltpu.PrefetchScalarGridSpec(
            num_scalar_prefetch=0,
            grid=(npp // tnp,),
            in_specs=[
                pl.BlockSpec((P * c_in_p, tnp), lambda i: (0, i)),
                pl.BlockSpec((3 * P, tnp), lambda i: (0, i)),
                pl.BlockSpec(w_slab.shape, lambda i: (0, 0)),   # grid-invariant
                pl.BlockSpec(b_slab.shape, lambda i: (0, 0)),   # grid-invariant
            ],
            out_specs=pl.BlockSpec((4 * P, tnp), lambda i: (0, i)),
        ),
        compiler_params=pltpu.CompilerParams(
            dimension_semantics=("parallel",),
            vmem_limit_bytes=48 * 1024 * 1024),
    )(x_packed, dirs_cm, w_slab, b_slab)

    # ---- unpack (4P, npp) -> (N, 4) ----
    sigma = out_packed[0:P, :].reshape(n_pad, 1)
    rgb = (out_packed[P:4 * P, :].reshape(3, P, npp)
           .transpose(1, 2, 0).reshape(n_pad, 3))
    return jnp.concatenate([sigma, rgb], axis=1)[:N]


# ----------------------------------------------------------------------------
# Pure-JAX reference (mirrors the PyTorch forward) for correctness checking.
# ----------------------------------------------------------------------------
def _sh_basis(dirs, deg):
    terms = _sh_terms(dirs[:, 0:1], dirs[:, 1:2], dirs[:, 2:3], deg)
    return jnp.concatenate(terms, axis=-1)


def reference_forward(x, dirs, params, *, depth, skips, deg):
    hp = jax.lax.Precision.HIGHEST
    h = x
    idx = 0
    for i in range(depth):
        if i in skips:
            h = jnp.concatenate([x, h], axis=-1)
        w, b = params[idx]; idx += 1
        h = jax.nn.relu(jnp.dot(h, w, precision=hp) + b)
    w, b = params[idx]; idx += 1
    s = jax.nn.relu(jnp.dot(h, w, precision=hp) + b)
    w, b = params[idx]; idx += 1
    sigma = jnp.dot(s, w, precision=hp) + b
    w, b = params[idx]; idx += 1
    sh_h = jax.nn.relu(jnp.dot(h, w, precision=hp) + b)
    w, b = params[idx]; idx += 1
    sh = jnp.dot(sh_h, w, precision=hp) + b
    K = (deg + 1) ** 2
    basis = _sh_basis(dirs, deg)
    sh3 = sh.reshape(-1, 3, K)
    rgb = jax.nn.sigmoid(jnp.einsum('nk,nck->nc', basis, sh3, precision=hp))
    return jnp.concatenate([sigma, rgb], axis=-1)


# ----------------------------------------------------------------------------
# Deterministic parameter init (PyTorch nn.Linear default-like).
# Weights stored (in_features, out_features): forward = x @ W + b.
# ----------------------------------------------------------------------------
def init_params(key, depth, skips, width, in_channels, deg):
    layer_dims = []
    for i in range(depth):
        if i == 0:
            layer_dims.append((in_channels, width))
        elif i in skips:
            layer_dims.append((width + in_channels, width))
        else:
            layer_dims.append((width, width))
    layer_dims += [(width, width), (width, 1),
                   (width, width), (width, 3 * (deg + 1) ** 2)]

    params = []
    for (fan_in, fan_out) in layer_dims:
        key, kw, kb = jax.random.split(key, 3)
        bound = 1.0 / math.sqrt(fan_in)
        w = jax.random.uniform(kw, (fan_in, fan_out), jnp.float32, -bound, bound)
        b = jax.random.uniform(kb, (fan_out,), jnp.float32, -bound, bound)
        params.append((w, b))
    return params


if __name__ == "__main__":
    # sys_params (small, consistent with the module)
    sys_params = dict(emb_freqs_xyz=4, MLP_deg=2,
                      coarse_MLP_depth=4, coarse_MLP_width=32,
                      coarse_MLP_skip=[2])
    in_channels_xyz = 3 * (2 * sys_params['emb_freqs_xyz'] + 1)   # 27
    depth = sys_params['coarse_MLP_depth']
    width = sys_params['coarse_MLP_width']
    skips = sys_params['coarse_MLP_skip']
    deg = sys_params['MLP_deg']

    N = 2000                     # not a multiple of tile_n -> exercises padding
    key = jax.random.PRNGKey(0)
    k_x, k_d, k_p = jax.random.split(key, 3)

    x = jax.random.normal(k_x, (N, in_channels_xyz), jnp.float32)
    dirs = jax.random.normal(k_d, (N, 3), jnp.float32)
    dirs = dirs / jnp.linalg.norm(dirs, axis=-1, keepdims=True)

    params = init_params(k_p, depth, skips, width, in_channels_xyz, deg)

    # tile_n=1024, pack=8 -> 2048 padded samples, 2-step 'parallel' grid
    # (keeps both v7x TensorCores busy), 128-lane packed tiles.
    out = coarse_fine_nerf_forward(x, dirs, params, depth=depth, skips=skips,
                                   deg=deg, tile_n=1024, pack=8)
    out = jax.block_until_ready(out)

    ref = reference_forward(x, dirs, params, depth=depth, skips=skips, deg=deg)
    assert out.shape == (N, 4)
    # bf16 matmul operands / f32 accumulation vs f32 HIGHEST reference;
    # relative check so unbounded sigma doesn't need a looser absolute bar.
    rel_err = jnp.max(jnp.abs(out - ref) / (1.0 + jnp.abs(ref)))
    assert rel_err < 5e-2, f"mismatch vs pure-JAX reference: rel_err={rel_err}"

    print("KERNEL_OK")
</pallas_src>

<mosaic_0001>
module attributes {stable_mosaic.version = 11 : i64} {
  func.func @kernel(%arg0: i32, %arg1: memref<256x128xbf16, #tpu.memory_space<vmem>>, %arg2: memref<24x128xf32, #tpu.memory_space<vmem>>, %arg3: memref<2064x512xbf16, #tpu.memory_space<vmem>>, %arg4: memref<1760x1xf32, #tpu.memory_space<vmem>>, %arg5: memref<32x128xf32, #tpu.memory_space<vmem>>) attributes {dimension_semantics = [#tpu.dimension_semantics<parallel>], iteration_bounds = array<i64: 2>, scalar_prefetch = 0 : i64, scratch_operands = 0 : i64, tpu.core_type = #tpu.core_type<tc>, window_params = [{transform_indices = @transform_0, window_bounds = array<i64: 256, 128>}, {transform_indices = @transform_1, window_bounds = array<i64: 24, 128>}, {pipeline_mode = #tpu.pipeline_mode<synchronous>, transform_indices = @transform_2, window_bounds = array<i64: 2064, 512>}, {pipeline_mode = #tpu.pipeline_mode<synchronous>, transform_indices = @transform_3, window_bounds = array<i64: 1760, 1>}, {transform_indices = @transform_4, window_bounds = array<i64: 32, 128>}]} {
    %c0 = arith.constant 0 : index
    %c0_0 = arith.constant 0 : index
    %0 = vector.load %arg1[%c0, %c0_0] : memref<256x128xbf16, #tpu.memory_space<vmem>>, vector<256x128xbf16>
    %c0_1 = arith.constant 0 : index
    %c0_2 = arith.constant 0 : index
    %1 = vector.load %arg4[%c0_1, %c0_2] : memref<1760x1xf32, #tpu.memory_space<vmem>>, vector<256x1xf32>
    %c0_3 = arith.constant 0 : index
    %c0_4 = arith.constant 0 : index
    %2 = vector.load %arg3[%c0_3, %c0_4] : memref<2064x512xbf16, #tpu.memory_space<vmem>>, vector<256x256xbf16>
    %cst = arith.constant dense<0.000000e+00> : vector<256x128xf32>
    %3 = tpu.matmul %2, %0, %cst {dimension_numbers = #tpu.dot_dimension_numbers<[1], [0], [0], [1], [0, 0, 1, 1], [], []>} : vector<256x256xbf16>, vector<256x128xbf16>, vector<256x128xf32> -> vector<256x128xf32>
    %4 = vector.broadcast %1 : vector<256x1xf32> to vector<256x128xf32>
    %5 = arith.addf %3, %4 : vector<256x128xf32>
    %cst_5 = arith.constant 0.000000e+00 : f32
    %6 = vector.broadcast %cst_5 : f32 to vector<256x128xf32>
    %7 = arith.maximumf %5, %6 : vector<256x128xf32>
    %c256 = arith.constant 256 : index
    %c0_6 = arith.constant 0 : index
    %8 = vector.load %arg4[%c256, %c0_6] : memref<1760x1xf32, #tpu.memory_space<vmem>>, vector<256x1xf32>
    %9 = arith.truncf %7 : vector<256x128xf32> to vector<256x128xbf16>
    %c256_7 = arith.constant 256 : index
    %c0_8 = arith.constant 0 : index
    %10 = vector.load %arg3[%c256_7, %c0_8] : memref<2064x512xbf16, #tpu.memory_space<vmem>>, vector<256x256xbf16>
    %cst_9 = arith.constant dense<0.000000e+00> : vector<256x128xf32>
    %11 = tpu.matmul %10, %9, %cst_9 {dimension_numbers = #tpu.dot_dimension_numbers<[1], [0], [0], [1], [0, 0, 1, 1], [], []>} : vector<256x256xbf16>, vector<256x128xbf16>, vector<256x128xf32> -> vector<256x128xf32>
    %12 = vector.broadcast %8 : vector<256x1xf32> to vector<256x128xf32>
    %13 = arith.addf %11, %12 : vector<256x128xf32>
    %cst_10 = arith.constant 0.000000e+00 : f32
    %14 = vector.broadcast %cst_10 : f32 to vector<256x128xf32>
    %15 = arith.maximumf %13, %14 : vector<256x128xf32>
    %c512 = arith.constant 512 : index
    %c0_11 = arith.constant 0 : index
    %16 = vector.load %arg4[%c512, %c0_11] : memref<1760x1xf32, #tpu.memory_space<vmem>>, vector<256x1xf32>
    %c512_12 = arith.constant 512 : index
    %c0_13 = arith.constant 0 : index
    %17 = vector.load %arg3[%c512_12, %c0_13] : memref<2064x512xbf16, #tpu.memory_space<vmem>>, vector<256x256xbf16>
    %18 = arith.truncf %15 : vector<256x128xf32> to vector<256x128xbf16>
    %cst_14 = arith.constant dense<0.000000e+00> : vector<256x128xf32>
    %19 = tpu.matmul %17, %18, %cst_14 {dimension_numbers = #tpu.dot_dimension_numbers<[1], [0], [0], [1], [0, 0, 1, 1], [], []>} : vector<256x256xbf16>, vector<256x128xbf16>, vector<256x128xf32> -> vector<256x128xf32>
    %c768 = arith.constant 768 : index
    %c0_15 = arith.constant 0 : index
    %20 = vector.load %arg3[%c768, %c0_15] : memref<2064x512xbf16, #tpu.memory_space<vmem>>, vector<256x256xbf16>
    %cst_16 = arith.constant dense<0.000000e+00> : vector<256x128xf32>
    %21 = tpu.matmul %20, %0, %cst_16 {dimension_numbers = #tpu.dot_dimension_numbers<[1], [0], [0], [1], [0, 0, 1, 1], [], []>} : vector<256x256xbf16>, vector<256x128xbf16>, vector<256x128xf32> -> vector<256x128xf32>
    %22 = arith.addf %19, %21 : vector<256x128xf32>
    %23 = vector.broadcast %16 : vector<256x1xf32> to vector<256x128xf32>
    %24 = arith.addf %22, %23 : vector<256x128xf32>
    %cst_17 = arith.constant 0.000000e+00 : f32
    %25 = vector.broadcast %cst_17 : f32 to vector<256x128xf32>
    %26 = arith.maximumf %24, %25 : vector<256x128xf32>
    %c768_18 = arith.constant 768 : index
    %c0_19 = arith.constant 0 : index
    %27 = vector.load %arg4[%c768_18, %c0_19] : memref<1760x1xf32, #tpu.memory_space<vmem>>, vector<256x1xf32>
    %28 = arith.truncf %26 : vector<256x128xf32> to vector<256x128xbf16>
    %c1024 = arith.constant 1024 : index
    %c0_20 = arith.constant 0 : index
    %29 = vector.load %arg3[%c1024, %c0_20] : memref<2064x512xbf16, #tpu.memory_space<vmem>>, vector<256x256xbf16>
    %cst_21 = arith.constant dense<0.000000e+00> : vector<256x128xf32>
    %30 = tpu.matmul %29, %28, %cst_21 {dimension_numbers = #tpu.dot_dimension_numbers<[1], [0], [0], [1], [0, 0, 1, 1], [], []>} : vector<256x256xbf16>, vector<256x128xbf16>, vector<256x128xf32> -> vector<256x128xf32>
    %31 = vector.broadcast %27 : vector<256x1xf32> to vector<256x128xf32>
    %32 = arith.addf %30, %31 : vector<256x128xf32>
    %cst_22 = arith.constant 0.000000e+00 : f32
    %33 = vector.broadcast %cst_22 : f32 to vector<256x128xf32>
    %34 = arith.maximumf %32, %33 : vector<256x128xf32>
    %c1280 = arith.constant 1280 : index
    %c0_23 = arith.constant 0 : index
    %35 = vector.load %arg3[%c1280, %c0_23] : memref<2064x512xbf16, #tpu.memory_space<vmem>>, vector<512x256xbf16>
    %36 = arith.truncf %34 : vector<256x128xf32> to vector<256x128xbf16>
    %cst_24 = arith.constant dense<0.000000e+00> : vector<512x128xf32>
    %37 = tpu.matmul %35, %36, %cst_24 {dimension_numbers = #tpu.dot_dimension_numbers<[1], [0], [0], [1], [0, 0, 1, 1], [], []>} : vector<512x256xbf16>, vector<256x128xbf16>, vector<512x128xf32> -> vector<512x128xf32>
    %c1024_25 = arith.constant 1024 : index
    %c0_26 = arith.constant 0 : index
    %38 = vector.load %arg4[%c1024_25, %c0_26] : memref<1760x1xf32, #tpu.memory_space<vmem>>, vector<512x1xf32>
    %39 = vector.broadcast %38 : vector<512x1xf32> to vector<512x128xf32>
    %40 = arith.addf %37, %39 : vector<512x128xf32>
    %cst_27 = arith.constant 0.000000e+00 : f32
    %41 = vector.broadcast %cst_27 : f32 to vector<512x128xf32>
    %42 = arith.maximumf %40, %41 : vector<512x128xf32>
    %43 = arith.truncf %42 : vector<512x128xf32> to vector<512x128xbf16>
    %c1792 = arith.constant 1792 : index
    %c0_28 = arith.constant 0 : index
    %44 = vector.load %arg3[%c1792, %c0_28] : memref<2064x512xbf16, #tpu.memory_space<vmem>>, vector<216x512xbf16>
    %cst_29 = arith.constant dense<0.000000e+00> : vector<216x128xf32>
    %45 = tpu.matmul %44, %43, %cst_29 {dimension_numbers = #tpu.dot_dimension_numbers<[1], [0], [0], [1], [0, 0, 1, 1], [], []>} : vector<216x512xbf16>, vector<512x128xbf16>, vector<216x128xf32> -> vector<216x128xf32>
    %c1536 = arith.constant 1536 : index
    %c0_30 = arith.constant 0 : index
    %46 = vector.load %arg4[%c1536, %c0_30] : memref<1760x1xf32, #tpu.memory_space<vmem>>, vector<216x1xf32>
    %47 = vector.broadcast %46 : vector<216x1xf32> to vector<216x128xf32>
    %48 = arith.addf %45, %47 : vector<216x128xf32>
    %c2016 = arith.constant 2016 : index
    %c0_31 = arith.constant 0 : index
    %49 = vector.load %arg3[%c2016, %c0_31] : memref<2064x512xbf16, #tpu.memory_space<vmem>>, vector<8x512xbf16>
    %cst_32 = arith.constant dense<0.000000e+00> : vector<8x128xf32>
    %50 = tpu.matmul %49, %43, %cst_32 {dimension_numbers = #tpu.dot_dimension_numbers<[1], [0], [0], [1], [0, 0, 1, 1], [], []>} : vector<8x512xbf16>, vector<512x128xbf16>, vector<8x128xf32> -> vector<8x128xf32>
    %c1752 = arith.constant 1752 : index
    %c0_33 = arith.constant 0 : index
    %51 = vector.load %arg4[%c1752, %c0_33] : memref<1760x1xf32, #tpu.memory_space<vmem>>, vector<8x1xf32>
    %52 = vector.broadcast %51 : vector<8x1xf32> to vector<8x128xf32>
    %53 = arith.addf %50, %52 : vector<8x128xf32>
    %c0_34 = arith.constant 0 : index
    %c0_35 = arith.constant 0 : index
    %54 = vector.load %arg2[%c0_34, %c0_35] : memref<24x128xf32, #tpu.memory_space<vmem>>, vector<8x128xf32>
    %c8 = arith.constant 8 : index
    %c0_36 = arith.constant 0 : index
    %55 = vector.load %arg2[%c8, %c0_36] : memref<24x128xf32, #tpu.memory_space<vmem>>, vector<8x128xf32>
    %c16 = arith.constant 16 : index
    %c0_37 = arith.constant 0 : index
    %56 = vector.load %arg2[%c16, %c0_37] : memref<24x128xf32, #tpu.memory_space<vmem>>, vector<8x128xf32>
    %cst_38 = arith.constant 1.000000e+00 : f32
    %57 = vector.broadcast %cst_38 : f32 to vector<8x128xf32>
    %cst_39 = arith.constant 0.282094806 : f32
    %58 = vector.broadcast %cst_39 : f32 to vector<8x128xf32>
    %59 = arith.mulf %58, %57 : vector<8x128xf32>
    %cst_40 = arith.constant -0.488602519 : f32
    %60 = vector.broadcast %cst_40 : f32 to vector<8x128xf32>
    %61 = arith.mulf %60, %55 : vector<8x128xf32>
    %cst_41 = arith.constant 0.488602519 : f32
    %62 = vector.broadcast %cst_41 : f32 to vector<8x128xf32>
    %63 = arith.mulf %62, %56 : vector<8x128xf32>
    %cst_42 = arith.constant -0.488602519 : f32
    %64 = vector.broadcast %cst_42 : f32 to vector<8x128xf32>
    %65 = arith.mulf %64, %54 : vector<8x128xf32>
    %66 = arith.mulf %54, %54 : vector<8x128xf32>
    %67 = arith.mulf %55, %55 : vector<8x128xf32>
    %68 = arith.mulf %56, %56 : vector<8x128xf32>
    %69 = arith.mulf %54, %55 : vector<8x128xf32>
    %70 = arith.mulf %55, %56 : vector<8x128xf32>
    %71 = arith.mulf %54, %56 : vector<8x128xf32>
    %cst_43 = arith.constant 1.09254849 : f32
    %72 = vector.broadcast %cst_43 : f32 to vector<8x128xf32>
    %73 = arith.mulf %72, %69 : vector<8x128xf32>
    %cst_44 = arith.constant -1.09254849 : f32
    %74 = vector.broadcast %cst_44 : f32 to vector<8x128xf32>
    %75 = arith.mulf %74, %70 : vector<8x128xf32>
    %cst_45 = arith.constant 2.000000e+00 : f32
    %76 = vector.broadcast %cst_45 : f32 to vector<8x128xf32>
    %77 = arith.mulf %76, %68 : vector<8x128xf32>
    %78 = arith.subf %77, %66 : vector<8x128xf32>
    %79 = arith.subf %78, %67 : vector<8x128xf32>
    %cst_46 = arith.constant 0.31539157 : f32
    %80 = vector.broadcast %cst_46 : f32 to vector<8x128xf32>
    %81 = arith.mulf %80, %79 : vector<8x128xf32>
    %cst_47 = arith.constant -1.09254849 : f32
    %82 = vector.broadcast %cst_47 : f32 to vector<8x128xf32>
    %83 = arith.mulf %82, %71 : vector<8x128xf32>
    %84 = arith.subf %66, %67 : vector<8x128xf32>
    %cst_48 = arith.constant 0.546274245 : f32
    %85 = vector.broadcast %cst_48 : f32 to vector<8x128xf32>
    %86 = arith.mulf %85, %84 : vector<8x128xf32>
    %87 = tpu.concatenate %59, %61, %63, %65, %73, %75, %81, %83, %86 in 0 : vector<8x128xf32>, vector<8x128xf32>, vector<8x128xf32>, vector<8x128xf32>, vector<8x128xf32>, vector<8x128xf32>, vector<8x128xf32>, vector<8x128xf32>, vector<8x128xf32> -> vector<72x128xf32>
    %88 = tpu.concatenate %87, %87, %87 in 0 : vector<72x128xf32>, vector<72x128xf32>, vector<72x128xf32> -> vector<216x128xf32>
    %c2032 = arith.constant 2032 : index
    %c0_49 = arith.constant 0 : index
    %89 = vector.load %arg3[%c2032, %c0_49] : memref<2064x512xbf16, #tpu.memory_space<vmem>>, vector<24x216xbf16>
    %90 = arith.mulf %88, %48 : vector<216x128xf32>
    %91 = arith.truncf %90 : vector<216x128xf32> to vector<216x128xbf16>
    %cst_50 = arith.constant dense<0.000000e+00> : vector<24x128xf32>
    %92 = tpu.matmul %89, %91, %cst_50 {dimension_numbers = #tpu.dot_dimension_numbers<[1], [0], [0], [1], [0, 0, 1, 1], [], []>} : vector<24x216xbf16>, vector<216x128xbf16>, vector<24x128xf32> -> vector<24x128xf32>
    %93 = arith.negf %92 : vector<24x128xf32>
    %94 = math.exp %93 : vector<24x128xf32>
    %cst_51 = arith.constant 1.000000e+00 : f32
    %95 = vector.broadcast %cst_51 : f32 to vector<24x128xf32>
    %96 = arith.addf %95, %94 : vector<24x128xf32>
    %97 = arith.divf %95, %96 : vector<24x128xf32>
    %c0_52 = arith.constant 0 : index
    %c0_53 = arith.constant 0 : index
    %98 = vector.load %arg5[%c0_52, %c0_53] : memref<32x128xf32, #tpu.memory_space<vmem>>, vector<8x128xf32>
    tpu.vector_store %arg5[%c0_52, %c0_53], %53 {strides = array<i32>} : memref<32x128xf32, #tpu.memory_space<vmem>>, vector<8x128xf32>,
    %c8_54 = arith.constant 8 : index
    %c0_55 = arith.constant 0 : index
    %99 = vector.load %arg5[%c8_54, %c0_55] : memref<32x128xf32, #tpu.memory_space<vmem>>, vector<24x128xf32>
    tpu.vector_store %arg5[%c8_54, %c0_55], %97 {strides = array<i32>} : memref<32x128xf32, #tpu.memory_space<vmem>>, vector<24x128xf32>,
    return
  }
  func.func @transform_0(%arg0: i32) -> (i32, i32) {
    %c0_i32 = arith.constant 0 : i32
    %c0_i32_0 = arith.constant 0 : i32
    return %c0_i32, %arg0 : i32, i32
  }
  func.func @transform_1(%arg0: i32) -> (i32, i32) {
    %c0_i32 = arith.constant 0 : i32
    %c0_i32_0 = arith.constant 0 : i32
    return %c0_i32, %arg0 : i32, i32
  }
  func.func @transform_2(%arg0: i32) -> (i32, i32) {
    %c0_i32 = arith.constant 0 : i32
    %c0_i32_0 = arith.constant 0 : i32
    %c0_i32_1 = arith.constant 0 : i32
    return %c0_i32, %c0_i32_0 : i32, i32
  }
  func.func @transform_3(%arg0: i32) -> (i32, i32) {
    %c0_i32 = arith.constant 0 : i32
    %c0_i32_0 = arith.constant 0 : i32
    %c0_i32_1 = arith.constant 0 : i32
    return %c0_i32, %c0_i32_0 : i32, i32
  }
  func.func @transform_4(%arg0: i32) -> (i32, i32) {
    %c0_i32 = arith.constant 0 : i32
    %c0_i32_0 = arith.constant 0 : i32
    return %c0_i32, %arg0 : i32, i32
  }
}

</mosaic_0001>

<bundles_post_ra>
// kernel: tpu_custom_call.1
= control target key start
LH: loop header
LB: loop body
LE: loop exit
PB: predicated region body
PF: predicated region fallthrough
CT: control target
= control target key end

     0   :  { %s9238_s0 = inlined_call_operand.hbm [shape: bf16[256,256], index: 0, kind: input, shape index: {}]   ;;  %s9239_s1 = inlined_call_operand.hbm [shape: f32[24,256], index: 1, kind: input, shape index: {}]   ;;  %s9240_s2 = inlined_call_operand.hbm [shape: bf16[2064,512], index: 2, kind: input, shape index: {}]   ;;  %s9241_s3 = inlined_call_operand.vmem [shape: f32[1760,1], index: 3, kind: input, shape index: {}]   ;;  %s9242_s4 = inlined_call_operand.hbm [shape: f32[32,256], index: 4, kind: output, shape index: {}]  }
   0x1   :  { %9250 = sst [smem:[#allocation68_spill]] %s9238_s0 }
   0x2   :  { %9251 = sst [smem:[#allocation69_spill]] %s9240_s2 }
   0x3   :  { %9 = vsyncpa [#allocation3], 0 }
   0x4   :  { %11 = vsyncpa [#allocation3 + $0x1], 0 }
   0x5   :  { %12 = vsyncpa [#allocation6], 0 }
   0x6   :  { %14 = vsyncpa [#allocation6 + $0x1], 0 }
   0x7   :  { %15 = vsyncpa [#allocation4], 0 }
   0x8   :  { %17 = vsyncpa [#allocation4 + $0x1], 0  ;;  %s7328_s15 = smov 0   ;;  %s7330_s16 = smov 0  }
   0x9   :  { %s7332_s17 = smov 0   ;;  %s7334_s18 = smov 0  }
   0xa LB: > { %s7349_s19 = sadd.s32 4294967295, %s7287_s18   ;;  %s5466_s20 = sadd.s32 4294967294, %s7287_s18   ;;  %s7287_s18 = sphi %s7334_s18, %s9392_s18   ;;  %s7283_s17 = sphi %s7332_s17, %s9391_s17   ;;  %s7279_s16 = sphi %s7330_s16, %s9390_s16   ;;  %s7275_s15 = sphi %s7328_s15, %s9389_s15  }
   0xb   : > { %s7353_s21 = sadd.s32 1, %s7287_s18   ;;  %s30_s22 = sadd.s32 1, %s7283_s17 }
   0xc   : > { %s27_s23 = ssub.s32 %s7287_s18, %s7353_s21  ;;  %p37_p0 = scmp.ne.s32.totalorder %s7283_s17, %s7279_s16 }
   0xd   : > { %p28_p1 = scmp.eq.s32.totalorder %s27_s23, 0  ;;  %p38_p2 = scmp.eq.s32.totalorder %s7287_s18, 0 }
   0xe   : > { %p43_p3 = scmp.ne.s32.totalorder %s7279_s16, %s7275_s15  ;;  %p9243_p4 = scmp.eq.s32.totalorder %s7349_s19, 0 }
   0xf   : > { %s7365_s24 = scalar_select %p28_p1, %s7283_s17, %s30_s22  }
  0x10   : > { %p7367_p5 = por %p38_p2, %p37_p0  ;;  %p7373_p6 = por %p9243_p4, %p43_p3 }
  0x11   : > { %9252 = sst [smem:[#allocation13_spill]] %s7365_s24  ;;  %p135_p7 = scmp.eq.s32.totalorder %s7349_s19, 1 }
  0x12   : > { %s9253_s25 = scalar_select %p7367_p5, 1, 0 }
  0x13   : > { %s9254_s26 = scalar_select %p7373_p6, 1, 0 }
  0x14   : > { %p141_p8 = scmp.eq.s32.totalorder %s5466_s20, 1  ;;  %p5467_p9 = scmp.ge.s32.totalorder %s7287_s18, 1 }
  0x15   : > { %p148_p10 = scmp.lt.s32.totalorder %s7287_s18, 3  ;;  %p7380_p11 = por %p135_p7, %p37_p0 }
  0x16   : > { %p7384_p12 = por %p141_p8, %p43_p3  ;;  %s7289_s30 = smov [#allocation7]  }
  0x17   : > { %s9255_s27 = scalar_select %p7380_p11, 1, 0 }
  0x18   : > { %s9256_s28 = scalar_select %p7384_p12, 1, 0 }
  0x19   : > { %p7388_p13 = pnand %p5467_p9, %p148_p10  ;;  %s160_s5 = sshll.u32 %s7289_s30, 4  ;;  %s161_s5 = int_to_ptr.vmem [resolvable:$true] %s160_s5 }
  0x1a   : > { %s7403_s7 = sand.u32 1, %s7283_s17   ;;  %s9259_s2 = sld [smem:[#allocation69_spill]] }
  0x1b   : > { %s9257_s29 = scalar_select %p7388_p13, 1, 0 }
  0x1c   : > { %p6606_p1 = pneg %p7388_p13 }
  0x1e   : > { %p7396_p2 = pnand %p6606_p1, %p9243_p4 }
  0x20   : > { %s7125_s10 = scalar_lea.hbm %s9259_s2, 66048  ;;  %p7127_p8 = pneg %p7396_p2 }
  0x21   : > { %p7126_p7 = scmp.ne.s32.totalorder %s9259_s2, %s7125_s10  ;;  %p7132_p1 = scmp.lt.u32.totalorder %s7125_s10, %s9259_s2 }
  0x23   : > { %p7128_p9 = pnand %p7127_p8, %p7126_p7 }
  0x25   : > { %p7129_p10 = pneg %p7128_p9 }
  0x27   : > { %p7134_p0 = pnand %p7132_p1, %p7129_p10 }
  0x29   : > { %7137 = shalt.err (!%p7134_p0)
}
  0x2a   : > { %s7138_s20 = scalar_lea.vmem %s161_s5, 66048  ;;  %p7146_p11 = scmp.lt.s32.totalorder %s161_s5, %s161_s5 }
  0x2b   : > { %p7139_p4 = scmp.ne.s32.totalorder %s161_s5, %s7138_s20  ;;  %p7147_p6 = scmp.lt.s32.totalorder %s7138_s20, %s7138_s20 }
  0x2d   : > { %p7141_p3 = pnand %p7139_p4, %p7127_p8  ;;  %p7148_p13 = por %p7147_p6, %p7146_p11 }
  0x2f   : > { %p7142_p12 = pneg %p7141_p3 }
  0x31   : > { %p7149_p5 = pnand %p7148_p13, %p7142_p12 }
  0x33   : > { %7152 = shalt.err (!%p7149_p5)
}
  0x34   : > { %s9247_s22 = smov 256   ;;  %s7291_s23 = smov 16  }
  0x35   : > { %6609 = dma.hbm_to_vmem [thread:$0]  (!%p7396_p2), %s9259_s2, 66048, %s161_s5, [#allocation6], %s9247_s22, %s9247_s22, %s7291_s23  }
  0x36   : > { %p9260_p4 = scmp.ne.s32.totalorder %s9253_s25, 0  ;;  %p9261_p6 = scmp.lt.s32.totalorder %s7287_s18, 2 }
  0x37   : > { %s5470_s10 = sshll.u32 %s7403_s7, 7  ;;  %s5471_s11 = sshll.u32 %s7287_s18, 6 }
  0x38   : > { %p7427_p11 = pnand %p9261_p6, %p9260_p4  ;;  %s9263_s0 = sld [smem:[#allocation68_spill]] }
  0x39   : > { %s181_s5 = scalar_lea.vmem [#allocation2], %s5470_s10  ;;  %s6594_s14 = smul.u32 24, %s7403_s7 }
  0x3a   : > { %s187_s25 = sshll.u32 %s181_s5, 4  ;;  %s178_s20 = scalar_lea.sflag [#allocation3], %s7403_s7  ;;  %s7438_s25 = int_to_ptr.vmem [resolvable:$true] %s187_s25 }
  0x3b   : > { %p7155_p12 = pneg %p7427_p11 }
  0x3e   : > { %s7436_s6 = scalar_lea.hbm %s9263_s0, %s5471_s11  ;;  %s7158_s11 = scalar_lea.hbm %s9263_s0, 4096 }
  0x3f   : > { %s7153_s23 = scalar_lea.hbm %s7436_s6, 2048  ;;  %p7159_p0 = scmp.lt.u32.totalorder %s7436_s6, %s9263_s0 }
  0x40   : > { %p7154_p5 = scmp.ne.s32.totalorder %s7436_s6, %s7153_s23  ;;  %p7160_p3 = scmp.lt.u32.totalorder %s7158_s11, %s7153_s23 }
  0x41   : > { %p7162_p8 = scmp.lt.u32.totalorder %s7153_s23, %s7436_s6 }
  0x42   : > { %p7156_p13 = pnand %p7155_p12, %p7154_p5  ;;  %p7161_p7 = por %p7160_p3, %p7159_p0 }
  0x44   : > { %p7157_p2 = pneg %p7156_p13  ;;  %p7163_p9 = por %p7162_p8, %p7161_p7 }
  0x46   : > { %p7164_p10 = pnand %p7163_p9, %p7157_p2 }
  0x48   : > { %7167 = shalt.err (!%p7164_p10)
}
  0x49   : > { %s7168_s10 = scalar_lea.vmem %s7438_s25, 2048  ;;  %s7292_s5 = smov [#allocation2]  }
  0x4a   : > { %p7169_p1 = scmp.ne.s32.totalorder %s7438_s25, %s7168_s10  ;;  %s7173_s30 = sshll.u32 %s7292_s5, 4  ;;  %s7174_s30 = int_to_ptr.vmem [resolvable:$false] %s7173_s30 }
  0x4b   : > { %s7175_s8 = scalar_lea.vmem %s7174_s30, 4096  ;;  %p7176_p5 = scmp.lt.s32.totalorder %s7438_s25, %s7174_s30 }
  0x4c   : > { %p7171_p4 = pnand %p7169_p1, %p7155_p12  ;;  %p7177_p13 = scmp.lt.s32.totalorder %s7175_s8, %s7168_s10 }
  0x4e   : > { %p7172_p6 = pneg %p7171_p4  ;;  %p7178_p0 = por %p7177_p13, %p7176_p5 }
  0x50   : > { %p7179_p3 = pnand %p7178_p0, %p7172_p6 }
  0x52   : > { %7182 = shalt.err (!%p7179_p3)
}
  0x53   : > { %s7293_s23 = smov 128   ;;  %s7294_s11 = smov 64  }
  0x54   : > { %s7295_s12 = smov 4   ;;  %s197_s13 = sand.u32 1, %s7287_s18  }
  0x55   : > { %6613 = dma.hbm_to_vmem [thread:$0]  (!%p7427_p11), %s7436_s6, 2048, %s7438_s25, %s178_s20, %s7293_s23, %s7294_s11, %s7295_s12  }
  0x56   : > { %s5472_s10 = sshll.u32 %s7287_s18, 7  ;;  %s201_s22 = scalar_lea.vmem [#allocation5], %s6594_s14 }
  0x57   : > { %s7475_s8 = scalar_lea.hbm %s9239_s1, %s5472_s10  ;;  %s207_s0 = sshll.u32 %s201_s22, 4  ;;  %s7479_s0 = int_to_ptr.vmem [resolvable:$true] %s207_s0 }
  0x58   : > { %s7481_s2 = scalar_lea.sflag [#allocation6], %s197_s13  ;;  %s7183_s24 = scalar_lea.hbm %s7475_s8, 384 }
  0x59   : > { %p7184_p2 = scmp.ne.s32.totalorder %s7475_s8, %s7183_s24  ;;  %s7188_s7 = scalar_lea.hbm %s9239_s1, 768 }
  0x5a   : > { %p7189_p9 = scmp.lt.u32.totalorder %s7475_s8, %s9239_s1  ;;  %p7190_p10 = scmp.lt.u32.totalorder %s7188_s7, %s7183_s24 }
  0x5b   : > { %p7186_p7 = pnand %p7184_p2, %p7155_p12  ;;  %p7192_p4 = scmp.lt.u32.totalorder %s7183_s24, %s7475_s8 }
  0x5c   : > { %p7191_p1 = por %p7190_p10, %p7189_p9 }
  0x5d   : > { %p7187_p8 = pneg %p7186_p7 }
  0x5e   : > { %p7193_p6 = por %p7192_p4, %p7191_p1 }
  0x60   : > { %p7194_p5 = pnand %p7193_p6, %p7187_p8 }
  0x62   : > { %7197 = shalt.err (!%p7194_p5)
}
  0x63   : > { %s7198_s22 = scalar_lea.vmem %s7479_s0, 384  ;;  %s7296_s14 = smov [#allocation5]  }
  0x64   : > { %p7199_p13 = scmp.ne.s32.totalorder %s7479_s0, %s7198_s22  ;;  %s7203_s12 = sshll.u32 %s7296_s14, 4  ;;  %s7204_s12 = int_to_ptr.vmem [resolvable:$false] %s7203_s12 }
  0x65   : > { %s7205_s13 = scalar_lea.vmem %s7204_s12, 768  ;;  %p7206_p2 = scmp.lt.s32.totalorder %s7479_s0, %s7204_s12 }
  0x66   : > { %p7201_p0 = pnand %p7199_p13, %p7155_p12  ;;  %p7207_p7 = scmp.lt.s32.totalorder %s7205_s13, %s7198_s22 }
  0x68   : > { %p7202_p3 = pneg %p7201_p0  ;;  %p7208_p9 = por %p7207_p7, %p7206_p2 }
  0x6a   : > { %p7209_p10 = pnand %p7208_p9, %p7202_p3 }
  0x6c   : > { %7212 = shalt.err (!%p7209_p10)
}
  0x6d   : > { %s7297_s24 = smov 8   ;;  %s9264_s10 = smov 256  }
  0x6e   : > { %6616 = dma.hbm_to_vmem [thread:$0]  (!%p7427_p11), %s7475_s8, 384, %s7479_s0, %s7481_s2, %s9264_s10, %s7293_s23, %s7297_s24  }
  0x6f   : > { %p9265_p12 = scmp.ne.s32.totalorder %s9257_s29, 0 }
  0x71   : > { %219 = sbr.rel (%p9265_p12) target bundleno = 2619 (0xa3b), region = 36 }
  0x78   : > { %s7512_s5 = sand.u32 1, %s7279_s16   ;;  %p9266_p8 = scmp.ne.s32.totalorder %s9254_s26, 0 }
  0x79   : > { %s5474_s30 = sshll.u32 %s7512_s5, 7  ;;  %s222_s6 = scalar_lea.sflag [#allocation3], %s7512_s5 }
  0x7a   : > { %s7516_s25 = scalar_lea.vmem [#allocation2], %s5474_s30 }
  0x7b   : > { %7258 = dma.done.wait (%p9266_p8), %s222_s6, 2048  }
  0x7c   : > { %7260 = vsyncadd (%p9266_p8), %s222_s6, 4294965248  ;;  %s230_s0 = sand.u32 1, %s7349_s19   ;;  %s6595_s2 = smul.u32 24, %s7512_s5 }
  0x7d   : > { %s231_s29 = scalar_lea.sflag [#allocation6], %s230_s0 }
  0x7e   : > { %s7524_s9 = scalar_lea.vmem [#allocation5], %s6595_s2 }
  0x7f   : > { %7262 = dma.done.wait (%p9266_p8), %s231_s29, 384  }
  0x80   : > { %7264 = vsyncadd (%p9266_p8), %s231_s29, 4294966912  ;;  %p9267_p11 = scmp.eq.s32.totalorder %s7349_s19, 0 }
  0x82   : > { %7266 = dma.done.wait (%p9267_p11), [#allocation6], 66048   ;;  %p9268_p1 = pmov %p9267_p11 }
  0x83   : > { %v9248_v0 = vmov 0   ;;  %v317_v1 = vld [vmem:[%s9241_s3 + $0x80] sm:$0xff]  ;;  %v318_v5 = vld [vmem:[%s9241_s3 + $0x88] sm:$0xff]  ;;  %v319_v9 = vld [vmem:[%s9241_s3 + $0x90] sm:$0xff]  ;;  %vm5267_vm0 = vcmask 719872   ;;  %s5476_s13 = sshll.u32 %s7512_s5, 5 }
  0x84   : > { %7268 = vsyncadd (%p9268_p1), [#allocation6], 4294901248  ;;  %6669 = vset.pattern.permute.xlu1 %v9248_v0  ;;  %6668 = vset.pattern.permute.xlu0 %v9248_v0  ;;  %v301_v2 = vld [vmem:[%s9241_s3] sm:$0xff]  ;;  %v302_v6 = vld [vmem:[%s9241_s3 + $0x8] sm:$0xff]  ;;  %s9091_s24 = scalar_lea.vmem [#allocation8], %s5476_s13  ;;  %vm5274_vm1 = vcmask 1043456  }
  0x85   : > { %447 = vperm.xlu0 %6668, %v317_v1   ;;  %367 = vperm.xlu1 %6669, %v301_v2   ;;  %v7543_v3 = vld [vmem:[%s7516_s25 + $0x40] sm:$0xff]   ;;  %v7557_v7 = vld [vmem:[%s7516_s25 + $0x48] sm:$0xff]   ;;  %v320_v10 = vld [vmem:[%s9241_s3 + $0x98] sm:$0xff]  ;;  %s5787_s10 = sshll.u32 %s7349_s19, 7  ;;  %s5349_s2 = scalar_lea.sflag [#allocation4], %s7512_s5 }
  0x86   : > { %v7546_v4 = vld [vmem:[%s7516_s25] sm:$0xff]   ;;  %5790 = vmatprep.subr.bf16.mxu0 %v7543_v3  ;;  %v7560_v8 = vld [vmem:[%s7516_s25 + $0x8] sm:$0xff]   ;;  %v7570_v11 = vld [vmem:[%s7516_s25 + $0x50] sm:$0xff]   ;;  %s9193_s0 = scalar_lea.hbm %s9242_s4, %s5787_s10  ;;  %p9385_p6 = scmp.ne.s32.totalorder %s9255_s27, 0 }
  0x87   : > { %5791 = vmatpush3.bf16.msra.mxu0 %v7546_v4  ;;  %v7574_v12 = vld [vmem:[%s7516_s25 + $0x10] sm:$0xff]   ;;  %v304_v14 = vld [vmem:[%s9241_s3 + $0x18] sm:$0xff]  ;;  %v321_v17 = vld [vmem:[%s9241_s3 + $0xa0] sm:$0xff]  ;;  %s7299_s23 = smov [#allocation8]  }
  0x88   : > { %5792 = vmatprep.subr.bf16.mxu0 %v7557_v7  ;;  %v303_v13 = vld [vmem:[%s9241_s3 + $0x10] sm:$0xff]  ;;  %v7584_v15 = vld [vmem:[%s7516_s25 + $0x58] sm:$0xff]   ;;  %v322_v18 = vld [vmem:[%s9241_s3 + $0xa8] sm:$0xff]  ;;  %s7217_s19 = sshll.u32 %s7299_s23, 4  ;;  %s7218_s19 = int_to_ptr.vmem [resolvable:$false] %s7217_s19 }
  0x89   : > { %452 = vperm.xlu0 %6668, %v318_v5   ;;  %372 = vperm.xlu1 %6669, %v302_v6   ;;  %v7588_v16 = vld [vmem:[%s7516_s25 + $0x18] sm:$0xff]   ;;  %v7598_v19 = vld [vmem:[%s7516_s25 + $0x60] sm:$0xff]   ;;  %v306_v22 = vld [vmem:[%s9241_s3 + $0x28] sm:$0xff]  ;;  %s7219_s8 = scalar_lea.vmem %s7218_s19, 1024 }
  0x8a   : > { %v7602_v20 = vld [vmem:[%s7516_s25 + $0x20] sm:$0xff]   ;;  %v7612_v23 = vld [vmem:[%s7516_s25 + $0x68] sm:$0xff]   ;;  %v323_v25 = vld [vmem:[%s9241_s3 + $0xb0] sm:$0xff] }
  0x8b   : > { %5793 = vmatpush3.bf16.msra.mxu0 %v7560_v8  ;;  %v305_v21 = vld [vmem:[%s9241_s3 + $0x20] sm:$0xff]  ;;  %v7616_v24 = vld [vmem:[%s7516_s25 + $0x28] sm:$0xff]   ;;  %v324_v26 = vld [vmem:[%s9241_s3 + $0xb8] sm:$0xff] }
  0x8c   : > { %5794 = vmatprep.subr.bf16.mxu0 %v7570_v11  ;;  %v7626_v27 = vld [vmem:[%s7516_s25 + $0x70] sm:$0xff]   ;;  %v308_v31 = vld [vmem:[%s9241_s3 + $0x38] sm:$0xff]  ;;  %v325_v34 = vld [vmem:[%s9241_s3 + $0xc0] sm:$0xff] }
  0x8d   : > { %457 = vperm.xlu0 %6668, %v319_v9   ;;  %462 = vperm.xlu1 %6669, %v320_v10   ;;  %v6688_v28 = vld [vmem:[#allocation7 + $0x4] ss:$16 sps:$4 sm:$0xff]   ;;  %v7640_v32 = vld [vmem:[%s7516_s25 + $0x78] sm:$0xff]   ;;  %v326_v35 = vld [vmem:[%s9241_s3 + $0xc8] sm:$0xff] }
  0x8e   : > { %v7630_v29 = vld [vmem:[%s7516_s25 + $0x30] sm:$0xff]   ;;  %813 = vmatprep.mubr.bf16.mxu0 %v6688_v28  ;;  %v7644_v33 = vld [vmem:[%s7516_s25 + $0x38] sm:$0xff]   ;;  %v309_v38 = vld [vmem:[%s9241_s3 + $0x40] sm:$0xff] }
  0x8f   : > { %5795 = vmatpush3.bf16.msra.mxu0 %v7574_v12  ;;  %v307_v30 = vld [vmem:[%s9241_s3 + $0x30] sm:$0xff]  ;;  %v310_v39 = vld [vmem:[%s9241_s3 + $0x48] sm:$0xff]  ;;  %v328_v41 = vld [vmem:[%s9241_s3 + $0xd8] sm:$0xff] }
  0x90   : > { %5796 = vmatprep.subr.bf16.mxu0 %v7584_v15  ;;  %v6686_v36 = vld [vmem:[#allocation7] ss:$16 sps:$4 sm:$0xff]   ;;  %v6689_v37 = vld [vmem:[#allocation7 + $0x24] ss:$16 sps:$4 sm:$0xff]   ;;  %v312_v45 = vld [vmem:[%s9241_s3 + $0x58] sm:$0xff] }
  0x91   : > { %377 = vperm.xlu0 %6668, %v303_v13   ;;  %382 = vperm.xlu1 %6669, %v304_v14   ;;  %v327_v40 = vld [vmem:[%s9241_s3 + $0xd0] sm:$0xff]  ;;  %v329_v46 = vld [vmem:[%s9241_s3 + $0xe0] sm:$0xff]  ;;  %v330_v47 = vld [vmem:[%s9241_s3 + $0xe8] sm:$0xff] }
  0x92   : > { %v6691_v42 = vld [vmem:[#allocation7 + $0x20] ss:$16 sps:$4 sm:$0xff]   ;;  %v6692_v43 = vld [vmem:[#allocation7 + $0x44] ss:$16 sps:$4 sm:$0xff]   ;;  %v314_v51 = vld [vmem:[%s9241_s3 + $0x68] sm:$0xff] }
  0x93   : > { %5797 = vmatpush3.bf16.msra.mxu0 %v7588_v16  ;;  %v311_v44 = vld [vmem:[%s9241_s3 + $0x50] sm:$0xff]  ;;  %v313_v50 = vld [vmem:[%s9241_s3 + $0x60] sm:$0xff]  ;;  %v332_v53 = vld [vmem:[%s9241_s3 + $0xf8] sm:$0xff] }
  0x94   : > { %5798 = vmatprep.subr.bf16.mxu0 %v7598_v19  ;;  %v6694_v48 = vld [vmem:[#allocation7 + $0x40] ss:$16 sps:$4 sm:$0xff]   ;;  %v6695_v49 = vld [vmem:[#allocation7 + $0x64] ss:$16 sps:$4 sm:$0xff]   ;;  %v316_v57 = vld [vmem:[%s9241_s3 + $0x78] sm:$0xff] }
  0x95   : > { %467 = vperm.xlu0 %6668, %v321_v17   ;;  %472 = vperm.xlu1 %6669, %v322_v18   ;;  %v331_v52 = vld [vmem:[%s9241_s3 + $0xf0] sm:$0xff]  ;;  %v990_v58 = vld [vmem:[%s9241_s3 + $0x180] sm:$0xff]  ;;  %v991_v59 = vld [vmem:[%s9241_s3 + $0x188] sm:$0xff] }
  0x96   : > { %v6697_v54 = vld [vmem:[#allocation7 + $0x60] ss:$16 sps:$4 sm:$0xff]   ;;  %v6698_v55 = vld [vmem:[#allocation7 + $0x84] ss:$16 sps:$4 sm:$0xff]   ;;  %v975_v63 = vld [vmem:[%s9241_s3 + $0x108] sm:$0xff] }
  0x97   : > { %5799 = vmatpush3.bf16.msra.mxu0 %v7602_v20  ;;  %v315_v56 = vld [vmem:[%s9241_s3 + $0x70] sm:$0xff]  ;;  %v974_v62 = vld [vmem:[%s9241_s3 + $0x100] sm:$0xff]  ;;  %v993_v2 = vld [vmem:[%s9241_s3 + $0x198] sm:$0xff] }
  0x98   : > { %5800 = vmatprep.subr.bf16.mxu0 %v7612_v23  ;;  %v6700_v60 = vld [vmem:[#allocation7 + $0x80] ss:$16 sps:$4 sm:$0xff]   ;;  %v6701_v61 = vld [vmem:[#allocation7 + $0xa4] ss:$16 sps:$4 sm:$0xff]   ;;  %v977_v6 = vld [vmem:[%s9241_s3 + $0x118] sm:$0xff] }
  0x99   : > { %387 = vperm.xlu0 %6668, %v305_v21   ;;  %392 = vperm.xlu1 %6669, %v306_v22   ;;  %v992_v1 = vld [vmem:[%s9241_s3 + $0x190] sm:$0xff]  ;;  %v978_v10 = vld [vmem:[%s9241_s3 + $0x120] sm:$0xff]  ;;  %v997_v14 = vld [vmem:[%s9241_s3 + $0x1b8] sm:$0xff] }
  0x9a   : > { %v6704_v5 = vld [vmem:[#allocation7 + $0xc4] ss:$16 sps:$4 sm:$0xff]   ;;  %v6706_v9 = vld [vmem:[#allocation7 + $0xc0] ss:$16 sps:$4 sm:$0xff]   ;;  %v981_v18 = vld [vmem:[%s9241_s3 + $0x138] sm:$0xff] }
  0x9b   : > { %5801 = vmatpush3.bf16.msra.mxu0 %v7616_v24  ;;  %v996_v13 = vld [vmem:[%s9241_s3 + $0x1b0] sm:$0xff]  ;;  %v982_v22 = vld [vmem:[%s9241_s3 + $0x140] sm:$0xff] }
  0x9c   : > { %5802 = vmatprep.subr.bf16.mxu0 %v7626_v27  ;;  %v6710_v17 = vld [vmem:[#allocation7 + $0x104] ss:$16 sps:$4 sm:$0xff]   ;;  %v6712_v21 = vld [vmem:[#allocation7 + $0x100] ss:$16 sps:$4 sm:$0xff]  }
  0x9d   : > { %477 = vperm.xlu0 %6668, %v323_v25   ;;  %482 = vperm.xlu1 %6669, %v324_v26   ;;  %v1000_v25 = vld [vmem:[%s9241_s3 + $0x1d0] sm:$0xff]  ;;  %v1001_v26 = vld [vmem:[%s9241_s3 + $0x1d8] sm:$0xff] }
  0x9e   : > { %v984_v28 = vld [vmem:[%s9241_s3 + $0x150] sm:$0xff] }
  0x9f   : > { %5803 = vmatpush3.bf16.msra.mxu0 %v7630_v29 }
  0xa0   : > { %5804 = vmatprep.subr.bf16.mxu0 %v7640_v32 }
  0xa1   : > { %397 = vperm.xlu0 %6668, %v307_v30   ;;  %402 = vperm.xlu1 %6669, %v308_v31   ;;  %v985_v30 = vld [vmem:[%s9241_s3 + $0x158] sm:$0xff]  ;;  %v1002_v31 = vld [vmem:[%s9241_s3 + $0x1e0] sm:$0xff] }
  0xa3   : > { %5805 = vmatpush3.bf16.msra.mxu0 %v7644_v33 }
  0xa4   : > { %6014 = vmatprep.subr.bf16.mxu0 %v7543_v3  ;;  %v6703_v3 = vld [vmem:[#allocation7 + $0xa0] ss:$16 sps:$4 sm:$0xff]  }
  0xa5   : > { %487 = vperm.xlu0 %6668, %v325_v34   ;;  %492 = vperm.xlu1 %6669, %v326_v35   ;;  %v986_v34 = vld [vmem:[%s9241_s3 + $0x160] sm:$0xff] }
  0xa6   : > { %814 = vmatmul.mubr.bf16.vlgmr.msra.gmra.mrb[0].mxu0 %v6686_v36  ;;  %v6719_v35 = vld [vmem:[#allocation7 + $0x164] ss:$16 sps:$4 sm:$0xff]   ;;  %v987_v36 = vld [vmem:[%s9241_s3 + $0x168] sm:$0xff] }
  0xa7   : > { %821 = vmatprep.mubr.bf16.mxu0 %v6689_v37  ;;  %6015 = vmatpush3.bf16.msra.mxu0 %v7546_v4  ;;  %v976_v4 = vld [vmem:[%s9241_s3 + $0x110] sm:$0xff] }
  0xa8   : > { %6016 = vmatprep.subr.bf16.mxu0 %v7557_v7  ;;  %v994_v7 = vld [vmem:[%s9241_s3 + $0x1a0] sm:$0xff]  ;;  %v1004_v37 = vld [vmem:[%s9241_s3 + $0x1f0] sm:$0xff] }
  0xa9   : > { %407 = vperm.xlu0 %6668, %v309_v38   ;;  %412 = vperm.xlu1 %6669, %v310_v39   ;;  %v1005_v38 = vld [vmem:[%s9241_s3 + $0x1f8] sm:$0xff]  ;;  %v6721_v39 = vld [vmem:[#allocation7 + $0x160] ss:$16 sps:$4 sm:$0xff]  }
  0xab   : > { %6017 = vmatpush3.bf16.msra.mxu0 %v7560_v8  ;;  %v995_v8 = vld [vmem:[%s9241_s3 + $0x1a8] sm:$0xff] }
  0xac   : > { %6018 = vmatprep.subr.bf16.mxu0 %v7570_v11  ;;  %v6707_v11 = vld [vmem:[#allocation7 + $0xe4] ss:$16 sps:$4 sm:$0xff]  }
  0xad   : > { %497 = vperm.xlu0 %6668, %v327_v40   ;;  %502 = vperm.xlu1 %6669, %v328_v41   ;;  %v6722_v40 = vld [vmem:[#allocation7 + $0x184] ss:$16 sps:$4 sm:$0xff]  }
  0xae   : > { %822 = vmatmul.mubr.bf16.gmra.mrb[4].mxu0 %v6691_v42  ;;  %v988_v41 = vld [vmem:[%s9241_s3 + $0x170] sm:$0xff]  ;;  %v989_v42 = vld [vmem:[%s9241_s3 + $0x178] sm:$0xff] }
  0xaf   : > { %829 = vmatprep.mubr.bf16.mxu0 %v6692_v43  ;;  %6019 = vmatpush3.bf16.msra.mxu0 %v7574_v12  ;;  %v979_v12 = vld [vmem:[%s9241_s3 + $0x128] sm:$0xff]  ;;  %v1583_v43 = vld [vmem:[%s9241_s3 + $0x280] sm:$0xff] }
  0xb0   : > { %6020 = vmatprep.subr.bf16.mxu0 %v7584_v15  ;;  %v6709_v15 = vld [vmem:[#allocation7 + $0xe0] ss:$16 sps:$4 sm:$0xff]  }
  0xb1   : > { %417 = vperm.xlu0 %6668, %v311_v44   ;;  %422 = vperm.xlu1 %6669, %v312_v45   ;;  %v1584_v44 = vld [vmem:[%s9241_s3 + $0x288] sm:$0xff]  ;;  %v6724_v45 = vld [vmem:[#allocation7 + $0x180] ss:$16 sps:$4 sm:$0xff]  }
  0xb3   : > { %6021 = vmatpush3.bf16.msra.mxu0 %v7588_v16  ;;  %v980_v16 = vld [vmem:[%s9241_s3 + $0x130] sm:$0xff] }
  0xb4   : > { %6022 = vmatprep.subr.bf16.mxu0 %v7598_v19  ;;  %v998_v19 = vld [vmem:[%s9241_s3 + $0x1c0] sm:$0xff] }
  0xb5   : > { %507 = vperm.xlu0 %6668, %v329_v46   ;;  %512 = vperm.xlu1 %6669, %v330_v47   ;;  %v6725_v46 = vld [vmem:[#allocation7 + $0x1a4] ss:$16 sps:$4 sm:$0xff]  }
  0xb6   : > { %830 = vmatmul.mubr.bf16.gmra.mrb[8].mxu0 %v6694_v48 }
  0xb7   : > { %837 = vmatprep.mubr.bf16.mxu0 %v6695_v49  ;;  %6023 = vmatpush3.bf16.msra.mxu0 %v7602_v20  ;;  %v999_v20 = vld [vmem:[%s9241_s3 + $0x1c8] sm:$0xff]  ;;  %v1567_v49 = vld [vmem:[%s9241_s3 + $0x200] sm:$0xff] }
  0xb8   : > { %6024 = vmatprep.subr.bf16.mxu0 %v7612_v23  ;;  %v6713_v23 = vld [vmem:[#allocation7 + $0x124] ss:$16 sps:$4 sm:$0xff]  }
  0xb9   : > { %427 = vperm.xlu0 %6668, %v313_v50   ;;  %432 = vperm.xlu1 %6669, %v314_v51   ;;  %v1568_v50 = vld [vmem:[%s9241_s3 + $0x208] sm:$0xff] }
  0xbb   : > { %6025 = vmatpush3.bf16.msra.mxu0 %v7616_v24  ;;  %v983_v24 = vld [vmem:[%s9241_s3 + $0x148] sm:$0xff] }
  0xbc   : > { %6026 = vmatprep.subr.bf16.mxu0 %v7626_v27  ;;  %v6715_v27 = vld [vmem:[#allocation7 + $0x120] ss:$16 sps:$4 sm:$0xff]  }
  0xbd   : > { %517 = vperm.xlu0 %6668, %v331_v52   ;;  %522 = vperm.xlu1 %6669, %v332_v53   ;;  %v1585_v53 = vld [vmem:[%s9241_s3 + $0x290] sm:$0xff] }
  0xbe   : > { %838 = vmatmul.mubr.bf16.gmra.mrb[12].mxu0 %v6697_v54  ;;  %v1586_v54 = vld [vmem:[%s9241_s3 + $0x298] sm:$0xff] }
  0xbf   : > { %845 = vmatprep.mubr.bf16.mxu0 %v6698_v55  ;;  %6027 = vmatpush3.bf16.msra.mxu0 %v7630_v29  ;;  %v6716_v29 = vld [vmem:[#allocation7 + $0x144] ss:$16 sps:$4 sm:$0xff]   ;;  %v6727_v55 = vld [vmem:[#allocation7 + $0x1a0] ss:$16 sps:$4 sm:$0xff]  }
  0xc0   : > { %6028 = vmatprep.subr.bf16.mxu0 %v7640_v32  ;;  %v1003_v32 = vld [vmem:[%s9241_s3 + $0x1e8] sm:$0xff] }
  0xc1   : > { %437 = vperm.xlu0 %6668, %v315_v56   ;;  %442 = vperm.xlu1 %6669, %v316_v57   ;;  %v6728_v56 = vld [vmem:[#allocation7 + $0x1c4] ss:$16 sps:$4 sm:$0xff]  }
  0xc3   : > { %6029 = vmatpush3.bf16.msra.mxu0 %v7644_v33  ;;  %v6718_v33 = vld [vmem:[#allocation7 + $0x140] ss:$16 sps:$4 sm:$0xff]  }
  0xc5   : > { %1136 = vperm.xlu0 %6668, %v990_v58   ;;  %1141 = vperm.xlu1 %6669, %v991_v59   ;;  %v1569_v59 = vld [vmem:[%s9241_s3 + $0x210] sm:$0xff] }
  0xc6   : > { %846 = vmatmul.mubr.bf16.gmra.mrb[16].mxu0 %v6700_v60  ;;  %v1570_v60 = vld [vmem:[%s9241_s3 + $0x218] sm:$0xff] }
  0xc7   : > { %853 = vmatprep.mubr.bf16.mxu0 %v6701_v61 }
  0xc9   : > { %1056 = vperm.xlu0 %6668, %v974_v62   ;;  %1061 = vperm.xlu1 %6669, %v975_v63   ;;  %v1587_v63 = vld [vmem:[%s9241_s3 + $0x2a0] sm:$0xff] }
  0xcd   : > { %1146 = vperm.xlu0 %6668, %v992_v1   ;;  %1151 = vperm.xlu1 %6669, %v993_v2   ;;  %v1588_v1 = vld [vmem:[%s9241_s3 + $0x2a8] sm:$0xff]  ;;  %v6730_v2 = vld [vmem:[#allocation7 + $0x1c0] ss:$16 sps:$4 sm:$0xff]  }
  0xce   : > { %854 = vmatmul.mubr.bf16.gmra.mrb[20].mxu0 %v6703_v3  ;;  %v6731_v3 = vld [vmem:[#allocation7 + $0x1e4] ss:$16 sps:$4 sm:$0xff]  }
  0xcf   : > { %861 = vmatprep.mubr.bf16.mxu0 %v6704_v5 }
  0xd1   : > { %1066 = vperm.xlu0 %6668, %v976_v4   ;;  %1071 = vperm.xlu1 %6669, %v977_v6   ;;  %v1571_v6 = vld [vmem:[%s9241_s3 + $0x220] sm:$0xff] }
  0xd5   : > { %1156 = vperm.xlu0 %6668, %v994_v7   ;;  %1161 = vperm.xlu1 %6669, %v995_v8   ;;  %v1572_v7 = vld [vmem:[%s9241_s3 + $0x228] sm:$0xff] }
  0xd6   : > { %862 = vmatmul.mubr.bf16.gmra.mrb[24].mxu0 %v6706_v9 }
  0xd7   : > { %869 = vmatprep.mubr.bf16.mxu0 %v6707_v11  ;;  %v1590_v11 = vld [vmem:[%s9241_s3 + $0x2b8] sm:$0xff] }
  0xd9   : > { %1076 = vperm.xlu0 %6668, %v978_v10   ;;  %1081 = vperm.xlu1 %6669, %v979_v12   ;;  %v1589_v10 = vld [vmem:[%s9241_s3 + $0x2b0] sm:$0xff] }
  0xda   : > { %v6733_v12 = vld [vmem:[#allocation7 + $0x1e0] ss:$16 sps:$4 sm:$0xff]  }
  0xdd   : > { %1166 = vperm.xlu0 %6668, %v996_v13   ;;  %1171 = vperm.xlu1 %6669, %v997_v14  }
  0xde   : > { %870 = vmatmul.mubr.bf16.gmra.mrb[28].mxu0 %v6709_v15  ;;  %v1573_v15 = vld [vmem:[%s9241_s3 + $0x230] sm:$0xff] }
  0xdf   : > { %877 = vmatprep.mubr.bf16.mxu0 %v6710_v17 }
  0xe1   : > { %1086 = vperm.xlu0 %6668, %v980_v16   ;;  %1091 = vperm.xlu1 %6669, %v981_v18   ;;  %v1574_v16 = vld [vmem:[%s9241_s3 + $0x238] sm:$0xff] }
  0xe5   : > { %1176 = vperm.xlu0 %6668, %v998_v19   ;;  %1181 = vperm.xlu1 %6669, %v999_v20   ;;  %v1591_v19 = vld [vmem:[%s9241_s3 + $0x2c0] sm:$0xff]  ;;  %v1592_v20 = vld [vmem:[%s9241_s3 + $0x2c8] sm:$0xff] }
  0xe6   : > { %878 = vmatmul.mubr.bf16.gmra.mrb[32].mxu0 %v6712_v21 }
  0xe7   : > { %885 = vmatprep.mubr.bf16.mxu0 %v6713_v23  ;;  %v1575_v23 = vld [vmem:[%s9241_s3 + $0x240] sm:$0xff] }
  0xe9   : > { %1096 = vperm.xlu0 %6668, %v982_v22   ;;  %1101 = vperm.xlu1 %6669, %v983_v24   ;;  %v1576_v24 = vld [vmem:[%s9241_s3 + $0x248] sm:$0xff] }
  0xed   : > { %1186 = vperm.xlu0 %6668, %v1000_v25   ;;  %1191 = vperm.xlu1 %6669, %v1001_v26  }
  0xee   : > { %886 = vmatmul.mubr.bf16.gmra.mrb[36].mxu0 %v6715_v27  ;;  %v1593_v27 = vld [vmem:[%s9241_s3 + $0x2d0] sm:$0xff] }
  0xef   : > { %893 = vmatprep.mubr.bf16.mxu0 %v6716_v29 }
  0xf1   : > { %1106 = vperm.xlu0 %6668, %v984_v28   ;;  %1111 = vperm.xlu1 %6669, %v985_v30   ;;  %v1594_v28 = vld [vmem:[%s9241_s3 + $0x2d8] sm:$0xff] }
  0xf5   : > { %1196 = vperm.xlu0 %6668, %v1002_v31   ;;  %1201 = vperm.xlu1 %6669, %v1003_v32   ;;  %v1577_v31 = vld [vmem:[%s9241_s3 + $0x250] sm:$0xff]  ;;  %v1578_v32 = vld [vmem:[%s9241_s3 + $0x258] sm:$0xff] }
  0xf6   : > { %894 = vmatmul.mubr.bf16.gmra.mrb[40].mxu0 %v6718_v33 }
  0xf7   : > { %901 = vmatprep.mubr.bf16.mxu0 %v6719_v35  ;;  %v1595_v35 = vld [vmem:[%s9241_s3 + $0x2e0] sm:$0xff] }
  0xf9   : > { %1116 = vperm.xlu0 %6668, %v986_v34   ;;  %1121 = vperm.xlu1 %6669, %v987_v36   ;;  %v1596_v36 = vld [vmem:[%s9241_s3 + $0x2e8] sm:$0xff] }
  0xfd   : > { %1206 = vperm.xlu0 %6668, %v1004_v37   ;;  %1211 = vperm.xlu1 %6669, %v1005_v38  }
  0xfe   : > { %902 = vmatmul.mubr.bf16.gmra.mrb[44].mxu0 %v6721_v39  ;;  %v1579_v39 = vld [vmem:[%s9241_s3 + $0x260] sm:$0xff] }
  0xff   : > { %909 = vmatprep.mubr.bf16.mxu0 %v6722_v40  ;;  %v1580_v40 = vld [vmem:[%s9241_s3 + $0x268] sm:$0xff] }
 0x101   : > { %1126 = vperm.xlu0 %6668, %v988_v41   ;;  %1131 = vperm.xlu1 %6669, %v989_v42  }
 0x104   : > { %v7814_v47 = vpop.permute.xlu0 %447  ;;  %v7816_v48 = vpop.permute.xlu1 %367 }
 0x105   : > { %2403 = vperm.xlu0 %6668, %v1583_v43   ;;  %2408 = vperm.xlu1 %6669, %v1584_v44   ;;  %v1597_v43 = vld [vmem:[%s9241_s3 + $0x2f0] sm:$0xff]  ;;  %v1598_v44 = vld [vmem:[%s9241_s3 + $0x2f8] sm:$0xff] }
 0x106   : > { %910 = vmatmul.mubr.bf16.gmra.mrb[48].mxu0 %v6724_v45 }
 0x107   : > { %917 = vmatprep.mubr.bf16.mxu0 %v6725_v46 }
 0x108   : > { %v7824_v51 = vpop.permute.xlu0 %452  ;;  %v7826_v52 = vpop.permute.xlu1 %372 }
 0x109   : > { %2323 = vperm.xlu0 %6668, %v1567_v49   ;;  %2328 = vperm.xlu1 %6669, %v1568_v50   ;;  %v1581_v49 = vld [vmem:[%s9241_s3 + $0x270] sm:$0xff]  ;;  %v1582_v50 = vld [vmem:[%s9241_s3 + $0x278] sm:$0xff] }
 0x10c   : > { %v7834_v57 = vpop.permute.xlu0 %457  ;;  %v7836_v58 = vpop.permute.xlu1 %462 }
 0x10d   : > { %2413 = vperm.xlu0 %6668, %v1585_v53   ;;  %2418 = vperm.xlu1 %6669, %v1586_v54  }
 0x10e   : > { %918 = vmatmul.mubr.bf16.gmra.mrb[52].mxu0 %v6727_v55  ;;  %v2545_v55 = vld [vmem:[%s9241_s3 + $0x300] sm:$0xff] }
 0x10f   : > { %925 = vmatprep.mubr.bf16.mxu0 %v6728_v56  ;;  %v2546_v56 = vld [vmem:[%s9241_s3 + $0x308] sm:$0xff] }
 0x110   : > { %v7844_v61 = vpop.permute.xlu0 %377  ;;  %v7846_v62 = vpop.permute.xlu1 %382 }
 0x111   : > { %2333 = vperm.xlu0 %6668, %v1569_v59   ;;  %2338 = vperm.xlu1 %6669, %v1570_v60  }
 0x114   : > { %v7854_v4 = vpop.permute.xlu0 %467  ;;  %v7856_v5 = vpop.permute.xlu1 %472 }
 0x115   : > { %2423 = vperm.xlu0 %6668, %v1587_v63   ;;  %2428 = vperm.xlu1 %6669, %v1588_v1   ;;  %v2547_v63 = vld [vmem:[%s9241_s3 + $0x310] sm:$0xff]  ;;  %v2548_v1 = vld [vmem:[%s9241_s3 + $0x318] sm:$0xff] }
 0x116   : > { %926 = vmatmul.mubr.bf16.gmra.mrb[56].mxu0 %v6730_v2 }
 0x117   : > { %933 = vmatprep.mubr.bf16.mxu0 %v6731_v3 }
 0x118   : > { %v7864_v8 = vpop.permute.xlu0 %387  ;;  %v7866_v9 = vpop.permute.xlu1 %392 }
 0x119   : > { %2343 = vperm.xlu0 %6668, %v1571_v6   ;;  %2348 = vperm.xlu1 %6669, %v1572_v7   ;;  %v2549_v6 = vld [vmem:[%s9241_s3 + $0x320] sm:$0xff]  ;;  %v2550_v7 = vld [vmem:[%s9241_s3 + $0x328] sm:$0xff] }
 0x11c   : > { %v7874_v13 = vpop.permute.xlu0 %477  ;;  %v7876_v14 = vpop.permute.xlu1 %482 }
 0x11d   : > { %2433 = vperm.xlu0 %6668, %v1589_v10   ;;  %2438 = vperm.xlu1 %6669, %v1590_v11  }
 0x11e   : > { %934 = vmatmul.mubr.bf16.gmra.mrb[60].mxu0 %v6733_v12  ;;  %v2551_v12 = vld [vmem:[%s9241_s3 + $0x330] sm:$0xff] }
 0x120   : > { %v7884_v17 = vpop.permute.xlu0 %397  ;;  %v7886_v18 = vpop.permute.xlu1 %402 }
 0x121   : > { %2353 = vperm.xlu0 %6668, %v1573_v15   ;;  %2358 = vperm.xlu1 %6669, %v1574_v16   ;;  %v2552_v15 = vld [vmem:[%s9241_s3 + $0x338] sm:$0xff] }
 0x124   : > { %v7894_v21 = vpop.permute.xlu0 %487  ;;  %v7896_v22 = vpop.permute.xlu1 %492 }
 0x125   : > { %2443 = vperm.xlu0 %6668, %v1591_v19   ;;  %2448 = vperm.xlu1 %6669, %v1592_v20   ;;  %v2553_v20 = vld [vmem:[%s9241_s3 + $0x340] sm:$0xff] }
 0x128   : > { %v7904_v25 = vpop.permute.xlu0 %407  ;;  %v7906_v26 = vpop.permute.xlu1 %412 }
 0x129   : > { %2363 = vperm.xlu0 %6668, %v1575_v23   ;;  %2368 = vperm.xlu1 %6669, %v1576_v24   ;;  %v2554_v23 = vld [vmem:[%s9241_s3 + $0x348] sm:$0xff] }
 0x12c   : > { %v7914_v29 = vpop.permute.xlu0 %497  ;;  %v7916_v30 = vpop.permute.xlu1 %502 }
 0x12d   : > { %2453 = vperm.xlu0 %6668, %v1593_v27   ;;  %2458 = vperm.xlu1 %6669, %v1594_v28   ;;  %v2555_v28 = vld [vmem:[%s9241_s3 + $0x350] sm:$0xff] }
 0x130   : > { %v7924_v33 = vpop.permute.xlu0 %417  ;;  %v7926_v34 = vpop.permute.xlu1 %422 }
 0x131   : > { %2373 = vperm.xlu0 %6668, %v1577_v31   ;;  %2378 = vperm.xlu1 %6669, %v1578_v32   ;;  %v2556_v31 = vld [vmem:[%s9241_s3 + $0x358] sm:$0xff] }
 0x134   : > { %v7934_v37 = vpop.permute.xlu0 %507  ;;  %v7936_v38 = vpop.permute.xlu1 %512 }
 0x135   : > { %2463 = vperm.xlu0 %6668, %v1595_v35   ;;  %2468 = vperm.xlu1 %6669, %v1596_v36   ;;  %v2557_v36 = vld [vmem:[%s9241_s3 + $0x360] sm:$0xff] }
 0x138   : > { %v7944_v41 = vpop.permute.xlu0 %427  ;;  %v7946_v42 = vpop.permute.xlu1 %432 }
 0x139   : > { %2383 = vperm.xlu0 %6668, %v1579_v39   ;;  %2388 = vperm.xlu1 %6669, %v1580_v40   ;;  %v2558_v39 = vld [vmem:[%s9241_s3 + $0x368] sm:$0xff] }
 0x13c   : > { %v7954_v45 = vpop.permute.xlu0 %517  ;;  %v7956_v46 = vpop.permute.xlu1 %522 }
 0x13d   : > { %2473 = vperm.xlu0 %6668, %v1597_v43   ;;  %2478 = vperm.xlu1 %6669, %v1598_v44   ;;  %v2559_v44 = vld [vmem:[%s9241_s3 + $0x370] sm:$0xff] }
 0x140   : > { %v7964_v53 = vpop.permute.xlu0 %437  ;;  %v7966_v54 = vpop.permute.xlu1 %442 }
 0x141   : > { %2393 = vperm.xlu0 %6668, %v1581_v49   ;;  %2398 = vperm.xlu1 %6669, %v1582_v50   ;;  %v2560_v49 = vld [vmem:[%s9241_s3 + $0x378] sm:$0xff] }
 0x144   : > { %v7974_v59 = vpop.permute.xlu0 %1136  ;;  %v7976_v60 = vpop.permute.xlu1 %1141 }
 0x145   : > { %2627 = vperm.xlu0 %6668, %v2545_v55   ;;  %2632 = vperm.xlu1 %6669, %v2546_v56   ;;  %v2561_v56 = vld [vmem:[%s9241_s3 + $0x380] sm:$0xff] }
 0x148   : > { %v7984_v2 = vpop.permute.xlu0 %1056  ;;  %v7986_v3 = vpop.permute.xlu1 %1061 }
 0x149   : > { %2637 = vperm.xlu0 %6668, %v2547_v63   ;;  %2642 = vperm.xlu1 %6669, %v2548_v1   ;;  %v2562_v63 = vld [vmem:[%s9241_s3 + $0x388] sm:$0xff] }
 0x14c   : > { %v7994_v10 = vpop.permute.xlu0 %1146  ;;  %v7996_v11 = vpop.permute.xlu1 %1151 }
 0x14d   : > { %9269 = vst [vmem:[#allocation14_spill] sm:$0xff] %v7996_v11  ;;  %2647 = vperm.xlu0 %6668, %v2549_v6   ;;  %2652 = vperm.xlu1 %6669, %v2550_v7   ;;  %v2563_v7 = vld [vmem:[%s9241_s3 + $0x390] sm:$0xff] }
 0x150   : > { %v8004_v16 = vpop.permute.xlu0 %1066  ;;  %v8006_v19 = vpop.permute.xlu1 %1071 }
 0x151   : > { %2657 = vperm.xlu0 %6668, %v2551_v12   ;;  %2662 = vperm.xlu1 %6669, %v2552_v15   ;;  %v2564_v12 = vld [vmem:[%s9241_s3 + $0x398] sm:$0xff] }
 0x154   : > { %v8014_v24 = vpop.permute.xlu0 %1156  ;;  %v8016_v27 = vpop.permute.xlu1 %1161 }
 0x155   : > { %9270 = vst [vmem:[#allocation15_spill] sm:$0xff] %v8014_v24  ;;  %9271 = vst [vmem:[#allocation16_spill] sm:$0xff] %v8016_v27  ;;  %2667 = vperm.xlu0 %6668, %v2553_v20   ;;  %2672 = vperm.xlu1 %6669, %v2554_v23   ;;  %v2565_v23 = vld [vmem:[%s9241_s3 + $0x3a0] sm:$0xff] }
 0x158   : > { %v8024_v32 = vpop.permute.xlu0 %1076  ;;  %v8026_v35 = vpop.permute.xlu1 %1081 }
 0x159   : > { %2677 = vperm.xlu0 %6668, %v2555_v28   ;;  %2682 = vperm.xlu1 %6669, %v2556_v31   ;;  %v2566_v28 = vld [vmem:[%s9241_s3 + $0x3a8] sm:$0xff] }
 0x15c   : > { %v8034_v40 = vpop.permute.xlu0 %1166  ;;  %v8036_v43 = vpop.permute.xlu1 %1171 }
 0x15d   : > { %9272 = vst [vmem:[#allocation17_spill] sm:$0xff] %v8034_v40  ;;  %9273 = vst [vmem:[#allocation18_spill] sm:$0xff] %v8036_v43  ;;  %2687 = vperm.xlu0 %6668, %v2557_v36   ;;  %2692 = vperm.xlu1 %6669, %v2558_v39   ;;  %v2567_v39 = vld [vmem:[%s9241_s3 + $0x3b0] sm:$0xff]  ;;  %v3235_v40 = vld [vmem:[%s9241_s3 + $0x488] sm:$0xff] }
 0x160   : > { %v8044_v50 = vpop.permute.xlu0 %1086  ;;  %v8046_v55 = vpop.permute.xlu1 %1091 }
 0x161   : > { %2697 = vperm.xlu0 %6668, %v2559_v44   ;;  %2702 = vperm.xlu1 %6669, %v2560_v49   ;;  %v2568_v44 = vld [vmem:[%s9241_s3 + $0x3b8] sm:$0xff] }
 0x164   : > { %v8054_v1 = vpop.permute.xlu0 %1176  ;;  %v8056_v6 = vpop.permute.xlu1 %1181 }
 0x165   : > { %9274 = vst [vmem:[#allocation19_spill] sm:$0xff] %v8054_v1  ;;  %9275 = vst [vmem:[#allocation20_spill] sm:$0xff] %v8056_v6  ;;  %2707 = vperm.xlu0 %6668, %v2561_v56   ;;  %2712 = vperm.xlu1 %6669, %v2562_v63   ;;  %v2569_v56 = vld [vmem:[%s9241_s3 + $0x3c0] sm:$0xff]  ;;  %v2570_v63 = vld [vmem:[%s9241_s3 + $0x3c8] sm:$0xff] }
 0x168   : > { %v8064_v15 = vpop.permute.xlu0 %1096  ;;  %v8066_v20 = vpop.permute.xlu1 %1101 }
 0x169   : > { %2717 = vperm.xlu0 %6668, %v2563_v7   ;;  %2722 = vperm.xlu1 %6669, %v2564_v12   ;;  %v2571_v12 = vld [vmem:[%s9241_s3 + $0x3d0] sm:$0xff] }
 0x16c   : > { %v8074_v31 = vpop.permute.xlu0 %1186  ;;  %v8076_v36 = vpop.permute.xlu1 %1191 }
 0x16d   : > { %9276 = vst [vmem:[#allocation21_spill] sm:$0xff] %v8074_v31  ;;  %9277 = vst [vmem:[#allocation22_spill] sm:$0xff] %v8076_v36  ;;  %2727 = vperm.xlu0 %6668, %v2565_v23   ;;  %2732 = vperm.xlu1 %6669, %v2566_v28   ;;  %v2572_v23 = vld [vmem:[%s9241_s3 + $0x3d8] sm:$0xff] }
 0x170   : > { %v8084_v49 = vpop.permute.xlu0 %1106  ;;  %v8092_v7 = vpop.permute.xlu1 %1111 }
 0x171   : > { %2737 = vperm.xlu0 %6668, %v2567_v39   ;;  %2742 = vperm.xlu1 %6669, %v2568_v44  }
 0x174   : > { %v8100_v28 = vpop.permute.xlu0 %1196  ;;  %v8102_v39 = vpop.permute.xlu1 %1201 }
 0x175   : > { %2747 = vperm.xlu0 %6668, %v2569_v56   ;;  %2752 = vperm.xlu1 %6669, %v2570_v63   ;;  %9278 = vst [vmem:[#allocation23_spill] sm:$0xff] %v8100_v28  ;;  %9279 = vst [vmem:[#allocation24_spill] sm:$0xff] %v8102_v39  ;;  %v2573_v56 = vld [vmem:[%s9241_s3 + $0x3e0] sm:$0xff]  ;;  %v2574_v63 = vld [vmem:[%s9241_s3 + $0x3e8] sm:$0xff] }
 0x178   : > { %v8110_v6 = vpop.permute.xlu0 %1116  ;;  %v8118_v39 = vpop.permute.xlu1 %1121 }
 0x179   : > { %2757 = vperm.xlu0 %6668, %v2571_v12   ;;  %2762 = vperm.xlu1 %6669, %v2572_v23   ;;  %v5806_v44 = vpop.f32.mrb[0].mxu0  ;;  %v2575_v12 = vld [vmem:[%s9241_s3 + $0x3f0] sm:$0xff]  ;;  %v2576_v23 = vld [vmem:[%s9241_s3 + $0x3f8] sm:$0xff] }
 0x17a   : > { %v5807_v0 = vpop.f32.mrb[1].mxu0 }
 0x17b   : > { %v5808_v36 = vadd.f32 %v5807_v0, %v5806_v44  ;;  %v5809_v31 = vpop.f32.mrb[2].mxu0  ;;  %v6736_v0 = vld [vmem:[#allocation7 + $0x204] ss:$16 sps:$4 sm:$0xff]  }
 0x17c   : > { %v5810_v28 = vpop.f32.mrb[3].mxu0  ;;  %1406 = vmatprep.mubr.bf16.mxu1 %v6736_v0 }
 0x17d   : > { %2767 = vperm.xlu0 %6668, %v2573_v56   ;;  %2772 = vperm.xlu1 %6669, %v2574_v63   ;;  %v5811_v1 = vadd.f32 %v5810_v28, %v5809_v31  ;;  %v816_v43 = vadd.f32 %v5808_v36, %v7816_v48  ;;  %v3234_v63 = vld [vmem:[%s9241_s3 + $0x480] sm:$0xff]  ;;  %v8128_v28 = vpop.permute.xlu0 %1206  ;;  %v8130_v36 = vpop.permute.xlu1 %1211 }
 0x17e   : > { %9280 = vst [vmem:[#allocation25_spill] sm:$0xff] %v8128_v28  ;;  %9281 = vst [vmem:[#allocation26_spill] sm:$0xff] %v8130_v36 }
 0x17f   : > { %v819_v44 = vadd.f32 %v5811_v1, %v7826_v52  ;;  %v942_v24 = vmax.f32 %v816_v43, 0.0  ;;  %v3219_v43 = vld [vmem:[%s9241_s3 + $0x408] sm:$0xff] }
 0x181   : > { %2777 = vperm.xlu0 %6668, %v2575_v12   ;;  %2782 = vperm.xlu1 %6669, %v2576_v23   ;;  %v5812_v56 = vpop.f32.mrb[4].mxu0  ;;  %v943_v31 = vmax.f32 %v819_v44, 0.0  ;;  %v3218_v23 = vld [vmem:[%s9241_s3 + $0x400] sm:$0xff] }
 0x182   : > { %v5813_v27 = vpop.f32.mrb[5].mxu0 }
 0x183   : > { %v5814_v48 = vadd.f32 %v5813_v27, %v5812_v56  ;;  %v5815_v12 = vpop.f32.mrb[6].mxu0  ;;  %v8132_v52 = vpack.c.bf16 %v943_v31, %v942_v24  ;;  %v8142_v56 = vpop.permute.xlu0 %1126 }
 0x184   : > { %v5816_v1 = vpop.f32.mrb[7].mxu0  ;;  %v8150_v31 = vpop.permute.xlu1 %1131 }
 0x185   : > { %3364 = vperm.xlu0 %6668, %v3234_v63   ;;  %3369 = vperm.xlu1 %6669, %v3235_v40   ;;  %v824_v0 = vadd.f32 %v5814_v48, %v7844_v61  ;;  %v5817_v44 = vadd.f32 %v5816_v1, %v5815_v12  ;;  %v3236_v40 = vld [vmem:[%s9241_s3 + $0x490] sm:$0xff]  ;;  %v3237_v63 = vld [vmem:[%s9241_s3 + $0x498] sm:$0xff] }
 0x187   : > { %v827_v27 = vadd.f32 %v5817_v44, %v7846_v62  ;;  %v944_v61 = vmax.f32 %v824_v0, 0.0  ;;  %v3221_v44 = vld [vmem:[%s9241_s3 + $0x418] sm:$0xff]  ;;  %v8161_v0 = vpop.permute.xlu0 %2403 }
 0x188   : > { %9282 = vst [vmem:[#allocation27_spill] sm:$0xff] %v8161_v0 }
 0x189   : > { %3284 = vperm.xlu0 %6668, %v3218_v23   ;;  %3289 = vperm.xlu1 %6669, %v3219_v43   ;;  %v5818_v24 = vpop.f32.mrb[8].mxu0  ;;  %v945_v48 = vmax.f32 %v827_v27, 0.0  ;;  %v3220_v43 = vld [vmem:[%s9241_s3 + $0x410] sm:$0xff] }
 0x18a   : > { %v5819_v36 = vpop.f32.mrb[9].mxu0 }
 0x18b   : > { %v5820_v12 = vadd.f32 %v5819_v36, %v5818_v24  ;;  %v5821_v62 = vpop.f32.mrb[10].mxu0  ;;  %v8152_v1 = vpack.c.bf16 %v945_v48, %v944_v61  ;;  %v8163_v36 = vpop.permute.xlu1 %2408 }
 0x18c   : > { %v5822_v23 = vpop.f32.mrb[11].mxu0  ;;  %9283 = vst [vmem:[#allocation28_spill] sm:$0xff] %v8163_v36 }
 0x18d   : > { %3374 = vperm.xlu0 %6668, %v3236_v40   ;;  %3379 = vperm.xlu1 %6669, %v3237_v63   ;;  %v832_v28 = vadd.f32 %v5820_v12, %v7864_v8  ;;  %v5823_v11 = vadd.f32 %v5822_v23, %v5821_v62  ;;  %v3238_v40 = vld [vmem:[%s9241_s3 + $0x4a0] sm:$0xff]  ;;  %v3239_v63 = vld [vmem:[%s9241_s3 + $0x4a8] sm:$0xff] }
 0x18f   : > { %v835_v27 = vadd.f32 %v5823_v11, %v7866_v9  ;;  %v946_v8 = vmax.f32 %v832_v28, 0.0  ;;  %v8174_v9 = vpop.permute.xlu0 %2323  ;;  %v8182_v36 = vpop.permute.xlu1 %2328 }
 0x190   : > { %9284 = vst [vmem:[#allocation29_spill] sm:$0xff] %v8182_v36 }
 0x191   : > { %3294 = vperm.xlu0 %6668, %v3220_v43   ;;  %3299 = vperm.xlu1 %6669, %v3221_v44   ;;  %v5824_v24 = vpop.f32.mrb[12].mxu0  ;;  %v947_v48 = vmax.f32 %v835_v27, 0.0  ;;  %v3222_v43 = vld [vmem:[%s9241_s3 + $0x420] sm:$0xff]  ;;  %v3223_v44 = vld [vmem:[%s9241_s3 + $0x428] sm:$0xff] }
 0x192   : > { %v5825_v61 = vpop.f32.mrb[13].mxu0 }
 0x193   : > { %v5826_v12 = vadd.f32 %v5825_v61, %v5824_v24  ;;  %v5827_v62 = vpop.f32.mrb[14].mxu0  ;;  %v8172_v23 = vpack.c.bf16 %v947_v48, %v946_v8  ;;  %v3241_v61 = vld [vmem:[%s9241_s3 + $0x4b8] sm:$0xff]  ;;  %v8192_v36 = vpop.permute.xlu0 %2413 }
 0x194   : > { %v5828_v11 = vpop.f32.mrb[15].mxu0  ;;  %9285 = vst [vmem:[#allocation30_spill] sm:$0xff] %v8192_v36 }
 0x195   : > { %3384 = vperm.xlu0 %6668, %v3238_v40   ;;  %3389 = vperm.xlu1 %6669, %v3239_v63   ;;  %v840_v28 = vadd.f32 %v5826_v12, %v7884_v17  ;;  %v5829_v27 = vadd.f32 %v5828_v11, %v5827_v62  ;;  %v3240_v63 = vld [vmem:[%s9241_s3 + $0x4b0] sm:$0xff]  ;;  %v8194_v12 = vpop.permute.xlu1 %2418 }
 0x196   : > { %9286 = vst [vmem:[#allocation31_spill] sm:$0xff] %v8194_v12 }
 0x197   : > { %v843_v24 = vadd.f32 %v5829_v27, %v7886_v18  ;;  %v948_v48 = vmax.f32 %v840_v28, 0.0 }
 0x199   : > { %3304 = vperm.xlu0 %6668, %v3222_v43   ;;  %3309 = vperm.xlu1 %6669, %v3223_v44   ;;  %v5830_v40 = vpop.f32.mrb[16].mxu0  ;;  %v949_v0 = vmax.f32 %v843_v24, 0.0  ;;  %v3224_v43 = vld [vmem:[%s9241_s3 + $0x430] sm:$0xff]  ;;  %v3225_v44 = vld [vmem:[%s9241_s3 + $0x438] sm:$0xff] }
 0x19a   : > { %v5831_v8 = vpop.f32.mrb[17].mxu0 }
 0x19b   : > { %v5832_v17 = vadd.f32 %v5831_v8, %v5830_v40  ;;  %v5833_v18 = vpop.f32.mrb[18].mxu0  ;;  %v8196_v62 = vpack.c.bf16 %v949_v0, %v948_v48  ;;  %v8206_v40 = vpop.permute.xlu0 %2333 }
 0x19c   : > { %v5834_v11 = vpop.f32.mrb[19].mxu0  ;;  %v8214_v8 = vpop.permute.xlu1 %2338 }
 0x19d   : > { %3394 = vperm.xlu0 %6668, %v3240_v63   ;;  %3399 = vperm.xlu1 %6669, %v3241_v61   ;;  %v848_v28 = vadd.f32 %v5832_v17, %v7904_v25  ;;  %v5835_v27 = vadd.f32 %v5834_v11, %v5833_v18  ;;  %v3242_v63 = vld [vmem:[%s9241_s3 + $0x4c0] sm:$0xff]  ;;  %v3243_v61 = vld [vmem:[%s9241_s3 + $0x4c8] sm:$0xff] }
 0x19f   : > { %v851_v24 = vadd.f32 %v5835_v27, %v7906_v26  ;;  %v950_v25 = vmax.f32 %v848_v28, 0.0  ;;  %v3227_v27 = vld [vmem:[%s9241_s3 + $0x448] sm:$0xff]  ;;  %v8225_v28 = vpop.permute.xlu0 %2423 }
 0x1a0   : > { %9287 = vst [vmem:[#allocation32_spill] sm:$0xff] %v8225_v28 }
 0x1a1   : > { %3314 = vperm.xlu0 %6668, %v3224_v43   ;;  %3319 = vperm.xlu1 %6669, %v3225_v44   ;;  %v5836_v0 = vpop.f32.mrb[20].mxu0  ;;  %v951_v17 = vmax.f32 %v851_v24, 0.0  ;;  %v3226_v44 = vld [vmem:[%s9241_s3 + $0x440] sm:$0xff]  ;;  %v8227_v24 = vpop.permute.xlu1 %2428 }
 0x1a2   : > { %v5837_v48 = vpop.f32.mrb[21].mxu0  ;;  %9288 = vst [vmem:[#allocation33_spill] sm:$0xff] %v8227_v24 }
 0x1a3   : > { %v5838_v18 = vadd.f32 %v5837_v48, %v5836_v0  ;;  %v5839_v26 = vpop.f32.mrb[22].mxu0  ;;  %v8216_v11 = vpack.c.bf16 %v951_v17, %v950_v25  ;;  %v3245_v48 = vld [vmem:[%s9241_s3 + $0x4d8] sm:$0xff] }
 0x1a4   : > { %v5840_v43 = vpop.f32.mrb[23].mxu0 }
 0x1a5   : > { %3404 = vperm.xlu0 %6668, %v3242_v63   ;;  %3409 = vperm.xlu1 %6669, %v3243_v61   ;;  %v856_v12 = vadd.f32 %v5838_v18, %v7924_v33  ;;  %v5841_v36 = vadd.f32 %v5840_v43, %v5839_v26  ;;  %v3244_v61 = vld [vmem:[%s9241_s3 + $0x4d0] sm:$0xff]  ;;  %v8246_v24 = vpop.permute.xlu1 %2348 }
 0x1a6   : > { %9289 = vst [vmem:[#allocation34_spill] sm:$0xff] %v8246_v24 }
 0x1a7   : > { %v859_v0 = vadd.f32 %v5841_v36, %v7926_v34  ;;  %v952_v33 = vmax.f32 %v856_v12, 0.0  ;;  %v8238_v34 = vpop.permute.xlu0 %2343 }
 0x1a9   : > { %3324 = vperm.xlu0 %6668, %v3226_v44   ;;  %3329 = vperm.xlu1 %6669, %v3227_v27   ;;  %v5842_v63 = vpop.f32.mrb[24].mxu0  ;;  %v953_v17 = vmax.f32 %v859_v0, 0.0  ;;  %v3228_v44 = vld [vmem:[%s9241_s3 + $0x450] sm:$0xff]  ;;  %v3229_v27 = vld [vmem:[%s9241_s3 + $0x458] sm:$0xff] }
 0x1aa   : > { %v5843_v25 = vpop.f32.mrb[25].mxu0 }
 0x1ab   : > { %v5844_v18 = vadd.f32 %v5843_v25, %v5842_v63  ;;  %v5845_v26 = vpop.f32.mrb[26].mxu0  ;;  %v8236_v43 = vpack.c.bf16 %v953_v17, %v952_v33  ;;  %v3247_v25 = vld [vmem:[%s9241_s3 + $0x4e8] sm:$0xff]  ;;  %v8256_v24 = vpop.permute.xlu0 %2433 }
 0x1ac   : > { %v5846_v36 = vpop.f32.mrb[27].mxu0  ;;  %9290 = vst [vmem:[#allocation35_spill] sm:$0xff] %v8256_v24 }
 0x1ad   : > { %3414 = vperm.xlu0 %6668, %v3244_v61   ;;  %3419 = vperm.xlu1 %6669, %v3245_v48   ;;  %v864_v12 = vadd.f32 %v5844_v18, %v7944_v41  ;;  %v5847_v0 = vadd.f32 %v5846_v36, %v5845_v26  ;;  %v3246_v48 = vld [vmem:[%s9241_s3 + $0x4e0] sm:$0xff]  ;;  %v8258_v18 = vpop.permute.xlu1 %2438 }
 0x1ae   : > { %9291 = vst [vmem:[#allocation36_spill] sm:$0xff] %v8258_v18 }
 0x1af   : > { %v867_v63 = vadd.f32 %v5847_v0, %v7946_v42  ;;  %v954_v17 = vmax.f32 %v864_v12, 0.0 }
 0x1b1   : > { %3334 = vperm.xlu0 %6668, %v3228_v44   ;;  %3339 = vperm.xlu1 %6669, %v3229_v27   ;;  %v5848_v61 = vpop.f32.mrb[28].mxu0  ;;  %v955_v28 = vmax.f32 %v867_v63, 0.0  ;;  %v3230_v44 = vld [vmem:[%s9241_s3 + $0x460] sm:$0xff]  ;;  %v3231_v27 = vld [vmem:[%s9241_s3 + $0x468] sm:$0xff] }
 0x1b2   : > { %v5849_v33 = vpop.f32.mrb[29].mxu0 }
 0x1b3   : > { %v5850_v41 = vadd.f32 %v5849_v33, %v5848_v61  ;;  %v5851_v42 = vpop.f32.mrb[30].mxu0  ;;  %v8260_v26 = vpack.c.bf16 %v955_v28, %v954_v17  ;;  %v8270_v61 = vpop.permute.xlu0 %2353 }
 0x1b4   : > { %v5852_v36 = vpop.f32.mrb[31].mxu0  ;;  %v8278_v33 = vpop.permute.xlu1 %2358 }
 0x1b5   : > { %3424 = vperm.xlu0 %6668, %v3246_v48   ;;  %3429 = vperm.xlu1 %6669, %v3247_v25   ;;  %v872_v12 = vadd.f32 %v5850_v41, %v7964_v53  ;;  %v5853_v0 = vadd.f32 %v5852_v36, %v5851_v42  ;;  %v3248_v48 = vld [vmem:[%s9241_s3 + $0x4f0] sm:$0xff]  ;;  %v3249_v25 = vld [vmem:[%s9241_s3 + $0x4f8] sm:$0xff] }
 0x1b7   : > { %v875_v63 = vadd.f32 %v5853_v0, %v7966_v54  ;;  %v956_v53 = vmax.f32 %v872_v12, 0.0  ;;  %v3233_v0 = vld [vmem:[%s9241_s3 + $0x478] sm:$0xff]  ;;  %v8289_v12 = vpop.permute.xlu0 %2443 }
 0x1b9   : > { %3344 = vperm.xlu0 %6668, %v3230_v44   ;;  %3349 = vperm.xlu1 %6669, %v3231_v27   ;;  %v5854_v28 = vpop.f32.mrb[32].mxu0  ;;  %v957_v41 = vmax.f32 %v875_v63, 0.0  ;;  %v3232_v27 = vld [vmem:[%s9241_s3 + $0x470] sm:$0xff]  ;;  %v8291_v63 = vpop.permute.xlu1 %2448 }
 0x1ba   : > { %v5855_v17 = vpop.f32.mrb[33].mxu0  ;;  %9292 = vst [vmem:[#allocation37_spill] sm:$0xff] %v8291_v63 }
 0x1bb   : > { %v5856_v42 = vadd.f32 %v5855_v17, %v5854_v28  ;;  %v5857_v54 = vpop.f32.mrb[34].mxu0  ;;  %v8280_v36 = vpack.c.bf16 %v957_v41, %v956_v53  ;;  %v3267_v17 = vld [vmem:[%s9241_s3 + $0x588] sm:$0xff] }
 0x1bc   : > { %v5858_v44 = vpop.f32.mrb[35].mxu0 }
 0x1bd   : > { %3434 = vperm.xlu0 %6668, %v3248_v48   ;;  %3439 = vperm.xlu1 %6669, %v3249_v25   ;;  %v5859_v18 = vadd.f32 %v5858_v44, %v5857_v54  ;;  %v880_v24 = vadd.f32 %v5856_v42, %v7814_v47  ;;  %v3266_v25 = vld [vmem:[%s9241_s3 + $0x580] sm:$0xff]  ;;  %v8308_v63 = vpop.permute.xlu1 %2368 }
 0x1bf   : > { %v883_v28 = vadd.f32 %v5859_v18, %v7824_v51  ;;  %v958_v41 = vmax.f32 %v880_v24, 0.0  ;;  %v3250_v18 = vld [vmem:[%s9241_s3 + $0x500] sm:$0xff] }
 0x1c1   : > { %3354 = vperm.xlu0 %6668, %v3232_v27   ;;  %3359 = vperm.xlu1 %6669, %v3233_v0   ;;  %v5860_v48 = vpop.f32.mrb[36].mxu0  ;;  %v959_v47 = vmax.f32 %v883_v28, 0.0  ;;  %v8300_v27 = vpop.permute.xlu0 %2363  ;;  %v3251_v0 = vld [vmem:[%s9241_s3 + $0x508] sm:$0xff] }
 0x1c2   : > { %v5861_v53 = vpop.f32.mrb[37].mxu0 }
 0x1c3   : > { %v5862_v42 = vadd.f32 %v5861_v53, %v5860_v48  ;;  %v5863_v54 = vpop.f32.mrb[38].mxu0  ;;  %v1014_v44 = vpack.c.bf16 %v959_v47, %v958_v41  ;;  %v3269_v53 = vld [vmem:[%s9241_s3 + $0x598] sm:$0xff] }
 0x1c4   : > { %v5864_v51 = vpop.f32.mrb[39].mxu0 }
 0x1c5   : > { %3524 = vperm.xlu0 %6668, %v3266_v25   ;;  %3529 = vperm.xlu1 %6669, %v3267_v17   ;;  %v888_v24 = vadd.f32 %v5862_v42, %v7834_v57  ;;  %v5865_v28 = vadd.f32 %v5864_v51, %v5863_v54  ;;  %v3268_v17 = vld [vmem:[%s9241_s3 + $0x590] sm:$0xff]  ;;  %v8319_v42 = vpop.permute.xlu0 %2453 }
 0x1c6   : > { %5902 = vmatprep.subr.bf16.mxu1 %v1014_v44 }
 0x1c7   : > { %5903 = vmatpush3.bf16.msra.mxu1 %v8132_v52  ;;  %v891_v48 = vadd.f32 %v5865_v28, %v7836_v58  ;;  %v960_v47 = vmax.f32 %v888_v24, 0.0  ;;  %v8321_v52 = vpop.permute.xlu1 %2458 }
 0x1c9   : > { %3444 = vperm.xlu0 %6668, %v3250_v18   ;;  %3449 = vperm.xlu1 %6669, %v3251_v0   ;;  %v5866_v25 = vpop.f32.mrb[40].mxu0  ;;  %v961_v57 = vmax.f32 %v891_v48, 0.0  ;;  %v3252_v18 = vld [vmem:[%s9241_s3 + $0x510] sm:$0xff]  ;;  %v3253_v0 = vld [vmem:[%s9241_s3 + $0x518] sm:$0xff] }
 0x1ca   : > { %v5867_v41 = vpop.f32.mrb[41].mxu0 }
 0x1cb   : > { %v5868_v54 = vadd.f32 %v5867_v41, %v5866_v25  ;;  %v5869_v58 = vpop.f32.mrb[42].mxu0  ;;  %v1015_v44 = vpack.c.bf16 %v961_v57, %v960_v47  ;;  %v8332_v25 = vpop.permute.xlu0 %2373  ;;  %v3271_v41 = vld [vmem:[%s9241_s3 + $0x5a8] sm:$0xff] }
 0x1cc   : > { %v5870_v51 = vpop.f32.mrb[43].mxu0 }
 0x1cd   : > { %3534 = vperm.xlu0 %6668, %v3268_v17   ;;  %3539 = vperm.xlu1 %6669, %v3269_v53   ;;  %v896_v24 = vadd.f32 %v5868_v54, %v7854_v4  ;;  %v5871_v28 = vadd.f32 %v5870_v51, %v5869_v58  ;;  %v3270_v53 = vld [vmem:[%s9241_s3 + $0x5a0] sm:$0xff]  ;;  %v8340_v4 = vpop.permute.xlu1 %2378 }
 0x1ce   : > { %5904 = vmatprep.subr.bf16.mxu1 %v1015_v44  ;;  %v3254_v51 = vld [vmem:[%s9241_s3 + $0x520] sm:$0xff] }
 0x1cf   : > { %5905 = vmatpush3.bf16.msra.mxu1 %v8152_v1  ;;  %v899_v48 = vadd.f32 %v5871_v28, %v7856_v5  ;;  %v962_v57 = vmax.f32 %v896_v24, 0.0  ;;  %v8349_v24 = vpop.permute.xlu0 %2463 }
 0x1d0   : > { %9293 = vst [vmem:[#allocation38_spill] sm:$0xff] %v8349_v24 }
 0x1d1   : > { %3454 = vperm.xlu0 %6668, %v3252_v18   ;;  %3459 = vperm.xlu1 %6669, %v3253_v0   ;;  %v5872_v17 = vpop.f32.mrb[44].mxu0  ;;  %v963_v1 = vmax.f32 %v899_v48, 0.0  ;;  %v3255_v18 = vld [vmem:[%s9241_s3 + $0x528] sm:$0xff]  ;;  %v8352_v48 = vpop.permute.xlu1 %2468 }
 0x1d2   : > { %v5873_v47 = vpop.f32.mrb[45].mxu0  ;;  %9294 = vst [vmem:[#allocation39_spill] sm:$0xff] %v8352_v48 }
 0x1d3   : > { %v5874_v54 = vadd.f32 %v5873_v47, %v5872_v17  ;;  %v5875_v5 = vpop.f32.mrb[46].mxu0  ;;  %v1016_v58 = vpack.c.bf16 %v963_v1, %v962_v57 }
 0x1d4   : > { %v5876_v44 = vpop.f32.mrb[47].mxu0 }
 0x1d5   : > { %3544 = vperm.xlu0 %6668, %v3270_v53   ;;  %3549 = vperm.xlu1 %6669, %v3271_v41   ;;  %v904_v0 = vadd.f32 %v5874_v54, %v7874_v13  ;;  %v5877_v28 = vadd.f32 %v5876_v44, %v5875_v5  ;;  %v3272_v41 = vld [vmem:[%s9241_s3 + $0x5b0] sm:$0xff]  ;;  %v3273_v13 = vld [vmem:[%s9241_s3 + $0x5b8] sm:$0xff] }
 0x1d6   : > { %5906 = vmatprep.subr.bf16.mxu1 %v1016_v58  ;;  %v3256_v44 = vld [vmem:[%s9241_s3 + $0x530] sm:$0xff] }
 0x1d7   : > { %5907 = vmatpush3.bf16.msra.mxu1 %v8172_v23  ;;  %v907_v17 = vadd.f32 %v5877_v28, %v7876_v14  ;;  %v964_v57 = vmax.f32 %v904_v0, 0.0  ;;  %v8361_v14 = vpop.permute.xlu0 %2383 }
 0x1d9   : > { %3464 = vperm.xlu0 %6668, %v3254_v51   ;;  %3469 = vperm.xlu1 %6669, %v3255_v18   ;;  %v5878_v53 = vpop.f32.mrb[48].mxu0  ;;  %v965_v1 = vmax.f32 %v907_v17, 0.0  ;;  %v3257_v51 = vld [vmem:[%s9241_s3 + $0x538] sm:$0xff]  ;;  %v8369_v18 = vpop.permute.xlu1 %2388 }
 0x1da   : > { %v5879_v47 = vpop.f32.mrb[49].mxu0 }
 0x1db   : > { %v5880_v54 = vadd.f32 %v5879_v47, %v5878_v53  ;;  %v5881_v23 = vpop.f32.mrb[50].mxu0  ;;  %v1017_v5 = vpack.c.bf16 %v965_v1, %v964_v57  ;;  %v8380_v1 = vpop.permute.xlu0 %2473 }
 0x1dc   : > { %v5882_v58 = vpop.f32.mrb[51].mxu0  ;;  %9295 = vst [vmem:[#allocation40_spill] sm:$0xff] %v8380_v1 }
 0x1dd   : > { %3554 = vperm.xlu0 %6668, %v3272_v41   ;;  %3559 = vperm.xlu1 %6669, %v3273_v13   ;;  %v912_v0 = vadd.f32 %v5880_v54, %v7894_v21  ;;  %v5883_v28 = vadd.f32 %v5882_v58, %v5881_v23  ;;  %v3274_v41 = vld [vmem:[%s9241_s3 + $0x5c0] sm:$0xff]  ;;  %v3275_v13 = vld [vmem:[%s9241_s3 + $0x5c8] sm:$0xff] }
 0x1de   : > { %5908 = vmatprep.subr.bf16.mxu1 %v1017_v5  ;;  %v3258_v58 = vld [vmem:[%s9241_s3 + $0x540] sm:$0xff] }
 0x1df   : > { %5909 = vmatpush3.bf16.msra.mxu1 %v8196_v62  ;;  %v915_v17 = vadd.f32 %v5883_v28, %v7896_v22  ;;  %v966_v47 = vmax.f32 %v912_v0, 0.0  ;;  %v8382_v62 = vpop.permute.xlu1 %2478 }
 0x1e0   : > { %9296 = vst [vmem:[#allocation41_spill] sm:$0xff] %v8382_v62 }
 0x1e1   : > { %3474 = vperm.xlu0 %6668, %v3256_v44   ;;  %3479 = vperm.xlu1 %6669, %v3257_v51   ;;  %v5884_v53 = vpop.f32.mrb[52].mxu0  ;;  %v967_v57 = vmax.f32 %v915_v17, 0.0  ;;  %v3259_v44 = vld [vmem:[%s9241_s3 + $0x548] sm:$0xff]  ;;  %v8393_v17 = vpop.permute.xlu0 %2393 }
 0x1e2   : > { %v5885_v21 = vpop.f32.mrb[53].mxu0 }
 0x1e3   : > { %v5886_v54 = vadd.f32 %v5885_v21, %v5884_v53  ;;  %v5887_v22 = vpop.f32.mrb[54].mxu0  ;;  %v1018_v23 = vpack.c.bf16 %v967_v57, %v966_v47 }
 0x1e4   : > { %v5888_v5 = vpop.f32.mrb[55].mxu0 }
 0x1e5   : > { %3564 = vperm.xlu0 %6668, %v3274_v41   ;;  %3569 = vperm.xlu1 %6669, %v3275_v13   ;;  %v920_v51 = vadd.f32 %v5886_v54, %v7914_v29  ;;  %v5889_v0 = vadd.f32 %v5888_v5, %v5887_v22  ;;  %v3276_v41 = vld [vmem:[%s9241_s3 + $0x5d0] sm:$0xff]  ;;  %v3277_v13 = vld [vmem:[%s9241_s3 + $0x5d8] sm:$0xff]  ;;  %v8401_v29 = vpop.permute.xlu1 %2398 }
 0x1e6   : > { %5910 = vmatprep.subr.bf16.mxu1 %v1018_v23  ;;  %v3260_v23 = vld [vmem:[%s9241_s3 + $0x550] sm:$0xff]  ;;  %v3261_v5 = vld [vmem:[%s9241_s3 + $0x558] sm:$0xff] }
 0x1e7   : > { %5911 = vmatpush3.bf16.msra.mxu1 %v8216_v11  ;;  %v923_v28 = vadd.f32 %v5889_v0, %v7916_v30  ;;  %v968_v47 = vmax.f32 %v920_v51, 0.0  ;;  %v8411_v51 = vpop.permute.xlu0 %2627 }
 0x1e8   : > { %9297 = vst [vmem:[#allocation42_spill] sm:$0xff] %v8411_v51 }
 0x1e9   : > { %3484 = vperm.xlu0 %6668, %v3258_v58   ;;  %3489 = vperm.xlu1 %6669, %v3259_v44   ;;  %v5890_v53 = vpop.f32.mrb[56].mxu0  ;;  %v969_v57 = vmax.f32 %v923_v28, 0.0  ;;  %v8413_v0 = vpop.permute.xlu1 %2632 }
 0x1ea   : > { %v5891_v11 = vpop.f32.mrb[57].mxu0  ;;  %9298 = vst [vmem:[#allocation43_spill] sm:$0xff] %v8413_v0 }
 0x1eb   : > { %v5892_v21 = vadd.f32 %v5891_v11, %v5890_v53  ;;  %v5893_v30 = vpop.f32.mrb[58].mxu0  ;;  %v1019_v54 = vpack.c.bf16 %v969_v57, %v968_v47 }
 0x1ec   : > { %v5894_v22 = vpop.f32.mrb[59].mxu0 }
 0x1ed   : > { %3574 = vperm.xlu0 %6668, %v3276_v41   ;;  %3579 = vperm.xlu1 %6669, %v3277_v13   ;;  %v928_v58 = vadd.f32 %v5892_v21, %v7934_v37  ;;  %v5895_v44 = vadd.f32 %v5894_v22, %v5893_v30  ;;  %v3278_v41 = vld [vmem:[%s9241_s3 + $0x5e0] sm:$0xff]  ;;  %v3279_v37 = vld [vmem:[%s9241_s3 + $0x5e8] sm:$0xff]  ;;  %v8428_v22 = vpop.permute.xlu0 %2637 }
 0x1ee   : > { %5912 = vmatprep.subr.bf16.mxu1 %v1019_v54  ;;  %v3262_v30 = vld [vmem:[%s9241_s3 + $0x560] sm:$0xff]  ;;  %v3263_v54 = vld [vmem:[%s9241_s3 + $0x568] sm:$0xff]  ;;  %9299 = vst [vmem:[#allocation44_spill] sm:$0xff] %v8428_v22 }
 0x1ef   : > { %5913 = vmatpush3.bf16.msra.mxu1 %v8236_v43  ;;  %v931_v28 = vadd.f32 %v5895_v44, %v7936_v38  ;;  %v970_v13 = vmax.f32 %v928_v58, 0.0 }
 0x1f1   : > { %3494 = vperm.xlu0 %6668, %v3260_v23   ;;  %3499 = vperm.xlu1 %6669, %v3261_v5   ;;  %v5896_v53 = vpop.f32.mrb[60].mxu0  ;;  %v971_v47 = vmax.f32 %v931_v28, 0.0  ;;  %v8430_v23 = vpop.permute.xlu1 %2642  ;;  %v3280_v28 = vld [vmem:[%s9241_s3 + $0x5f0] sm:$0xff] }
 0x1f2   : > { %v5897_v43 = vpop.f32.mrb[61].mxu0  ;;  %9300 = vst [vmem:[#allocation45_spill] sm:$0xff] %v8430_v23 }
 0x1f3   : > { %v5898_v57 = vadd.f32 %v5897_v43, %v5896_v53  ;;  %v5899_v11 = vpop.f32.mrb[62].mxu0  ;;  %v1020_v21 = vpack.c.bf16 %v971_v47, %v970_v13  ;;  %v3281_v53 = vld [vmem:[%s9241_s3 + $0x5f8] sm:$0xff]  ;;  %v8441_v13 = vpop.permute.xlu0 %2647  ;;  %v6734_v43 = vld [vmem:[#allocation7 + $0x200] ss:$16 sps:$4 sm:$0xff]  }
 0x1f4   : > { %v5900_v38 = vpop.f32.mrb[63].mxu0  ;;  %9301 = vst [vmem:[#allocation46_spill] sm:$0xff] %v8441_v13  ;;  %v3265_v47 = vld [vmem:[%s9241_s3 + $0x578] sm:$0xff] }
 0x1f5   : > { %3584 = vperm.xlu0 %6668, %v3278_v41   ;;  %3589 = vperm.xlu1 %6669, %v3279_v37   ;;  %v936_v5 = vadd.f32 %v5898_v57, %v7954_v45  ;;  %v5901_v58 = vadd.f32 %v5900_v38, %v5899_v11  ;;  %v8443_v45 = vpop.permute.xlu1 %2652  ;;  %v6737_v57 = vld [vmem:[#allocation7 + $0x224] ss:$16 sps:$4 sm:$0xff]  }
 0x1f6   : > { %5914 = vmatprep.subr.bf16.mxu1 %v1020_v21  ;;  %9302 = vst [vmem:[#allocation47_spill] sm:$0xff] %v8443_v45  ;;  %v4361_v11 = vld [vmem:[%s9241_s3 + $0x600] sm:$0xff]  ;;  %v4362_v21 = vld [vmem:[%s9241_s3 + $0x608] sm:$0xff] }
 0x1f7   : > { %5915 = vmatpush3.bf16.msra.mxu1 %v8260_v26  ;;  %v939_v44 = vadd.f32 %v5901_v58, %v7956_v46  ;;  %v972_v41 = vmax.f32 %v936_v5, 0.0  ;;  %v3264_v46 = vld [vmem:[%s9241_s3 + $0x570] sm:$0xff]  ;;  %v8458_v38 = vpop.permute.xlu0 %2657 }
 0x1f8   : > { %9303 = vst [vmem:[#allocation48_spill] sm:$0xff] %v8458_v38  ;;  %v6739_v5 = vld [vmem:[#allocation7 + $0x220] ss:$16 sps:$4 sm:$0xff]   ;;  %v6740_v58 = vld [vmem:[#allocation7 + $0x244] ss:$16 sps:$4 sm:$0xff]  }
 0x1f9   : > { %3504 = vperm.xlu0 %6668, %v3262_v30   ;;  %3509 = vperm.xlu1 %6669, %v3263_v54   ;;  %v973_v37 = vmax.f32 %v939_v44, 0.0  ;;  %v8460_v30 = vpop.permute.xlu1 %2662  ;;  %v4364_v54 = vld [vmem:[%s9241_s3 + $0x618] sm:$0xff] }
 0x1fa   : > { %9304 = vst [vmem:[#allocation49_spill] sm:$0xff] %v8460_v30 }
 0x1fb   : > { %v1021_v26 = vpack.c.bf16 %v973_v37, %v972_v41  ;;  %v8468_v44 = vpop.permute.xlu0 %2667  ;;  %v4366_v41 = vld [vmem:[%s9241_s3 + $0x628] sm:$0xff]  ;;  %v4367_v37 = vld [vmem:[%s9241_s3 + $0x630] sm:$0xff] }
 0x1fc   : > { %9305 = vst [vmem:[#allocation50_spill] sm:$0xff] %v8468_v44  ;;  %v6790_v44 = vld [vmem:[#allocation7 + $0x620] ss:$16 sps:$4 sm:$0xff]  }
 0x1fd   : > { %3594 = vperm.xlu0 %6668, %v3280_v28   ;;  %3599 = vperm.xlu1 %6669, %v3281_v53   ;;  %v8470_v28 = vpop.permute.xlu1 %2672  ;;  %v4365_v53 = vld [vmem:[%s9241_s3 + $0x620] sm:$0xff] }
 0x1fe   : > { %5916 = vmatprep.subr.bf16.mxu1 %v1021_v26  ;;  %9306 = vst [vmem:[#allocation51_spill] sm:$0xff] %v8470_v28  ;;  %v4368_v26 = vld [vmem:[%s9241_s3 + $0x638] sm:$0xff] }
 0x1ff   : > { %5917 = vmatpush3.bf16.msra.mxu1 %v8280_v36  ;;  %v4363_v36 = vld [vmem:[%s9241_s3 + $0x610] sm:$0xff] }
 0x201   : > { %3514 = vperm.xlu0 %6668, %v3264_v46   ;;  %3519 = vperm.xlu1 %6669, %v3265_v47   ;;  %v8484_v46 = vpop.permute.xlu0 %2677  ;;  %v8486_v47 = vpop.permute.xlu1 %2682 }
 0x202   : > { %1407 = vmatmul.mubr.bf16.vlgmr.msra.gmra.mrb[0].mxu1 %v6734_v43  ;;  %9307 = vst [vmem:[#allocation52_spill] sm:$0xff] %v8484_v46  ;;  %9308 = vst [vmem:[#allocation53_spill] sm:$0xff] %v8486_v47  ;;  %v6742_v43 = vld [vmem:[#allocation7 + $0x240] ss:$16 sps:$4 sm:$0xff]  }
 0x203   : > { %1414 = vmatprep.mubr.bf16.mxu1 %v6737_v57  ;;  %v6743_v57 = vld [vmem:[#allocation7 + $0x264] ss:$16 sps:$4 sm:$0xff]   ;;  %v6769_v47 = vld [vmem:[#allocation7 + $0x360] ss:$16 sps:$4 sm:$0xff]  }
 0x205   : > { %4390 = vperm.xlu0 %6668, %v4361_v11   ;;  %4395 = vperm.xlu1 %6669, %v4362_v21   ;;  %v4369_v11 = vld [vmem:[%s9241_s3 + $0x640] sm:$0xff]  ;;  %v4370_v21 = vld [vmem:[%s9241_s3 + $0x648] sm:$0xff] }
 0x209   : > { %4400 = vperm.xlu0 %6668, %v4363_v36   ;;  %4405 = vperm.xlu1 %6669, %v4364_v54   ;;  %v8494_v36 = vpop.permute.xlu0 %2687  ;;  %v8496_v54 = vpop.permute.xlu1 %2692 }
 0x20a   : > { %1415 = vmatmul.mubr.bf16.gmra.mrb[4].mxu1 %v6739_v5  ;;  %9309 = vst [vmem:[#allocation54_spill] sm:$0xff] %v8494_v36  ;;  %9310 = vst [vmem:[#allocation55_spill] sm:$0xff] %v8496_v54  ;;  %v4371_v5 = vld [vmem:[%s9241_s3 + $0x650] sm:$0xff] }
 0x20b   : > { %1422 = vmatprep.mubr.bf16.mxu1 %v6740_v58  ;;  %v4372_v58 = vld [vmem:[%s9241_s3 + $0x658] sm:$0xff] }
 0x20d   : > { %4410 = vperm.xlu0 %6668, %v4365_v53   ;;  %4415 = vperm.xlu1 %6669, %v4366_v41   ;;  %v6745_v53 = vld [vmem:[#allocation7 + $0x260] ss:$16 sps:$4 sm:$0xff]   ;;  %v6746_v41 = vld [vmem:[#allocation7 + $0x284] ss:$16 sps:$4 sm:$0xff]  }
 0x211   : > { %4420 = vperm.xlu0 %6668, %v4367_v37   ;;  %4425 = vperm.xlu1 %6669, %v4368_v26   ;;  %v4373_v37 = vld [vmem:[%s9241_s3 + $0x660] sm:$0xff]  ;;  %v4374_v26 = vld [vmem:[%s9241_s3 + $0x668] sm:$0xff] }
 0x212   : > { %1423 = vmatmul.mubr.bf16.gmra.mrb[8].mxu1 %v6742_v43  ;;  %v8510_v43 = vpop.permute.xlu0 %2697 }
 0x213   : > { %1430 = vmatprep.mubr.bf16.mxu1 %v6743_v57  ;;  %9311 = vst [vmem:[#allocation56_spill] sm:$0xff] %v8510_v43  ;;  %v8512_v57 = vpop.permute.xlu1 %2702 }
 0x214   : > { %9312 = vst [vmem:[#allocation57_spill] sm:$0xff] %v8512_v57 }
 0x215   : > { %4430 = vperm.xlu0 %6668, %v4369_v11   ;;  %4435 = vperm.xlu1 %6669, %v4370_v21   ;;  %v4375_v11 = vld [vmem:[%s9241_s3 + $0x670] sm:$0xff]  ;;  %v4376_v21 = vld [vmem:[%s9241_s3 + $0x678] sm:$0xff] }
 0x216   : > { %v8520_v54 = vpop.permute.xlu0 %2707 }
 0x217   : > { %9313 = vst [vmem:[#allocation58_spill] sm:$0xff] %v8520_v54  ;;  %v8522_v36 = vpop.permute.xlu1 %2712  ;;  %v6752_v54 = vld [vmem:[#allocation7 + $0x2c4] ss:$16 sps:$4 sm:$0xff]  }
 0x218   : > { %9314 = vst [vmem:[#allocation59_spill] sm:$0xff] %v8522_v36  ;;  %v6751_v36 = vld [vmem:[#allocation7 + $0x2a0] ss:$16 sps:$4 sm:$0xff]  }
 0x219   : > { %4440 = vperm.xlu0 %6668, %v4371_v5   ;;  %4445 = vperm.xlu1 %6669, %v4372_v58   ;;  %v6748_v5 = vld [vmem:[#allocation7 + $0x280] ss:$16 sps:$4 sm:$0xff]   ;;  %v6749_v58 = vld [vmem:[#allocation7 + $0x2a4] ss:$16 sps:$4 sm:$0xff]  }
 0x21a   : > { %1431 = vmatmul.mubr.bf16.gmra.mrb[12].mxu1 %v6745_v53  ;;  %v4377_v53 = vld [vmem:[%s9241_s3 + $0x680] sm:$0xff] }
 0x21b   : > { %1438 = vmatprep.mubr.bf16.mxu1 %v6746_v41  ;;  %v4378_v41 = vld [vmem:[%s9241_s3 + $0x688] sm:$0xff] }
 0x21d   : > { %4450 = vperm.xlu0 %6668, %v4373_v37   ;;  %4455 = vperm.xlu1 %6669, %v4374_v26   ;;  %v4379_v37 = vld [vmem:[%s9241_s3 + $0x690] sm:$0xff]  ;;  %v4380_v26 = vld [vmem:[%s9241_s3 + $0x698] sm:$0xff] }
 0x221   : > { %4460 = vperm.xlu0 %6668, %v4375_v11   ;;  %4465 = vperm.xlu1 %6669, %v4376_v21   ;;  %v8536_v11 = vpop.permute.xlu0 %2717  ;;  %v8538_v21 = vpop.permute.xlu1 %2722 }
 0x222   : > { %1439 = vmatmul.mubr.bf16.gmra.mrb[16].mxu1 %v6748_v5  ;;  %9315 = vst [vmem:[#allocation60_spill] sm:$0xff] %v8536_v11  ;;  %9316 = vst [vmem:[#allocation61_spill] sm:$0xff] %v8538_v21  ;;  %v4381_v5 = vld [vmem:[%s9241_s3 + $0x6a0] sm:$0xff] }
 0x223   : > { %1446 = vmatprep.mubr.bf16.mxu1 %v6749_v58  ;;  %v4382_v58 = vld [vmem:[%s9241_s3 + $0x6a8] sm:$0xff]  ;;  %v6754_v21 = vld [vmem:[#allocation7 + $0x2c0] ss:$16 sps:$4 sm:$0xff]   ;;  %v6755_v11 = vld [vmem:[#allocation7 + $0x2e4] ss:$16 sps:$4 sm:$0xff]  }
 0x225   : > { %4470 = vperm.xlu0 %6668, %v4377_v53   ;;  %4475 = vperm.xlu1 %6669, %v4378_v41   ;;  %v8546_v53 = vpop.permute.xlu0 %2727  ;;  %v8548_v41 = vpop.permute.xlu1 %2732 }
 0x226   : > { %9317 = vst [vmem:[#allocation62_spill] sm:$0xff] %v8546_v53  ;;  %9318 = vst [vmem:[#allocation63_spill] sm:$0xff] %v8548_v41  ;;  %v6757_v41 = vld [vmem:[#allocation7 + $0x2e0] ss:$16 sps:$4 sm:$0xff]   ;;  %v6758_v53 = vld [vmem:[#allocation7 + $0x304] ss:$16 sps:$4 sm:$0xff]  }
 0x229   : > { %4480 = vperm.xlu0 %6668, %v4379_v37   ;;  %4485 = vperm.xlu1 %6669, %v4380_v26   ;;  %v4383_v37 = vld [vmem:[%s9241_s3 + $0x6b0] sm:$0xff]  ;;  %v4384_v26 = vld [vmem:[%s9241_s3 + $0x6b8] sm:$0xff] }
 0x22a   : > { %1447 = vmatmul.mubr.bf16.gmra.mrb[20].mxu1 %v6751_v36  ;;  %v4385_v36 = vld [vmem:[%s9241_s3 + $0x6c0] sm:$0xff] }
 0x22b   : > { %1454 = vmatprep.mubr.bf16.mxu1 %v6752_v54  ;;  %v4386_v54 = vld [vmem:[%s9241_s3 + $0x6c8] sm:$0xff] }
 0x22d   : > { %4490 = vperm.xlu0 %6668, %v4381_v5   ;;  %4495 = vperm.xlu1 %6669, %v4382_v58   ;;  %v8562_v5 = vpop.permute.xlu0 %2737  ;;  %v8564_v58 = vpop.permute.xlu1 %2742 }
 0x22e   : > { %9319 = vst [vmem:[#allocation64_spill] sm:$0xff] %v8562_v5  ;;  %9320 = vst [vmem:[#allocation65_spill] sm:$0xff] %v8564_v58  ;;  %v6766_v58 = vld [vmem:[#allocation7 + $0x340] ss:$16 sps:$4 sm:$0xff]   ;;  %v6767_v5 = vld [vmem:[#allocation7 + $0x364] ss:$16 sps:$4 sm:$0xff]  }
 0x231   : > { %4500 = vperm.xlu0 %6668, %v4383_v37   ;;  %4505 = vperm.xlu1 %6669, %v4384_v26   ;;  %v4387_v37 = vld [vmem:[%s9241_s3 + $0x6d0] sm:$0xff]  ;;  %v5087_v26 = vld [vmem:[%s9241_s3 + $0x6d8] sm:$0xff]  ;;  %v8572_v57 = vpop.permute.xlu0 %2747  ;;  %v8574_v43 = vpop.permute.xlu1 %2752 }
 0x232   : > { %1455 = vmatmul.mubr.bf16.gmra.mrb[24].mxu1 %v6754_v21  ;;  %9321 = vst [vmem:[#allocation66_spill] sm:$0xff] %v8572_v57  ;;  %9322 = vst [vmem:[#allocation67_spill] sm:$0xff] %v8574_v43  ;;  %v6761_v21 = vld [vmem:[#allocation7 + $0x324] ss:$16 sps:$4 sm:$0xff]  }
 0x233   : > { %1462 = vmatprep.mubr.bf16.mxu1 %v6755_v11  ;;  %v6760_v11 = vld [vmem:[#allocation7 + $0x300] ss:$16 sps:$4 sm:$0xff]   ;;  %v6770_v57 = vld [vmem:[#allocation7 + $0x384] ss:$16 sps:$4 sm:$0xff]  }
 0x235   : > { %4510 = vperm.xlu0 %6668, %v4385_v36   ;;  %4515 = vperm.xlu1 %6669, %v4386_v54   ;;  %v6763_v36 = vld [vmem:[#allocation7 + $0x320] ss:$16 sps:$4 sm:$0xff]   ;;  %v6764_v54 = vld [vmem:[#allocation7 + $0x344] ss:$16 sps:$4 sm:$0xff]  }
 0x239   : > { %4520 = vperm.xlu0 %6668, %v4387_v37   ;;  %5090 = vperm.xlu1 %6669, %v5087_v26   ;;  %v6772_v37 = vld [vmem:[#allocation7 + $0x380] ss:$16 sps:$4 sm:$0xff]   ;;  %v6773_v26 = vld [vmem:[#allocation7 + $0x3a4] ss:$16 sps:$4 sm:$0xff]  }
 0x23a   : > { %1463 = vmatmul.mubr.bf16.gmra.mrb[28].mxu1 %v6757_v41  ;;  %v6776_v41 = vld [vmem:[#allocation7 + $0x3c4] ss:$16 sps:$4 sm:$0xff]  }
 0x23b   : > { %1470 = vmatprep.mubr.bf16.mxu1 %v6758_v53  ;;  %v6775_v53 = vld [vmem:[#allocation7 + $0x3a0] ss:$16 sps:$4 sm:$0xff]  }
 0x242   : > { %1471 = vmatmul.mubr.bf16.gmra.mrb[32].mxu1 %v6760_v11  ;;  %v6778_v11 = vld [vmem:[#allocation7 + $0x3c0] ss:$16 sps:$4 sm:$0xff]  }
 0x243   : > { %1478 = vmatprep.mubr.bf16.mxu1 %v6761_v21  ;;  %v6779_v21 = vld [vmem:[#allocation7 + $0x3e4] ss:$16 sps:$4 sm:$0xff]  }
 0x24a   : > { %1479 = vmatmul.mubr.bf16.gmra.mrb[36].mxu1 %v6763_v36  ;;  %v6781_v36 = vld [vmem:[#allocation7 + $0x3e0] ss:$16 sps:$4 sm:$0xff]  }
 0x24b   : > { %1486 = vmatprep.mubr.bf16.mxu1 %v6764_v54  ;;  %v6784_v54 = vld [vmem:[#allocation7 + $0x604] ss:$16 sps:$4 sm:$0xff]  }
 0x24c   : > { %1871 = vmatprep.mubr.bf16.mxu0 %v6784_v54 }
 0x252   : > { %1487 = vmatmul.mubr.bf16.gmra.mrb[40].mxu1 %v6766_v58 }
 0x253   : > { %1494 = vmatprep.mubr.bf16.mxu1 %v6767_v5  ;;  %v6782_v5 = vld [vmem:[#allocation7 + $0x600] ss:$16 sps:$4 sm:$0xff]  }
 0x254   : > { %1872 = vmatmul.mubr.bf16.vlgmr.msra.gmra.mrb[64].mxu0 %v6782_v5 }
 0x25a   : > { %1495 = vmatmul.mubr.bf16.gmra.mrb[44].mxu1 %v6769_v47 }
 0x25b   : > { %1502 = vmatprep.mubr.bf16.mxu1 %v6770_v57 }
 0x262   : > { %1503 = vmatmul.mubr.bf16.gmra.mrb[48].mxu1 %v6772_v37 }
 0x263   : > { %1510 = vmatprep.mubr.bf16.mxu1 %v6773_v26 }
 0x26a   : > { %1511 = vmatmul.mubr.bf16.gmra.mrb[52].mxu1 %v6775_v53  ;;  %v6787_v53 = vld [vmem:[#allocation7 + $0x404] ss:$16 sps:$4 sm:$0xff]  }
 0x26b   : > { %1518 = vmatprep.mubr.bf16.mxu1 %v6776_v41 }
 0x272   : > { %1519 = vmatmul.mubr.bf16.gmra.mrb[56].mxu1 %v6778_v11 }
 0x273   : > { %1526 = vmatprep.mubr.bf16.mxu1 %v6779_v21 }
 0x27a   : > { %1527 = vmatmul.mubr.bf16.gmra.mrb[60].mxu1 %v6781_v36  ;;  %v6788_v36 = vld [vmem:[#allocation7 + $0x624] ss:$16 sps:$4 sm:$0xff]  }
 0x27b   : > { %2192 = vmatprep.mubr.bf16.mxu1 %v6787_v53  ;;  %1879 = vmatprep.mubr.bf16.mxu0 %v6788_v36  ;;  %v6802_v36 = vld [vmem:[#allocation7 + $0x660] ss:$16 sps:$4 sm:$0xff]  }
 0x27c   : > { %1880 = vmatmul.mubr.bf16.gmra.mrb[68].mxu0 %v6790_v44 }
 0x2d5   : > { %v5918_v58 = vpop.f32.mrb[0].mxu1 }
 0x2d6   : > { %v5919_v43 = vpop.f32.mrb[1].mxu1 }
 0x2d7   : > { %v5920_v47 = vadd.f32 %v5919_v43, %v5918_v58  ;;  %v5921_v57 = vpop.f32.mrb[2].mxu1 }
 0x2d8   : > { %v5922_v46 = vpop.f32.mrb[3].mxu1 }
 0x2d9   : > { %v1409_v37 = vadd.f32 %v5920_v47, %v7984_v2  ;;  %v5923_v26 = vadd.f32 %v5922_v46, %v5921_v57  ;;  %v6794_v57 = vld [vmem:[#allocation7 + $0x644] ss:$16 sps:$4 sm:$0xff]  }
 0x2da   : > { %1887 = vmatprep.mubr.bf16.mxu0 %v6794_v57 }
 0x2db   : > { %v1412_v41 = vadd.f32 %v5923_v26, %v7986_v3  ;;  %v1535_v28 = vmax.f32 %v1409_v37, 0.0  ;;  %v6796_v37 = vld [vmem:[#allocation7 + $0x640] ss:$16 sps:$4 sm:$0xff]  }
 0x2dc   : > { %1888 = vmatmul.mubr.bf16.gmra.mrb[72].mxu0 %v6796_v37 }
 0x2dd   : > { %v1536_v11 = vmax.f32 %v1412_v41, 0.0  ;;  %v5924_v21 = vpop.f32.mrb[4].mxu1 }
 0x2de   : > { %v5925_v30 = vpop.f32.mrb[5].mxu1 }
 0x2df   : > { %v5926_v38 = vadd.f32 %v5925_v30, %v5924_v21  ;;  %v5927_v45 = vpop.f32.mrb[6].mxu1  ;;  %v8578_v43 = vpack.c.bf16 %v1536_v11, %v1535_v28  ;;  %v6800_v21 = vld [vmem:[#allocation7 + $0x664] ss:$16 sps:$4 sm:$0xff]  }
 0x2e0   : > { %v5928_v58 = vpop.f32.mrb[7].mxu1  ;;  %1895 = vmatprep.mubr.bf16.mxu0 %v6800_v21 }
 0x2e1   : > { %v1417_v2 = vadd.f32 %v5926_v38, %v8004_v16  ;;  %v5929_v46 = vadd.f32 %v5928_v58, %v5927_v45 }
 0x2e3   : > { %v1420_v5 = vadd.f32 %v5929_v46, %v8006_v19  ;;  %v1537_v3 = vmax.f32 %v1417_v2, 0.0 }
 0x2e4   : > { %1896 = vmatmul.mubr.bf16.gmra.mrb[76].mxu0 %v6802_v36  ;;  %v6812_v36 = vld [vmem:[#allocation7 + $0x6a4] ss:$16 sps:$4 sm:$0xff]  }
 0x2e5   : > { %v1538_v54 = vmax.f32 %v1420_v5, 0.0  ;;  %v5930_v47 = vpop.f32.mrb[8].mxu1 }
 0x2e6   : > { %v5931_v26 = vpop.f32.mrb[9].mxu1 }
 0x2e7   : > { %v5932_v53 = vadd.f32 %v5931_v26, %v5930_v47  ;;  %v5933_v41 = vpop.f32.mrb[10].mxu1  ;;  %v8582_v30 = vpack.c.bf16 %v1538_v54, %v1537_v3  ;;  %v6806_v26 = vld [vmem:[#allocation7 + $0x684] ss:$16 sps:$4 sm:$0xff]  }
 0x2e8   : > { %v5934_v28 = vpop.f32.mrb[11].mxu1  ;;  %1903 = vmatprep.mubr.bf16.mxu0 %v6806_v26  ;;  %v6818_v26 = vld [vmem:[#allocation7 + $0x6c4] ss:$16 sps:$4 sm:$0xff]  }
 0x2e9   : > { %v1425_v44 = vadd.f32 %v5932_v53, %v8024_v32  ;;  %v5935_v11 = vadd.f32 %v5934_v28, %v5933_v41  ;;  %v6808_v53 = vld [vmem:[#allocation7 + $0x680] ss:$16 sps:$4 sm:$0xff]  }
 0x2eb   : > { %v1428_v16 = vadd.f32 %v5935_v11, %v8026_v35  ;;  %v1539_v45 = vmax.f32 %v1425_v44, 0.0 }
 0x2ec   : > { %1904 = vmatmul.mubr.bf16.gmra.mrb[80].mxu0 %v6808_v53  ;;  %v6820_v53 = vld [vmem:[#allocation7 + $0x6c0] ss:$16 sps:$4 sm:$0xff]  }
 0x2ed   : > { %v1540_v19 = vmax.f32 %v1428_v16, 0.0  ;;  %v5936_v38 = vpop.f32.mrb[12].mxu1  ;;  %1911 = vmatprep.mubr.bf16.mxu0 %v6812_v36  ;;  %v6826_v36 = vld [vmem:[#allocation7 + $0x6e0] ss:$16 sps:$4 sm:$0xff]  }
 0x2ee   : > { %v5937_v58 = vpop.f32.mrb[13].mxu1 }
 0x2ef   : > { %v5938_v2 = vadd.f32 %v5937_v58, %v5936_v38  ;;  %v5939_v46 = vpop.f32.mrb[14].mxu1  ;;  %v8586_v5 = vpack.c.bf16 %v1540_v19, %v1539_v45  ;;  %v6814_v58 = vld [vmem:[#allocation7 + $0x6a0] ss:$16 sps:$4 sm:$0xff]  }
 0x2f0   : > { %v5940_v3 = vpop.f32.mrb[15].mxu1 }
 0x2f1   : > { %v1433_v54 = vadd.f32 %v5938_v2, %v8044_v50  ;;  %v5941_v47 = vadd.f32 %v5940_v3, %v5939_v46 }
 0x2f3   : > { %v1436_v32 = vadd.f32 %v5941_v47, %v8046_v55  ;;  %v1541_v57 = vmax.f32 %v1433_v54, 0.0 }
 0x2f4   : > { %1912 = vmatmul.mubr.bf16.gmra.mrb[84].mxu0 %v6814_v58 }
 0x2f5   : > { %v1542_v35 = vmax.f32 %v1436_v32, 0.0  ;;  %v5942_v37 = vpop.f32.mrb[16].mxu1  ;;  %1919 = vmatprep.mubr.bf16.mxu0 %v6818_v26 }
 0x2f6   : > { %v5943_v41 = vpop.f32.mrb[17].mxu1 }
 0x2f7   : > { %v5944_v28 = vadd.f32 %v5943_v41, %v5942_v37  ;;  %v5945_v44 = vpop.f32.mrb[18].mxu1  ;;  %v8590_v11 = vpack.c.bf16 %v1542_v35, %v1541_v57 }
 0x2f8   : > { %v5946_v16 = vpop.f32.mrb[19].mxu1 }
 0x2f9   : > { %v1441_v45 = vadd.f32 %v5944_v28, %v8064_v15  ;;  %v5947_v19 = vadd.f32 %v5946_v16, %v5945_v44 }
 0x2fb   : > { %v1444_v50 = vadd.f32 %v5947_v19, %v8066_v20  ;;  %v1543_v38 = vmax.f32 %v1441_v45, 0.0 }
 0x2fc   : > { %1920 = vmatmul.mubr.bf16.gmra.mrb[88].mxu0 %v6820_v53 }
 0x2fd   : > { %v1544_v55 = vmax.f32 %v1444_v50, 0.0  ;;  %v5948_v21 = vpop.f32.mrb[20].mxu1 }
 0x2fe   : > { %v5949_v2 = vpop.f32.mrb[21].mxu1 }
 0x2ff   : > { %v8594_v46 = vpack.c.bf16 %v1544_v55, %v1543_v38  ;;  %v5950_v3 = vadd.f32 %v5949_v2, %v5948_v21  ;;  %v5951_v54 = vpop.f32.mrb[22].mxu1  ;;  %v6824_v21 = vld [vmem:[#allocation7 + $0x6e4] ss:$16 sps:$4 sm:$0xff]  }
 0x300   : > { %v5952_v47 = vpop.f32.mrb[23].mxu1  ;;  %1927 = vmatprep.mubr.bf16.mxu0 %v6824_v21 }
 0x301   : > { %v1449_v32 = vadd.f32 %v5950_v3, %v8084_v49  ;;  %v5953_v57 = vadd.f32 %v5952_v47, %v5951_v54 }
 0x303   : > { %v1452_v15 = vadd.f32 %v5953_v57, %v8092_v7  ;;  %v1545_v35 = vmax.f32 %v1449_v32, 0.0 }
 0x304   : > { %1928 = vmatmul.mubr.bf16.gmra.mrb[92].mxu0 %v6826_v36 }
 0x305   : > { %v1546_v20 = vmax.f32 %v1452_v15, 0.0  ;;  %v5954_v37 = vpop.f32.mrb[24].mxu1 }
 0x306   : > { %v5955_v41 = vpop.f32.mrb[25].mxu1 }
 0x307   : > { %v8598_v28 = vpack.c.bf16 %v1546_v20, %v1545_v35  ;;  %v5956_v44 = vadd.f32 %v5955_v41, %v5954_v37  ;;  %v5957_v16 = vpop.f32.mrb[26].mxu1  ;;  %v6830_v20 = vld [vmem:[#allocation7 + $0x704] ss:$16 sps:$4 sm:$0xff]   ;;  %v6832_v37 = vld [vmem:[#allocation7 + $0x700] ss:$16 sps:$4 sm:$0xff]  }
 0x308   : > { %v5958_v45 = vpop.f32.mrb[27].mxu1  ;;  %1935 = vmatprep.mubr.bf16.mxu0 %v6830_v20 }
 0x309   : > { %v1457_v19 = vadd.f32 %v5956_v44, %v8110_v6  ;;  %v5959_v50 = vadd.f32 %v5958_v45, %v5957_v16 }
 0x30b   : > { %v1460_v49 = vadd.f32 %v5959_v50, %v8118_v39  ;;  %v1547_v38 = vmax.f32 %v1457_v19, 0.0 }
 0x30c   : > { %1936 = vmatmul.mubr.bf16.gmra.mrb[96].mxu0 %v6832_v37 }
 0x30d   : > { %v1548_v7 = vmax.f32 %v1460_v49, 0.0  ;;  %v5960_v55 = vpop.f32.mrb[28].mxu1 }
 0x30e   : > { %v5961_v58 = vpop.f32.mrb[29].mxu1 }
 0x30f   : > { %v8602_v2 = vpack.c.bf16 %v1548_v7, %v1547_v38  ;;  %v5962_v3 = vadd.f32 %v5961_v58, %v5960_v55  ;;  %v5963_v54 = vpop.f32.mrb[30].mxu1  ;;  %v6836_v38 = vld [vmem:[#allocation7 + $0x724] ss:$16 sps:$4 sm:$0xff]   ;;  %v6840_v55 = vld [vmem:[#allocation7 + $0x720] ss:$16 sps:$4 sm:$0xff]  }
 0x310   : > { %v5964_v47 = vpop.f32.mrb[31].mxu1  ;;  %1943 = vmatprep.mubr.bf16.mxu0 %v6836_v38  ;;  %v6852_v38 = vld [vmem:[#allocation7 + $0x760] ss:$16 sps:$4 sm:$0xff]  }
 0x311   : > { %v1465_v32 = vadd.f32 %v5962_v3, %v8142_v56  ;;  %v5965_v57 = vadd.f32 %v5964_v47, %v5963_v54 }
 0x313   : > { %v1468_v6 = vadd.f32 %v5965_v57, %v8150_v31  ;;  %v1549_v15 = vmax.f32 %v1465_v32, 0.0 }
 0x314   : > { %1944 = vmatmul.mubr.bf16.gmra.mrb[100].mxu0 %v6840_v55 }
 0x315   : > { %v1550_v39 = vmax.f32 %v1468_v6, 0.0  ;;  %v5966_v35 = vpop.f32.mrb[32].mxu1 }
 0x316   : > { %v5967_v26 = vpop.f32.mrb[33].mxu1 }
 0x317   : > { %v8606_v53 = vpack.c.bf16 %v1550_v39, %v1549_v15  ;;  %v5968_v41 = vadd.f32 %v5967_v26, %v5966_v35  ;;  %v5969_v44 = vpop.f32.mrb[34].mxu1  ;;  %v6842_v15 = vld [vmem:[#allocation7 + $0x744] ss:$16 sps:$4 sm:$0xff]   ;;  %v6846_v35 = vld [vmem:[#allocation7 + $0x740] ss:$16 sps:$4 sm:$0xff]  }
 0x318   : > { %v5970_v16 = vpop.f32.mrb[35].mxu1  ;;  %1951 = vmatprep.mubr.bf16.mxu0 %v6842_v15  ;;  %v6858_v15 = vld [vmem:[#allocation7 + $0x780] ss:$16 sps:$4 sm:$0xff]  }
 0x319   : > { %v1473_v45 = vadd.f32 %v5968_v41, %v7974_v59  ;;  %v5971_v19 = vadd.f32 %v5970_v16, %v5969_v44  ;;  %v9323_v59 = vld [vmem:[#allocation14_spill] sm:$0xff]  ;;  %v9324_v44 = vld [vmem:[#allocation15_spill] sm:$0xff] }
 0x31b   : > { %v1476_v56 = vadd.f32 %v5971_v19, %v7976_v60  ;;  %v1551_v50 = vmax.f32 %v1473_v45, 0.0 }
 0x31c   : > { %1952 = vmatmul.mubr.bf16.gmra.mrb[104].mxu0 %v6846_v35 }
 0x31d   : > { %v1552_v31 = vmax.f32 %v1476_v56, 0.0  ;;  %v5972_v49 = vpop.f32.mrb[36].mxu1 }
 0x31e   : > { %v5973_v7 = vpop.f32.mrb[37].mxu1 }
 0x31f   : > { %v5974_v21 = vadd.f32 %v5973_v7, %v5972_v49  ;;  %v5975_v36 = vpop.f32.mrb[38].mxu1  ;;  %v1639_v58 = vpack.c.bf16 %v1552_v31, %v1551_v50  ;;  %v6848_v31 = vld [vmem:[#allocation7 + $0x764] ss:$16 sps:$4 sm:$0xff]  }
 0x320   : > { %v5976_v3 = vpop.f32.mrb[39].mxu1  ;;  %1959 = vmatprep.mubr.bf16.mxu0 %v6848_v31 }
 0x321   : > { %v1481_v54 = vadd.f32 %v5974_v21, %v7994_v10  ;;  %v5977_v47 = vadd.f32 %v5976_v3, %v5975_v36  ;;  %6126 = vmatprep.subr.bf16.mxu1 %v1639_v58  ;;  %v9326_v58 = vld [vmem:[#allocation17_spill] sm:$0xff] }
 0x322   : > { %6127 = vmatpush3.bf16.msra.mxu1 %v8578_v43  ;;  %v9325_v43 = vld [vmem:[#allocation16_spill] sm:$0xff] }
 0x323   : > { %v1484_v60 = vadd.f32 %v5977_v47, %v9323_v59  ;;  %v1553_v32 = vmax.f32 %v1481_v54, 0.0 }
 0x324   : > { %1960 = vmatmul.mubr.bf16.gmra.mrb[108].mxu0 %v6852_v38 }
 0x325   : > { %v1554_v57 = vmax.f32 %v1484_v60, 0.0  ;;  %v5978_v6 = vpop.f32.mrb[40].mxu1 }
 0x326   : > { %v5979_v39 = vpop.f32.mrb[41].mxu1 }
 0x327   : > { %v5980_v20 = vadd.f32 %v5979_v39, %v5978_v6  ;;  %v5981_v37 = vpop.f32.mrb[42].mxu1  ;;  %v1640_v26 = vpack.c.bf16 %v1554_v57, %v1553_v32  ;;  %v6854_v57 = vld [vmem:[#allocation7 + $0x784] ss:$16 sps:$4 sm:$0xff]  }
 0x328   : > { %v5982_v41 = vpop.f32.mrb[43].mxu1  ;;  %1967 = vmatprep.mubr.bf16.mxu0 %v6854_v57 }
 0x329   : > { %v1489_v10 = vadd.f32 %v5980_v20, %v9324_v44  ;;  %v5983_v16 = vadd.f32 %v5982_v41, %v5981_v37  ;;  %6128 = vmatprep.subr.bf16.mxu1 %v1640_v26  ;;  %v9328_v26 = vld [vmem:[#allocation19_spill] sm:$0xff] }
 0x32a   : > { %6129 = vmatpush3.bf16.msra.mxu1 %v8582_v30  ;;  %v9327_v30 = vld [vmem:[#allocation18_spill] sm:$0xff] }
 0x32b   : > { %v1492_v45 = vadd.f32 %v5983_v16, %v9325_v43  ;;  %v1555_v19 = vmax.f32 %v1489_v10, 0.0 }
 0x32c   : > { %1968 = vmatmul.mubr.bf16.gmra.mrb[112].mxu0 %v6858_v15 }
 0x32d   : > { %v1556_v56 = vmax.f32 %v1492_v45, 0.0  ;;  %v5984_v50 = vpop.f32.mrb[44].mxu1 }
 0x32e   : > { %v5985_v49 = vpop.f32.mrb[45].mxu1 }
 0x32f   : > { %v5986_v7 = vadd.f32 %v5985_v49, %v5984_v50  ;;  %v5987_v55 = vpop.f32.mrb[46].mxu1  ;;  %v1641_v21 = vpack.c.bf16 %v1556_v56, %v1555_v19  ;;  %v6860_v19 = vld [vmem:[#allocation7 + $0x7a4] ss:$16 sps:$4 sm:$0xff]   ;;  %v6864_v50 = vld [vmem:[#allocation7 + $0x7a0] ss:$16 sps:$4 sm:$0xff]  }
 0x330   : > { %v5988_v36 = vpop.f32.mrb[47].mxu1  ;;  %1975 = vmatprep.mubr.bf16.mxu0 %v6860_v19 }
 0x331   : > { %v1497_v3 = vadd.f32 %v5986_v7, %v9326_v58  ;;  %v5989_v54 = vadd.f32 %v5988_v36, %v5987_v55  ;;  %6130 = vmatprep.subr.bf16.mxu1 %v1641_v21  ;;  %v9330_v55 = vld [vmem:[#allocation21_spill] sm:$0xff] }
 0x332   : > { %6131 = vmatpush3.bf16.msra.mxu1 %v8586_v5  ;;  %v9329_v5 = vld [vmem:[#allocation20_spill] sm:$0xff] }
 0x333   : > { %v1500_v47 = vadd.f32 %v5989_v54, %v9327_v30  ;;  %v1557_v59 = vmax.f32 %v1497_v3, 0.0 }
 0x334   : > { %1976 = vmatmul.mubr.bf16.gmra.mrb[116].mxu0 %v6864_v50  ;;  %v9334_v50 = vld [vmem:[#allocation25_spill] sm:$0xff] }
 0x335   : > { %v1558_v60 = vmax.f32 %v1500_v47, 0.0  ;;  %v5990_v32 = vpop.f32.mrb[48].mxu1  ;;  %v6866_v47 = vld [vmem:[#allocation7 + $0x7c4] ss:$16 sps:$4 sm:$0xff]  }
 0x336   : > { %v5991_v6 = vpop.f32.mrb[49].mxu1  ;;  %1983 = vmatprep.mubr.bf16.mxu0 %v6866_v47  ;;  %v6805_v47 = vld [vmem:[#allocation7 + $0x460] ss:$16 sps:$4 sm:$0xff]  }
 0x337   : > { %v5992_v39 = vadd.f32 %v5991_v6, %v5990_v32  ;;  %v5993_v35 = vpop.f32.mrb[50].mxu1  ;;  %v1642_v20 = vpack.c.bf16 %v1558_v60, %v1557_v59  ;;  %v6870_v60 = vld [vmem:[#allocation7 + $0x7c0] ss:$16 sps:$4 sm:$0xff]  }
 0x338   : > { %v5994_v37 = vpop.f32.mrb[51].mxu1 }
 0x339   : > { %v1505_v41 = vadd.f32 %v5992_v39, %v9328_v26  ;;  %v5995_v44 = vadd.f32 %v5994_v37, %v5993_v35  ;;  %6132 = vmatprep.subr.bf16.mxu1 %v1642_v20  ;;  %v9332_v39 = vld [vmem:[#allocation23_spill] sm:$0xff] }
 0x33a   : > { %6133 = vmatpush3.bf16.msra.mxu1 %v8590_v11  ;;  %v9331_v11 = vld [vmem:[#allocation22_spill] sm:$0xff] }
 0x33b   : > { %v1508_v10 = vadd.f32 %v5995_v44, %v9329_v5  ;;  %v1559_v16 = vmax.f32 %v1505_v41, 0.0  ;;  %v6872_v5 = vld [vmem:[#allocation7 + $0x7e4] ss:$16 sps:$4 sm:$0xff]  }
 0x33c   : > { %1984 = vmatmul.mubr.bf16.gmra.mrb[120].mxu0 %v6870_v60  ;;  %v6811_v60 = vld [vmem:[#allocation7 + $0x480] ss:$16 sps:$4 sm:$0xff]  }
 0x33d   : > { %v1560_v43 = vmax.f32 %v1508_v10, 0.0  ;;  %v5996_v45 = vpop.f32.mrb[52].mxu1  ;;  %1991 = vmatprep.mubr.bf16.mxu0 %v6872_v5  ;;  %v6030_v5 = vpop.f32.mrb[64].mxu0 }
 0x33e   : > { %v5997_v56 = vpop.f32.mrb[53].mxu1 }
 0x33f   : > { %v5998_v31 = vadd.f32 %v5997_v56, %v5996_v45  ;;  %v5999_v49 = vpop.f32.mrb[54].mxu1  ;;  %v1643_v38 = vpack.c.bf16 %v1560_v43, %v1559_v16  ;;  %v6876_v16 = vld [vmem:[#allocation7 + $0x7e0] ss:$16 sps:$4 sm:$0xff]  }
 0x340   : > { %v6000_v7 = vpop.f32.mrb[55].mxu1 }
 0x341   : > { %v1513_v21 = vadd.f32 %v5998_v31, %v9330_v55  ;;  %v6001_v36 = vadd.f32 %v6000_v7, %v5999_v49  ;;  %6134 = vmatprep.subr.bf16.mxu1 %v1643_v38 }
 0x342   : > { %6135 = vmatpush3.bf16.msra.mxu1 %v8594_v46  ;;  %v9333_v46 = vld [vmem:[#allocation24_spill] sm:$0xff] }
 0x343   : > { %v1516_v58 = vadd.f32 %v6001_v36, %v9331_v11  ;;  %v1561_v3 = vmax.f32 %v1513_v21, 0.0  ;;  %v6785_v36 = vld [vmem:[#allocation7 + $0x400] ss:$16 sps:$4 sm:$0xff]   ;;  %v6791_v11 = vld [vmem:[#allocation7 + $0x424] ss:$16 sps:$4 sm:$0xff]  }
 0x344   : > { %1992 = vmatmul.mubr.bf16.gmra.mrb[124].mxu0 %v6876_v16 }
 0x345   : > { %v1562_v54 = vmax.f32 %v1516_v58, 0.0  ;;  %v6002_v30 = vpop.f32.mrb[56].mxu1  ;;  %v9336_v58 = vmov 0  }
 0x346   : > { %v6003_v59 = vpop.f32.mrb[57].mxu1 }
 0x347   : > { %v6004_v32 = vadd.f32 %v6003_v59, %v6002_v30  ;;  %v6005_v57 = vpop.f32.mrb[58].mxu1  ;;  %v1644_v6 = vpack.c.bf16 %v1562_v54, %v1561_v3  ;;  %v6793_v3 = vld [vmem:[#allocation7 + $0x420] ss:$16 sps:$4 sm:$0xff]   ;;  %v6797_v54 = vld [vmem:[#allocation7 + $0x444] ss:$16 sps:$4 sm:$0xff]  }
 0x348   : > { %v6006_v15 = vpop.f32.mrb[59].mxu1  ;;  %v6799_v30 = vld [vmem:[#allocation7 + $0x440] ss:$16 sps:$4 sm:$0xff]   ;;  %v6809_v59 = vld [vmem:[#allocation7 + $0x484] ss:$16 sps:$4 sm:$0xff]  }
 0x349   : > { %v1521_v35 = vadd.f32 %v6004_v32, %v9332_v39  ;;  %v6007_v20 = vadd.f32 %v6006_v15, %v6005_v57  ;;  %6136 = vmatprep.subr.bf16.mxu1 %v1644_v6  ;;  %v6815_v32 = vld [vmem:[#allocation7 + $0x4a4] ss:$16 sps:$4 sm:$0xff]   ;;  %v6823_v6 = vld [vmem:[#allocation7 + $0x4c0] ss:$16 sps:$4 sm:$0xff]  }
 0x34a   : > { %6137 = vmatpush3.bf16.msra.mxu1 %v8598_v28  ;;  %v9335_v28 = vld [vmem:[#allocation26_spill] sm:$0xff] }
 0x34b   : > { %v1524_v37 = vadd.f32 %v6007_v20, %v9333_v46  ;;  %v1563_v26 = vmax.f32 %v1521_v35, 0.0  ;;  %v6821_v57 = vld [vmem:[#allocation7 + $0x4c4] ss:$16 sps:$4 sm:$0xff]   ;;  %v6829_v39 = vld [vmem:[#allocation7 + $0x4e0] ss:$16 sps:$4 sm:$0xff]  }
 0x34c   : > { %v6827_v15 = vld [vmem:[#allocation7 + $0x4e4] ss:$16 sps:$4 sm:$0xff]   ;;  %v6835_v20 = vld [vmem:[#allocation7 + $0x500] ss:$16 sps:$4 sm:$0xff]  }
 0x34d   : > { %v1564_v41 = vmax.f32 %v1524_v37, 0.0  ;;  %v6008_v44 = vpop.f32.mrb[60].mxu1  ;;  %v6833_v35 = vld [vmem:[#allocation7 + $0x504] ss:$16 sps:$4 sm:$0xff]   ;;  %v6841_v37 = vld [vmem:[#allocation7 + $0x520] ss:$16 sps:$4 sm:$0xff]  }
 0x34e   : > { %v6009_v10 = vpop.f32.mrb[61].mxu1  ;;  %v6838_v46 = vld [vmem:[#allocation7 + $0x524] ss:$16 sps:$4 sm:$0xff]  }
 0x34f   : > { %v6010_v43 = vadd.f32 %v6009_v10, %v6008_v44  ;;  %v6011_v45 = vpop.f32.mrb[62].mxu1  ;;  %v1645_v19 = vpack.c.bf16 %v1564_v41, %v1563_v26  ;;  %v6844_v26 = vld [vmem:[#allocation7 + $0x544] ss:$16 sps:$4 sm:$0xff]   ;;  %v6847_v41 = vld [vmem:[#allocation7 + $0x540] ss:$16 sps:$4 sm:$0xff]   ;;  %v6031_v10 = vpop.f32.mrb[65].mxu0 }
 0x350   : > { %v6012_v56 = vpop.f32.mrb[63].mxu1  ;;  %v6850_v44 = vld [vmem:[#allocation7 + $0x564] ss:$16 sps:$4 sm:$0xff]   ;;  %v8633_v16 = vadd.f32 %v6031_v10, %v6030_v5 }
 0x351   : > { %v1529_v31 = vadd.f32 %v6010_v43, %v9334_v50  ;;  %v6013_v49 = vadd.f32 %v6012_v56, %v6011_v45  ;;  %6138 = vmatprep.subr.bf16.mxu1 %v1645_v19  ;;  %v6033_v43 = vpop.f32.mrb[66].mxu0  ;;  %v6853_v56 = vld [vmem:[#allocation7 + $0x560] ss:$16 sps:$4 sm:$0xff]   ;;  %v6856_v50 = vld [vmem:[#allocation7 + $0x584] ss:$16 sps:$4 sm:$0xff]  }
 0x352   : > { %6139 = vmatpush3.bf16.msra.mxu1 %v8602_v2  ;;  %v6803_v2 = vld [vmem:[#allocation7 + $0x464] ss:$16 sps:$4 sm:$0xff]   ;;  %v6034_v45 = vpop.f32.mrb[67].mxu0 }
 0x353   : > { %v1532_v38 = vadd.f32 %v6013_v49, %v9335_v28  ;;  %v1565_v7 = vmax.f32 %v1529_v31, 0.0  ;;  %v8635_v19 = vadd.f32 %v6034_v45, %v6033_v43  ;;  %v6036_v31 = vpop.f32.mrb[68].mxu0 }
 0x354   : > { %v6037_v49 = vpop.f32.mrb[69].mxu0 }
 0x355   : > { %v1566_v55 = vmax.f32 %v1532_v38, 0.0  ;;  %v6039_v28 = vpop.f32.mrb[70].mxu0 }
 0x356   : > { %v6040_v38 = vpop.f32.mrb[71].mxu0 }
 0x357   : > { %v1646_v21 = vpack.c.bf16 %v1566_v55, %v1565_v7  ;;  %v6859_v7 = vld [vmem:[#allocation7 + $0x580] ss:$16 sps:$4 sm:$0xff]   ;;  %v8637_v55 = vadd.f32 %v6037_v49, %v6036_v31 }
 0x359   : > { %6140 = vmatprep.subr.bf16.mxu1 %v1646_v21  ;;  %v8639_v21 = vadd.f32 %v6040_v38, %v6039_v28 }
 0x35a   : > { %6141 = vmatpush3.bf16.msra.mxu1 %v8606_v53  ;;  %v6817_v53 = vld [vmem:[#allocation7 + $0x4a0] ss:$16 sps:$4 sm:$0xff]  }
 0x35b   : > { %3922 = vmatprep.subr.bf16.mxu1 %v9336_v58 }
 0x35d   : > { %2193 = vmatmul.mubr.bf16.vlgmr.msra.gmra.mrb[64].mxu1 %v6785_v36  ;;  %v6862_v36 = vld [vmem:[#allocation7 + $0x5a4] ss:$16 sps:$4 sm:$0xff]  }
 0x35e   : > { %2200 = vmatprep.mubr.bf16.mxu1 %v6791_v11 }
 0x365   : > { %2201 = vmatmul.mubr.bf16.gmra.mrb[68].mxu1 %v6793_v3 }
 0x366   : > { %2208 = vmatprep.mubr.bf16.mxu1 %v6797_v54 }
 0x36d   : > { %2209 = vmatmul.mubr.bf16.gmra.mrb[72].mxu1 %v6799_v30 }
 0x36e   : > { %2216 = vmatprep.mubr.bf16.mxu1 %v6803_v2  ;;  %v6865_v2 = vld [vmem:[#allocation7 + $0x5a0] ss:$16 sps:$4 sm:$0xff]  }
 0x375   : > { %2217 = vmatmul.mubr.bf16.gmra.mrb[76].mxu1 %v6805_v47 }
 0x376   : > { %2224 = vmatprep.mubr.bf16.mxu1 %v6809_v59 }
 0x37d   : > { %2225 = vmatmul.mubr.bf16.gmra.mrb[80].mxu1 %v6811_v60  ;;  %v6868_v60 = vld [vmem:[#allocation7 + $0x5c4] ss:$16 sps:$4 sm:$0xff]  }
 0x37e   : > { %2232 = vmatprep.mubr.bf16.mxu1 %v6815_v32 }
 0x385   : > { %2233 = vmatmul.mubr.bf16.gmra.mrb[84].mxu1 %v6817_v53 }
 0x386   : > { %2240 = vmatprep.mubr.bf16.mxu1 %v6821_v57 }
 0x38d   : > { %2241 = vmatmul.mubr.bf16.gmra.mrb[88].mxu1 %v6823_v6 }
 0x38e   : > { %2248 = vmatprep.mubr.bf16.mxu1 %v6827_v15  ;;  %v6871_v15 = vld [vmem:[#allocation7 + $0x5c0] ss:$16 sps:$4 sm:$0xff]  }
 0x395   : > { %2249 = vmatmul.mubr.bf16.gmra.mrb[92].mxu1 %v6829_v39 }
 0x396   : > { %2256 = vmatprep.mubr.bf16.mxu1 %v6833_v35 }
 0x39d   : > { %2257 = vmatmul.mubr.bf16.gmra.mrb[96].mxu1 %v6835_v20  ;;  %v6874_v20 = vld [vmem:[#allocation7 + $0x5e4] ss:$16 sps:$4 sm:$0xff]  }
 0x39e   : > { %2264 = vmatprep.mubr.bf16.mxu1 %v6838_v46 }
 0x3a5   : > { %2265 = vmatmul.mubr.bf16.gmra.mrb[100].mxu1 %v6841_v37 }
 0x3a6   : > { %2272 = vmatprep.mubr.bf16.mxu1 %v6844_v26 }
 0x3ad   : > { %2273 = vmatmul.mubr.bf16.gmra.mrb[104].mxu1 %v6847_v41 }
 0x3ae   : > { %2280 = vmatprep.mubr.bf16.mxu1 %v6850_v44  ;;  %v6877_v44 = vld [vmem:[#allocation7 + $0x5e0] ss:$16 sps:$4 sm:$0xff]  }
 0x3af   : > { %v6042_v11 = vpop.f32.mrb[72].mxu0 }
 0x3b0   : > { %v6043_v3 = vpop.f32.mrb[73].mxu0 }
 0x3b1   : > { %v6045_v54 = vpop.f32.mrb[74].mxu0  ;;  %v8641_v47 = vadd.f32 %v6043_v3, %v6042_v11 }
 0x3b2   : > { %v6046_v30 = vpop.f32.mrb[75].mxu0 }
 0x3b3   : > { %v8643_v59 = vadd.f32 %v6046_v30, %v6045_v54 }
 0x3b5   : > { %2281 = vmatmul.mubr.bf16.gmra.mrb[108].mxu1 %v6853_v56 }
 0x3b6   : > { %2288 = vmatprep.mubr.bf16.mxu1 %v6856_v50 }
 0x3b7   : > { %v6048_v32 = vpop.f32.mrb[76].mxu0 }
 0x3b8   : > { %v6049_v53 = vpop.f32.mrb[77].mxu0 }
 0x3b9   : > { %v6051_v57 = vpop.f32.mrb[78].mxu0  ;;  %v8645_v39 = vadd.f32 %v6049_v53, %v6048_v32 }
 0x3ba   : > { %v6052_v6 = vpop.f32.mrb[79].mxu0 }
 0x3bb   : > { %v8647_v35 = vadd.f32 %v6052_v6, %v6051_v57 }
 0x3bd   : > { %2289 = vmatmul.mubr.bf16.gmra.mrb[112].mxu1 %v6859_v7 }
 0x3be   : > { %2296 = vmatprep.mubr.bf16.mxu1 %v6862_v36 }
 0x3bf   : > { %v6054_v46 = vpop.f32.mrb[80].mxu0 }
 0x3c0   : > { %v6055_v37 = vpop.f32.mrb[81].mxu0 }
 0x3c1   : > { %v6057_v26 = vpop.f32.mrb[82].mxu0  ;;  %v8649_v5 = vadd.f32 %v6055_v37, %v6054_v46 }
 0x3c2   : > { %v6058_v41 = vpop.f32.mrb[83].mxu0 }
 0x3c3   : > { %v8651_v10 = vadd.f32 %v6058_v41, %v6057_v26 }
 0x3c5   : > { %2297 = vmatmul.mubr.bf16.gmra.mrb[116].mxu1 %v6865_v2 }
 0x3c6   : > { %2304 = vmatprep.mubr.bf16.mxu1 %v6868_v60 }
 0x3c7   : > { %v6060_v43 = vpop.f32.mrb[84].mxu0 }
 0x3c8   : > { %v6061_v45 = vpop.f32.mrb[85].mxu0 }
 0x3c9   : > { %v6063_v56 = vpop.f32.mrb[86].mxu0  ;;  %v8653_v31 = vadd.f32 %v6061_v45, %v6060_v43 }
 0x3ca   : > { %v6064_v50 = vpop.f32.mrb[87].mxu0 }
 0x3cb   : > { %v8655_v49 = vadd.f32 %v6064_v50, %v6063_v56 }
 0x3cd   : > { %2305 = vmatmul.mubr.bf16.gmra.mrb[120].mxu1 %v6871_v15 }
 0x3ce   : > { %2312 = vmatprep.mubr.bf16.mxu1 %v6874_v20 }
 0x3cf   : > { %v6066_v28 = vpop.f32.mrb[88].mxu0 }
 0x3d0   : > { %v6067_v38 = vpop.f32.mrb[89].mxu0 }
 0x3d1   : > { %v6069_v7 = vpop.f32.mrb[90].mxu0  ;;  %v8657_v11 = vadd.f32 %v6067_v38, %v6066_v28 }
 0x3d2   : > { %v6070_v36 = vpop.f32.mrb[91].mxu0 }
 0x3d3   : > { %v8659_v3 = vadd.f32 %v6070_v36, %v6069_v7 }
 0x3d5   : > { %2313 = vmatmul.mubr.bf16.gmra.mrb[124].mxu1 %v6877_v44 }
 0x3d7   : > { %v6072_v54 = vpop.f32.mrb[92].mxu0 }
 0x3d8   : > { %v6073_v30 = vpop.f32.mrb[93].mxu0 }
 0x3d9   : > { %v6075_v2 = vpop.f32.mrb[94].mxu0  ;;  %v8661_v32 = vadd.f32 %v6073_v30, %v6072_v54 }
 0x3da   : > { %v6076_v60 = vpop.f32.mrb[95].mxu0 }
 0x3db   : > { %v8663_v53 = vadd.f32 %v6076_v60, %v6075_v2 }
 0x3df   : > { %v6078_v57 = vpop.f32.mrb[96].mxu0 }
 0x3e0   : > { %v6079_v6 = vpop.f32.mrb[97].mxu0 }
 0x3e1   : > { %v6081_v15 = vpop.f32.mrb[98].mxu0  ;;  %v8665_v46 = vadd.f32 %v6079_v6, %v6078_v57 }
 0x3e2   : > { %v6082_v20 = vpop.f32.mrb[99].mxu0 }
 0x3e3   : > { %v8667_v37 = vadd.f32 %v6082_v20, %v6081_v15 }
 0x3e7   : > { %v6084_v26 = vpop.f32.mrb[100].mxu0 }
 0x3e8   : > { %v6085_v41 = vpop.f32.mrb[101].mxu0 }
 0x3e9   : > { %v6087_v44 = vpop.f32.mrb[102].mxu0  ;;  %v8669_v45 = vadd.f32 %v6085_v41, %v6084_v26 }
 0x3ea   : > { %v6088_v43 = vpop.f32.mrb[103].mxu0 }
 0x3eb   : > { %v8671_v56 = vadd.f32 %v6088_v43, %v6087_v44 }
 0x3ef   : > { %v6090_v50 = vpop.f32.mrb[104].mxu0 }
 0x3f0   : > { %v6091_v28 = vpop.f32.mrb[105].mxu0 }
 0x3f1   : > { %v6093_v38 = vpop.f32.mrb[106].mxu0  ;;  %v8673_v36 = vadd.f32 %v6091_v28, %v6090_v50 }
 0x3f2   : > { %v6094_v7 = vpop.f32.mrb[107].mxu0 }
 0x3f3   : > { %v8675_v54 = vadd.f32 %v6094_v7, %v6093_v38 }
 0x3f7   : > { %v6096_v30 = vpop.f32.mrb[108].mxu0 }
 0x3f8   : > { %v6097_v2 = vpop.f32.mrb[109].mxu0 }
 0x3f9   : > { %v6099_v60 = vpop.f32.mrb[110].mxu0  ;;  %v8677_v6 = vadd.f32 %v6097_v2, %v6096_v30 }
 0x3fa   : > { %v6100_v57 = vpop.f32.mrb[111].mxu0 }
 0x3fb   : > { %v8679_v15 = vadd.f32 %v6100_v57, %v6099_v60 }
 0x3ff   : > { %v6102_v20 = vpop.f32.mrb[112].mxu0 }
 0x400   : > { %v6103_v26 = vpop.f32.mrb[113].mxu0 }
 0x401   : > { %v6105_v41 = vpop.f32.mrb[114].mxu0  ;;  %v8681_v43 = vadd.f32 %v6103_v26, %v6102_v20 }
 0x402   : > { %v6106_v44 = vpop.f32.mrb[115].mxu0 }
 0x403   : > { %v8683_v13 = vadd.f32 %v6106_v44, %v6105_v41 }
 0x407   : > { %v6108_v50 = vpop.f32.mrb[116].mxu0 }
 0x408   : > { %v6109_v28 = vpop.f32.mrb[117].mxu0 }
 0x409   : > { %v6111_v38 = vpop.f32.mrb[118].mxu0  ;;  %v8685_v23 = vadd.f32 %v6109_v28, %v6108_v50 }
 0x40a   : > { %v6112_v7 = vpop.f32.mrb[119].mxu0 }
 0x40b   : > { %v8687_v58 = vadd.f32 %v6112_v7, %v6111_v38 }
 0x40f   : > { %v6114_v30 = vpop.f32.mrb[120].mxu0 }
 0x410   : > { %v6115_v2 = vpop.f32.mrb[121].mxu0 }
 0x411   : > { %v6117_v60 = vpop.f32.mrb[122].mxu0  ;;  %v8689_v22 = vadd.f32 %v6115_v2, %v6114_v30 }
 0x412   : > { %v6118_v57 = vpop.f32.mrb[123].mxu0 }
 0x413   : > { %9337 = vst [vmem:[#allocation14_spill] sm:$0xff] %v8689_v22  ;;  %v8691_v0 = vadd.f32 %v6118_v57, %v6117_v60  ;;  %v6880_v60 = vld [vmem:[#allocation7 + $0x804] ss:$16 sps:$4 sm:$0xff]   ;;  %v9340_v57 = vld [vmem:[#allocation29_spill] sm:$0xff] }
 0x414   : > { %2977 = vmatprep.mubr.bf16.mxu0 %v6880_v60 }
 0x415   : > { %9338 = vst [vmem:[#allocation15_spill] sm:$0xff] %v8691_v0 }
 0x417   : > { %v6120_v20 = vpop.f32.mrb[124].mxu0 }
 0x418   : > { %v6121_v26 = vpop.f32.mrb[125].mxu0 }
 0x419   : > { %v6123_v41 = vpop.f32.mrb[126].mxu0  ;;  %v8693_v51 = vadd.f32 %v6121_v26, %v6120_v20 }
 0x41a   : > { %v6124_v44 = vpop.f32.mrb[127].mxu0 }
 0x41b   : > { %v8695_v62 = vadd.f32 %v6124_v44, %v6123_v41 }
 0x41d   : > { %9339 = vst [vmem:[#allocation16_spill] sm:$0xff] %v8695_v62 }
 0x430   : > { %v6142_v50 = vpop.f32.mrb[64].mxu1 }
 0x431   : > { %v6143_v28 = vpop.f32.mrb[65].mxu1 }
 0x432   : > { %v6144_v38 = vadd.f32 %v6143_v28, %v6142_v50  ;;  %v6145_v7 = vpop.f32.mrb[66].mxu1 }
 0x433   : > { %v6146_v1 = vpop.f32.mrb[67].mxu1 }
 0x434   : > { %v2195_v48 = vadd.f32 %v6144_v38, %v8633_v16  ;;  %v6147_v24 = vadd.f32 %v6146_v1, %v6145_v7 }
 0x436   : > { %v2481_v30 = vadd.f32 %v8174_v9, %v2195_v48  ;;  %v2198_v2 = vadd.f32 %v6147_v24, %v8635_v19 }
 0x438   : > { %v2482_v0 = vadd.f32 %v9340_v57, %v2198_v2  ;;  %v6148_v22 = vpop.f32.mrb[68].mxu1  ;;  %v2513_v26 = vmax.f32 %v2481_v30, 0.0 }
 0x439   : > { %v6149_v20 = vpop.f32.mrb[69].mxu1 }
 0x43a   : > { %v2514_v41 = vmax.f32 %v2482_v0, 0.0  ;;  %v6150_v44 = vadd.f32 %v6149_v20, %v6148_v22  ;;  %v6151_v62 = vpop.f32.mrb[70].mxu1 }
 0x43b   : > { %v6152_v50 = vpop.f32.mrb[71].mxu1 }
 0x43c   : > { %v8701_v28 = vpack.c.bf16 %v2514_v41, %v2513_v26  ;;  %v2203_v16 = vadd.f32 %v6150_v44, %v8637_v55  ;;  %v6153_v1 = vadd.f32 %v6152_v50, %v6151_v62  ;;  %v9341_v55 = vld [vmem:[#allocation34_spill] sm:$0xff] }
 0x43e   : > { %v2483_v9 = vadd.f32 %v8206_v40, %v2203_v16  ;;  %v2206_v24 = vadd.f32 %v6153_v1, %v8639_v21 }
 0x440   : > { %v2484_v48 = vadd.f32 %v8214_v8, %v2206_v24  ;;  %v6154_v19 = vpop.f32.mrb[72].mxu1  ;;  %v2515_v7 = vmax.f32 %v2483_v9, 0.0 }
 0x441   : > { %v6155_v38 = vpop.f32.mrb[73].mxu1 }
 0x442   : > { %v2516_v2 = vmax.f32 %v2484_v48, 0.0  ;;  %v6156_v30 = vadd.f32 %v6155_v38, %v6154_v19  ;;  %v6157_v0 = vpop.f32.mrb[74].mxu1 }
 0x443   : > { %v6158_v22 = vpop.f32.mrb[75].mxu1 }
 0x444   : > { %v8707_v60 = vpack.c.bf16 %v2516_v2, %v2515_v7  ;;  %v2211_v57 = vadd.f32 %v6156_v30, %v8641_v47  ;;  %v6159_v20 = vadd.f32 %v6158_v22, %v6157_v0 }
 0x446   : > { %v2485_v62 = vadd.f32 %v8238_v34, %v2211_v57  ;;  %v2214_v40 = vadd.f32 %v6159_v20, %v8643_v59 }
 0x448   : > { %v2486_v21 = vadd.f32 %v9341_v55, %v2214_v40  ;;  %v6160_v26 = vpop.f32.mrb[76].mxu1  ;;  %v2517_v41 = vmax.f32 %v2485_v62, 0.0 }
 0x449   : > { %v6161_v8 = vpop.f32.mrb[77].mxu1 }
 0x44a   : > { %v2518_v44 = vmax.f32 %v2486_v21, 0.0  ;;  %v6162_v50 = vadd.f32 %v6161_v8, %v6160_v26  ;;  %v6163_v16 = vpop.f32.mrb[78].mxu1 }
 0x44b   : > { %v6164_v1 = vpop.f32.mrb[79].mxu1 }
 0x44c   : > { %v8713_v9 = vpack.c.bf16 %v2518_v44, %v2517_v41  ;;  %v2219_v24 = vadd.f32 %v6162_v50, %v8645_v39  ;;  %v6165_v48 = vadd.f32 %v6164_v1, %v6163_v16 }
 0x44e   : > { %v2487_v47 = vadd.f32 %v8270_v61, %v2219_v24  ;;  %v2222_v34 = vadd.f32 %v6165_v48, %v8647_v35 }
 0x450   : > { %v2488_v59 = vadd.f32 %v8278_v33, %v2222_v34  ;;  %v6166_v19 = vpop.f32.mrb[80].mxu1  ;;  %v2519_v7 = vmax.f32 %v2487_v47, 0.0 }
 0x451   : > { %v6167_v38 = vpop.f32.mrb[81].mxu1 }
 0x452   : > { %v2520_v2 = vmax.f32 %v2488_v59, 0.0  ;;  %v6168_v30 = vadd.f32 %v6167_v38, %v6166_v19  ;;  %v6169_v0 = vpop.f32.mrb[82].mxu1 }
 0x453   : > { %v6170_v22 = vpop.f32.mrb[83].mxu1 }
 0x454   : > { %v8719_v57 = vpack.c.bf16 %v2520_v2, %v2519_v7  ;;  %v2227_v20 = vadd.f32 %v6168_v30, %v8649_v5  ;;  %v6171_v62 = vadd.f32 %v6170_v22, %v6169_v0 }
 0x456   : > { %v2489_v39 = vadd.f32 %v8300_v27, %v2227_v20  ;;  %v2230_v61 = vadd.f32 %v6171_v62, %v8651_v10 }
 0x458   : > { %v2490_v35 = vadd.f32 %v8308_v63, %v2230_v61  ;;  %v6172_v40 = vpop.f32.mrb[84].mxu1  ;;  %v2521_v55 = vmax.f32 %v2489_v39, 0.0 }
 0x459   : > { %v6173_v33 = vpop.f32.mrb[85].mxu1 }
 0x45a   : > { %v2522_v21 = vmax.f32 %v2490_v35, 0.0  ;;  %v6174_v26 = vadd.f32 %v6173_v33, %v6172_v40  ;;  %v6175_v8 = vpop.f32.mrb[86].mxu1 }
 0x45b   : > { %v6176_v41 = vpop.f32.mrb[87].mxu1 }
 0x45c   : > { %v8725_v44 = vpack.c.bf16 %v2522_v21, %v2521_v55  ;;  %v2235_v50 = vadd.f32 %v6174_v26, %v8653_v31  ;;  %v6177_v16 = vadd.f32 %v6176_v41, %v6175_v8 }
 0x45e   : > { %v2491_v5 = vadd.f32 %v8332_v25, %v2235_v50  ;;  %v2238_v27 = vadd.f32 %v6177_v16, %v8655_v49 }
 0x460   : > { %v2492_v10 = vadd.f32 %v8340_v4, %v2238_v27  ;;  %v6178_v1 = vpop.f32.mrb[88].mxu1  ;;  %v2523_v24 = vmax.f32 %v2491_v5, 0.0  ;;  %v9343_v27 = vld [vmem:[#allocation28_spill] sm:$0xff] }
 0x461   : > { %v6179_v63 = vpop.f32.mrb[89].mxu1 }
 0x462   : > { %v2524_v48 = vmax.f32 %v2492_v10, 0.0  ;;  %v6180_v47 = vadd.f32 %v6179_v63, %v6178_v1  ;;  %v6181_v34 = vpop.f32.mrb[90].mxu1 }
 0x463   : > { %v6182_v59 = vpop.f32.mrb[91].mxu1 }
 0x464   : > { %v8731_v19 = vpack.c.bf16 %v2524_v48, %v2523_v24  ;;  %v2243_v38 = vadd.f32 %v6180_v47, %v8657_v11  ;;  %v6183_v7 = vadd.f32 %v6182_v59, %v6181_v34 }
 0x466   : > { %v2493_v31 = vadd.f32 %v8361_v14, %v2243_v38  ;;  %v2246_v25 = vadd.f32 %v6183_v7, %v8659_v3  ;;  %v9344_v7 = vld [vmem:[#allocation30_spill] sm:$0xff] }
 0x468   : > { %v2494_v49 = vadd.f32 %v8369_v18, %v2246_v25  ;;  %v6184_v2 = vpop.f32.mrb[92].mxu1  ;;  %v2525_v30 = vmax.f32 %v2493_v31, 0.0 }
 0x469   : > { %v6185_v4 = vpop.f32.mrb[93].mxu1 }
 0x46a   : > { %v2526_v0 = vmax.f32 %v2494_v49, 0.0  ;;  %v6186_v22 = vadd.f32 %v6185_v4, %v6184_v2  ;;  %v6187_v20 = vpop.f32.mrb[94].mxu1 }
 0x46b   : > { %v6188_v62 = vpop.f32.mrb[95].mxu1 }
 0x46c   : > { %v8737_v39 = vpack.c.bf16 %v2526_v0, %v2525_v30  ;;  %v2251_v61 = vadd.f32 %v6186_v22, %v8661_v32  ;;  %v6189_v35 = vadd.f32 %v6188_v62, %v6187_v20  ;;  %v9342_v32 = vld [vmem:[#allocation27_spill] sm:$0xff] }
 0x46e   : > { %v2495_v11 = vadd.f32 %v8393_v17, %v2251_v61  ;;  %v2254_v14 = vadd.f32 %v6189_v35, %v8663_v53  ;;  %v9346_v35 = vld [vmem:[#allocation32_spill] sm:$0xff] }
 0x470   : > { %v2496_v3 = vadd.f32 %v8401_v29, %v2254_v14  ;;  %v6190_v40 = vpop.f32.mrb[96].mxu1  ;;  %v2527_v33 = vmax.f32 %v2495_v11, 0.0 }
 0x471   : > { %v6191_v18 = vpop.f32.mrb[97].mxu1 }
 0x472   : > { %v2528_v55 = vmax.f32 %v2496_v3, 0.0  ;;  %v6192_v21 = vadd.f32 %v6191_v18, %v6190_v40  ;;  %v6193_v26 = vpop.f32.mrb[98].mxu1 }
 0x473   : > { %v6194_v8 = vpop.f32.mrb[99].mxu1 }
 0x474   : > { %v8743_v41 = vpack.c.bf16 %v2528_v55, %v2527_v33  ;;  %v2259_v50 = vadd.f32 %v6192_v21, %v8665_v46  ;;  %v6195_v16 = vadd.f32 %v6194_v8, %v6193_v26 }
 0x476   : > { %v2497_v5 = vadd.f32 %v9342_v32, %v2259_v50  ;;  %v2262_v17 = vadd.f32 %v6195_v16, %v8667_v37  ;;  %v9345_v37 = vld [vmem:[#allocation31_spill] sm:$0xff] }
 0x477   : > { %v9348_v16 = vld [vmem:[#allocation35_spill] sm:$0xff] }
 0x478   : > { %v2498_v53 = vadd.f32 %v9343_v27, %v2262_v17  ;;  %v6196_v10 = vpop.f32.mrb[100].mxu1  ;;  %v2529_v1 = vmax.f32 %v2497_v5, 0.0 }
 0x479   : > { %v6197_v29 = vpop.f32.mrb[101].mxu1 }
 0x47a   : > { %v2530_v63 = vmax.f32 %v2498_v53, 0.0  ;;  %v6198_v24 = vadd.f32 %v6197_v29, %v6196_v10  ;;  %v6199_v48 = vpop.f32.mrb[102].mxu1 }
 0x47b   : > { %v6200_v47 = vpop.f32.mrb[103].mxu1 }
 0x47c   : > { %v2267_v34 = vadd.f32 %v6198_v24, %v8669_v45  ;;  %v6201_v59 = vadd.f32 %v6200_v47, %v6199_v48  ;;  %v2585_v38 = vpack.c.bf16 %v2530_v63, %v2529_v1 }
 0x47e   : > { %v2499_v46 = vadd.f32 %v9344_v7, %v2267_v34  ;;  %v2270_v31 = vadd.f32 %v6201_v59, %v8671_v56  ;;  %6238 = vmatprep.subr.bf16.mxu0 %v2585_v38 }
 0x47f   : > { %6239 = vmatpush3.bf16.msra.mxu0 %v8701_v28  ;;  %v9347_v28 = vld [vmem:[#allocation33_spill] sm:$0xff] }
 0x480   : > { %v2500_v25 = vadd.f32 %v9345_v37, %v2270_v31  ;;  %v6202_v49 = vpop.f32.mrb[104].mxu1  ;;  %v2531_v4 = vmax.f32 %v2499_v46, 0.0 }
 0x481   : > { %v6203_v2 = vpop.f32.mrb[105].mxu1 }
 0x482   : > { %v2532_v30 = vmax.f32 %v2500_v25, 0.0  ;;  %v6204_v0 = vadd.f32 %v6203_v2, %v6202_v49  ;;  %v6205_v22 = vpop.f32.mrb[106].mxu1 }
 0x483   : > { %v6206_v20 = vpop.f32.mrb[107].mxu1 }
 0x484   : > { %v2275_v45 = vadd.f32 %v6204_v0, %v8673_v36  ;;  %v6207_v62 = vadd.f32 %v6206_v20, %v6205_v22  ;;  %v2586_v61 = vpack.c.bf16 %v2532_v30, %v2531_v4 }
 0x486   : > { %v2501_v11 = vadd.f32 %v9346_v35, %v2275_v45  ;;  %v2278_v56 = vadd.f32 %v6207_v62, %v8675_v54  ;;  %6240 = vmatprep.subr.bf16.mxu0 %v2586_v61  ;;  %v9351_v61 = vld [vmem:[#allocation14_spill] sm:$0xff] }
 0x487   : > { %6241 = vmatpush3.bf16.msra.mxu0 %v8707_v60  ;;  %v9349_v60 = vld [vmem:[#allocation36_spill] sm:$0xff] }
 0x488   : > { %v2502_v14 = vadd.f32 %v9347_v28, %v2278_v56  ;;  %v6208_v3 = vpop.f32.mrb[108].mxu1  ;;  %v2533_v18 = vmax.f32 %v2501_v11, 0.0  ;;  %v9352_v56 = vld [vmem:[#allocation38_spill] sm:$0xff]  ;;  %v9353_v28 = vld [vmem:[#allocation15_spill] sm:$0xff] }
 0x489   : > { %v6209_v40 = vpop.f32.mrb[109].mxu1 }
 0x48a   : > { %v2534_v33 = vmax.f32 %v2502_v14, 0.0  ;;  %v6210_v55 = vadd.f32 %v6209_v40, %v6208_v3  ;;  %v6211_v21 = vpop.f32.mrb[110].mxu1 }
 0x48b   : > { %v6212_v26 = vpop.f32.mrb[111].mxu1 }
 0x48c   : > { %v2283_v36 = vadd.f32 %v6210_v55, %v8677_v6  ;;  %v6213_v8 = vadd.f32 %v6212_v26, %v6211_v21  ;;  %v2587_v50 = vpack.c.bf16 %v2534_v33, %v2533_v18 }
 0x48e   : > { %v2503_v32 = vadd.f32 %v9348_v16, %v2283_v36  ;;  %v2286_v54 = vadd.f32 %v6213_v8, %v8679_v15  ;;  %6242 = vmatprep.subr.bf16.mxu0 %v2587_v50  ;;  %v9355_v50 = vld [vmem:[#allocation40_spill] sm:$0xff] }
 0x48f   : > { %6243 = vmatpush3.bf16.msra.mxu0 %v8713_v9  ;;  %v9350_v9 = vld [vmem:[#allocation37_spill] sm:$0xff] }
 0x490   : > { %v2504_v5 = vadd.f32 %v9349_v60, %v2286_v54  ;;  %v6214_v17 = vpop.f32.mrb[112].mxu1  ;;  %v2535_v53 = vmax.f32 %v2503_v32, 0.0  ;;  %v9356_v32 = vld [vmem:[#allocation16_spill] sm:$0xff] }
 0x491   : > { %v6215_v27 = vpop.f32.mrb[113].mxu1 }
 0x492   : > { %v2536_v10 = vmax.f32 %v2504_v5, 0.0  ;;  %v6216_v29 = vadd.f32 %v6215_v27, %v6214_v17  ;;  %v6217_v1 = vpop.f32.mrb[114].mxu1 }
 0x493   : > { %v6218_v63 = vpop.f32.mrb[115].mxu1 }
 0x494   : > { %v2291_v6 = vadd.f32 %v6216_v29, %v8681_v43  ;;  %v6219_v24 = vadd.f32 %v6218_v63, %v6217_v1  ;;  %v2588_v48 = vpack.c.bf16 %v2536_v10, %v2535_v53  ;;  %v6878_v53 = vld [vmem:[#allocation7 + $0x800] ss:$16 sps:$4 sm:$0xff]   ;;  %v6881_v10 = vld [vmem:[#allocation7 + $0x824] ss:$16 sps:$4 sm:$0xff]  }
 0x495   : > { %v6884_v29 = vld [vmem:[#allocation7 + $0x844] ss:$16 sps:$4 sm:$0xff]   ;;  %v6886_v1 = vld [vmem:[#allocation7 + $0x840] ss:$16 sps:$4 sm:$0xff]  }
 0x496   : > { %v2505_v47 = vadd.f32 %v8289_v12, %v2291_v6  ;;  %v2294_v15 = vadd.f32 %v6219_v24, %v8683_v13  ;;  %6244 = vmatprep.subr.bf16.mxu0 %v2588_v48  ;;  %v6887_v63 = vld [vmem:[#allocation7 + $0x864] ss:$16 sps:$4 sm:$0xff]   ;;  %v6892_v24 = vld [vmem:[#allocation7 + $0x880] ss:$16 sps:$4 sm:$0xff]  }
 0x497   : > { %6245 = vmatpush3.bf16.msra.mxu0 %v8719_v57  ;;  %v6890_v6 = vld [vmem:[#allocation7 + $0x884] ss:$16 sps:$4 sm:$0xff]  }
 0x498   : > { %v2506_v34 = vadd.f32 %v9350_v9, %v2294_v15  ;;  %v6220_v59 = vpop.f32.mrb[116].mxu1  ;;  %v2537_v7 = vmax.f32 %v2505_v47, 0.0  ;;  %v6893_v48 = vld [vmem:[#allocation7 + $0x8a4] ss:$16 sps:$4 sm:$0xff]   ;;  %v6898_v15 = vld [vmem:[#allocation7 + $0x8c0] ss:$16 sps:$4 sm:$0xff]  }
 0x499   : > { %v6221_v38 = vpop.f32.mrb[117].mxu1  ;;  %v6896_v47 = vld [vmem:[#allocation7 + $0x8c4] ss:$16 sps:$4 sm:$0xff]  }
 0x49a   : > { %v2538_v46 = vmax.f32 %v2506_v34, 0.0  ;;  %v6222_v31 = vadd.f32 %v6221_v38, %v6220_v59  ;;  %v6223_v37 = vpop.f32.mrb[118].mxu1  ;;  %v6899_v9 = vld [vmem:[#allocation7 + $0x8e4] ss:$16 sps:$4 sm:$0xff]   ;;  %v6901_v34 = vld [vmem:[#allocation7 + $0x8e0] ss:$16 sps:$4 sm:$0xff]  }
 0x49b   : > { %v6224_v25 = vpop.f32.mrb[119].mxu1  ;;  %v6902_v59 = vld [vmem:[#allocation7 + $0x904] ss:$16 sps:$4 sm:$0xff]   ;;  %v6904_v38 = vld [vmem:[#allocation7 + $0x900] ss:$16 sps:$4 sm:$0xff]  }
 0x49c   : > { %v2299_v43 = vadd.f32 %v6222_v31, %v8685_v23  ;;  %v6225_v49 = vadd.f32 %v6224_v25, %v6223_v37  ;;  %v2589_v2 = vpack.c.bf16 %v2538_v46, %v2537_v7  ;;  %v6905_v7 = vld [vmem:[#allocation7 + $0x924] ss:$16 sps:$4 sm:$0xff]   ;;  %v6907_v46 = vld [vmem:[#allocation7 + $0x920] ss:$16 sps:$4 sm:$0xff]  }
 0x49d   : > { %v6908_v31 = vld [vmem:[#allocation7 + $0x944] ss:$16 sps:$4 sm:$0xff]   ;;  %v6910_v37 = vld [vmem:[#allocation7 + $0x940] ss:$16 sps:$4 sm:$0xff]  }
 0x49e   : > { %v2507_v12 = vadd.f32 %v8319_v42, %v2299_v43  ;;  %v2302_v13 = vadd.f32 %v6225_v49, %v8687_v58  ;;  %6246 = vmatprep.subr.bf16.mxu0 %v2589_v2  ;;  %v6911_v25 = vld [vmem:[#allocation7 + $0x964] ss:$16 sps:$4 sm:$0xff]   ;;  %v6913_v43 = vld [vmem:[#allocation7 + $0x960] ss:$16 sps:$4 sm:$0xff]  }
 0x49f   : > { %6247 = vmatpush3.bf16.msra.mxu0 %v8725_v44  ;;  %v9354_v44 = vld [vmem:[#allocation39_spill] sm:$0xff]  ;;  %v6914_v49 = vld [vmem:[#allocation7 + $0x984] ss:$16 sps:$4 sm:$0xff]   ;;  %v6916_v2 = vld [vmem:[#allocation7 + $0x980] ss:$16 sps:$4 sm:$0xff]  }
 0x4a0   : > { %v2508_v57 = vadd.f32 %v8321_v52, %v2302_v13  ;;  %v6226_v4 = vpop.f32.mrb[120].mxu1  ;;  %v2539_v0 = vmax.f32 %v2507_v12, 0.0  ;;  %v6917_v12 = vld [vmem:[#allocation7 + $0x9a4] ss:$16 sps:$4 sm:$0xff]   ;;  %v6919_v13 = vld [vmem:[#allocation7 + $0x9a0] ss:$16 sps:$4 sm:$0xff]  }
 0x4a1   : > { %v6227_v30 = vpop.f32.mrb[121].mxu1 }
 0x4a2   : > { %v2540_v22 = vmax.f32 %v2508_v57, 0.0  ;;  %v6228_v20 = vadd.f32 %v6227_v30, %v6226_v4  ;;  %v6229_v45 = vpop.f32.mrb[122].mxu1  ;;  %v6920_v57 = vld [vmem:[#allocation7 + $0x9c4] ss:$16 sps:$4 sm:$0xff]   ;;  %v6922_v4 = vld [vmem:[#allocation7 + $0x9c0] ss:$16 sps:$4 sm:$0xff]  }
 0x4a3   : > { %v6230_v62 = vpop.f32.mrb[123].mxu1  ;;  %v6923_v30 = vld [vmem:[#allocation7 + $0x9e4] ss:$16 sps:$4 sm:$0xff]  }
 0x4a4   : > { %v2307_v23 = vadd.f32 %v6228_v20, %v9351_v61  ;;  %v6231_v35 = vadd.f32 %v6230_v62, %v6229_v45  ;;  %v2590_v11 = vpack.c.bf16 %v2540_v22, %v2539_v0  ;;  %v6925_v0 = vld [vmem:[#allocation7 + $0x9e0] ss:$16 sps:$4 sm:$0xff]  }
 0x4a6   : > { %v2509_v42 = vadd.f32 %v9352_v56, %v2307_v23  ;;  %v2310_v58 = vadd.f32 %v6231_v35, %v9353_v28  ;;  %6248 = vmatprep.subr.bf16.mxu0 %v2590_v11  ;;  %v9358_v23 = vld [vmem:[#allocation42_spill] sm:$0xff] }
 0x4a7   : > { %6249 = vmatpush3.bf16.msra.mxu0 %v8731_v19  ;;  %v9357_v19 = vld [vmem:[#allocation41_spill] sm:$0xff]  ;;  %v6928_v56 = vld [vmem:[#allocation7 + $0xa04] ss:$16 sps:$4 sm:$0xff]  }
 0x4a8   : > { %v2510_v52 = vadd.f32 %v9354_v44, %v2310_v58  ;;  %v6232_v14 = vpop.f32.mrb[124].mxu1  ;;  %v2541_v40 = vmax.f32 %v2509_v42, 0.0  ;;  %v9359_v42 = vld [vmem:[#allocation43_spill] sm:$0xff]  ;;  %3954 = vmatprep.mubr.bf16.mxu1 %v6928_v56  ;;  %v9369_v56 = vld [vmem:[#allocation52_spill] sm:$0xff] }
 0x4a9   : > { %v6233_v3 = vpop.f32.mrb[125].mxu1 }
 0x4aa   : > { %v2542_v18 = vmax.f32 %v2510_v52, 0.0  ;;  %v6234_v33 = vadd.f32 %v6233_v3, %v6232_v14  ;;  %v6235_v55 = vpop.f32.mrb[126].mxu1 }
 0x4ab   : > { %v6236_v21 = vpop.f32.mrb[127].mxu1 }
 0x4ac   : > { %v2315_v26 = vadd.f32 %v6234_v33, %v8693_v51  ;;  %v6237_v36 = vadd.f32 %v6236_v21, %v6235_v55  ;;  %v2591_v8 = vpack.c.bf16 %v2542_v18, %v2541_v40  ;;  %v6883_v51 = vld [vmem:[#allocation7 + $0x820] ss:$16 sps:$4 sm:$0xff]  }
 0x4ad   : > { %v9360_v55 = vld [vmem:[#allocation44_spill] sm:$0xff] }
 0x4ae   : > { %v2511_v16 = vadd.f32 %v9355_v50, %v2315_v26  ;;  %v2318_v54 = vadd.f32 %v6237_v36, %v9356_v32  ;;  %6250 = vmatprep.subr.bf16.mxu0 %v2591_v8  ;;  %v9361_v36 = vmov 0   ;;  %v9362_v8 = vld [vmem:[#allocation45_spill] sm:$0xff] }
 0x4af   : > { %6251 = vmatpush3.bf16.msra.mxu0 %v8737_v39  ;;  %v6889_v39 = vld [vmem:[#allocation7 + $0x860] ss:$16 sps:$4 sm:$0xff]  }
 0x4b0   : > { %v2512_v60 = vadd.f32 %v9357_v19, %v2318_v54  ;;  %v2543_v5 = vmax.f32 %v2511_v16, 0.0 }
 0x4b2   : > { %v2544_v17 = vmax.f32 %v2512_v60, 0.0 }
 0x4b4   : > { %v2592_v27 = vpack.c.bf16 %v2544_v17, %v2543_v5 }
 0x4b6   : > { %6252 = vmatprep.subr.bf16.mxu0 %v2592_v27 }
 0x4b7   : > { %6253 = vmatpush3.bf16.msra.mxu0 %v8743_v41  ;;  %v6895_v41 = vld [vmem:[#allocation7 + $0x8a0] ss:$16 sps:$4 sm:$0xff]  }
 0x4ba   : > { %2978 = vmatmul.mubr.bf16.vlgmr.msra.gmra.mrb[128].mxu0 %v6878_v53  ;;  %v9363_v53 = vld [vmem:[#allocation46_spill] sm:$0xff] }
 0x4bb   : > { %2985 = vmatprep.mubr.bf16.mxu0 %v6881_v10 }
 0x4c2   : > { %2986 = vmatmul.mubr.bf16.gmra.mrb[132].mxu0 %v6883_v51 }
 0x4c3   : > { %2993 = vmatprep.mubr.bf16.mxu0 %v6884_v29  ;;  %v9364_v29 = vld [vmem:[#allocation47_spill] sm:$0xff] }
 0x4ca   : > { %2994 = vmatmul.mubr.bf16.gmra.mrb[136].mxu0 %v6886_v1 }
 0x4cb   : > { %3001 = vmatprep.mubr.bf16.mxu0 %v6887_v63 }
 0x4d2   : > { %3002 = vmatmul.mubr.bf16.gmra.mrb[140].mxu0 %v6889_v39 }
 0x4d3   : > { %3009 = vmatprep.mubr.bf16.mxu0 %v6890_v6 }
 0x4da   : > { %3010 = vmatmul.mubr.bf16.gmra.mrb[144].mxu0 %v6892_v24 }
 0x4db   : > { %3017 = vmatprep.mubr.bf16.mxu0 %v6893_v48 }
 0x4e2   : > { %3018 = vmatmul.mubr.bf16.gmra.mrb[148].mxu0 %v6895_v41 }
 0x4e3   : > { %3025 = vmatprep.mubr.bf16.mxu0 %v6896_v47 }
 0x4ea   : > { %3026 = vmatmul.mubr.bf16.gmra.mrb[152].mxu0 %v6898_v15 }
 0x4eb   : > { %3033 = vmatprep.mubr.bf16.mxu0 %v6899_v9  ;;  %v9365_v9 = vld [vmem:[#allocation48_spill] sm:$0xff] }
 0x4f2   : > { %3034 = vmatmul.mubr.bf16.gmra.mrb[156].mxu0 %v6901_v34 }
 0x4f3   : > { %3041 = vmatprep.mubr.bf16.mxu0 %v6902_v59 }
 0x4fa   : > { %3042 = vmatmul.mubr.bf16.gmra.mrb[160].mxu0 %v6904_v38  ;;  %v9366_v38 = vld [vmem:[#allocation49_spill] sm:$0xff] }
 0x4fb   : > { %3049 = vmatprep.mubr.bf16.mxu0 %v6905_v7 }
 0x502   : > { %3050 = vmatmul.mubr.bf16.gmra.mrb[164].mxu0 %v6907_v46 }
 0x503   : > { %3057 = vmatprep.mubr.bf16.mxu0 %v6908_v31 }
 0x50a   : > { %3058 = vmatmul.mubr.bf16.gmra.mrb[168].mxu0 %v6910_v37 }
 0x50b   : > { %3065 = vmatprep.mubr.bf16.mxu0 %v6911_v25 }
 0x512   : > { %3066 = vmatmul.mubr.bf16.gmra.mrb[172].mxu0 %v6913_v43 }
 0x513   : > { %3073 = vmatprep.mubr.bf16.mxu0 %v6914_v49 }
 0x51a   : > { %3074 = vmatmul.mubr.bf16.gmra.mrb[176].mxu0 %v6916_v2 }
 0x51b   : > { %3081 = vmatprep.mubr.bf16.mxu0 %v6917_v12 }
 0x522   : > { %3082 = vmatmul.mubr.bf16.gmra.mrb[180].mxu0 %v6919_v13  ;;  %v9367_v13 = vld [vmem:[#allocation50_spill] sm:$0xff] }
 0x523   : > { %3089 = vmatprep.mubr.bf16.mxu0 %v6920_v57 }
 0x52a   : > { %3090 = vmatmul.mubr.bf16.gmra.mrb[184].mxu0 %v6922_v4 }
 0x52b   : > { %3097 = vmatprep.mubr.bf16.mxu0 %v6923_v30  ;;  %v9368_v30 = vld [vmem:[#allocation51_spill] sm:$0xff] }
 0x532   : > { %3098 = vmatmul.mubr.bf16.gmra.mrb[188].mxu0 %v6925_v0 }
 0x58d   : > { %v6254_v22 = vpop.f32.mrb[128].mxu0 }
 0x58e   : > { %v6255_v20 = vpop.f32.mrb[129].mxu0 }
 0x58f   : > { %v6256_v45 = vadd.f32 %v6255_v20, %v6254_v22  ;;  %v6257_v62 = vpop.f32.mrb[130].mxu0 }
 0x590   : > { %v6258_v61 = vpop.f32.mrb[131].mxu0 }
 0x591   : > { %v2980_v35 = vadd.f32 %v6256_v45, %v9358_v23  ;;  %v6259_v11 = vadd.f32 %v6258_v61, %v6257_v62 }
 0x593   : > { %v2983_v28 = vadd.f32 %v6259_v11, %v9359_v42  ;;  %v3106_v58 = vmax.f32 %v2980_v35, 0.0 }
 0x595   : > { %v3107_v44 = vmax.f32 %v2983_v28, 0.0  ;;  %v6260_v52 = vpop.f32.mrb[132].mxu0 }
 0x596   : > { %v6261_v14 = vpop.f32.mrb[133].mxu0 }
 0x597   : > { %v3202_v3 = vpack.c.bf16 %v3107_v44, %v3106_v58  ;;  %v6262_v40 = vadd.f32 %v6261_v14, %v6260_v52  ;;  %v6263_v18 = vpop.f32.mrb[134].mxu0  ;;  %v9370_v58 = vld [vmem:[#allocation53_spill] sm:$0xff] }
 0x598   : > { %v6264_v33 = vpop.f32.mrb[135].mxu0 }
 0x599   : > { %v2988_v21 = vadd.f32 %v6262_v40, %v9360_v55  ;;  %v6265_v26 = vadd.f32 %v6264_v33, %v6263_v18  ;;  %3923 = vmatpush1.bf16.msra.mxu1 %v3202_v3 }
 0x59a   : > { %3924 = vmatprep.subr.bf16.mxu1 %v9361_v36 }
 0x59b   : > { %v2991_v50 = vadd.f32 %v6265_v26, %v9362_v8  ;;  %v3108_v16 = vmax.f32 %v2988_v21, 0.0  ;;  %v9371_v26 = vld [vmem:[#allocation54_spill] sm:$0xff] }
 0x59d   : > { %v3109_v32 = vmax.f32 %v2991_v50, 0.0  ;;  %v6266_v54 = vpop.f32.mrb[136].mxu0 }
 0x59e   : > { %v6267_v19 = vpop.f32.mrb[137].mxu0 }
 0x59f   : > { %v3203_v60 = vpack.c.bf16 %v3109_v32, %v3108_v16  ;;  %v6268_v5 = vadd.f32 %v6267_v19, %v6266_v54  ;;  %v6269_v17 = vpop.f32.mrb[138].mxu0  ;;  %v9372_v16 = vld [vmem:[#allocation55_spill] sm:$0xff] }
 0x5a0   : > { %v6270_v27 = vpop.f32.mrb[139].mxu0 }
 0x5a1   : > { %v2996_v10 = vadd.f32 %v6268_v5, %v9363_v53  ;;  %v6271_v51 = vadd.f32 %v6270_v27, %v6269_v17  ;;  %3925 = vmatpush1.bf16.msra.mxu1 %v3203_v60 }
 0x5a2   : > { %3926 = vmatprep.subr.bf16.mxu1 %v9361_v36 }
 0x5a3   : > { %v2999_v1 = vadd.f32 %v6271_v51, %v9364_v29  ;;  %v3110_v63 = vmax.f32 %v2996_v10, 0.0  ;;  %v9373_v51 = vld [vmem:[#allocation56_spill] sm:$0xff] }
 0x5a5   : > { %v3111_v39 = vmax.f32 %v2999_v1, 0.0  ;;  %v6272_v6 = vpop.f32.mrb[140].mxu0 }
 0x5a6   : > { %v6273_v24 = vpop.f32.mrb[141].mxu0 }
 0x5a7   : > { %v3204_v48 = vpack.c.bf16 %v3111_v39, %v3110_v63  ;;  %v6274_v41 = vadd.f32 %v6273_v24, %v6272_v6  ;;  %v6275_v47 = vpop.f32.mrb[142].mxu0  ;;  %v9374_v63 = vld [vmem:[#allocation57_spill] sm:$0xff] }
 0x5a8   : > { %v6276_v15 = vpop.f32.mrb[143].mxu0 }
 0x5a9   : > { %v3004_v34 = vadd.f32 %v6274_v41, %v9365_v9  ;;  %v6277_v59 = vadd.f32 %v6276_v15, %v6275_v47  ;;  %3927 = vmatpush1.bf16.msra.mxu1 %v3204_v48 }
 0x5aa   : > { %3928 = vmatprep.subr.bf16.mxu1 %v9361_v36 }
 0x5ab   : > { %v3007_v7 = vadd.f32 %v6277_v59, %v9366_v38  ;;  %v3112_v46 = vmax.f32 %v3004_v34, 0.0  ;;  %v9375_v59 = vld [vmem:[#allocation58_spill] sm:$0xff] }
 0x5ad   : > { %v3113_v31 = vmax.f32 %v3007_v7, 0.0  ;;  %v6278_v37 = vpop.f32.mrb[144].mxu0 }
 0x5ae   : > { %v6279_v25 = vpop.f32.mrb[145].mxu0 }
 0x5af   : > { %v3205_v43 = vpack.c.bf16 %v3113_v31, %v3112_v46  ;;  %v6280_v49 = vadd.f32 %v6279_v25, %v6278_v37  ;;  %v6281_v2 = vpop.f32.mrb[146].mxu0  ;;  %v9376_v46 = vld [vmem:[#allocation59_spill] sm:$0xff] }
 0x5b0   : > { %v6282_v12 = vpop.f32.mrb[147].mxu0 }
 0x5b1   : > { %v3012_v57 = vadd.f32 %v6280_v49, %v9367_v13  ;;  %v6283_v4 = vadd.f32 %v6282_v12, %v6281_v2  ;;  %3929 = vmatpush1.bf16.msra.mxu1 %v3205_v43 }
 0x5b2   : > { %3930 = vmatprep.subr.bf16.mxu1 %v9361_v36 }
 0x5b3   : > { %v3015_v0 = vadd.f32 %v6283_v4, %v9368_v30  ;;  %v3114_v22 = vmax.f32 %v3012_v57, 0.0  ;;  %v9377_v4 = vld [vmem:[#allocation60_spill] sm:$0xff] }
 0x5b5   : > { %v3115_v20 = vmax.f32 %v3015_v0, 0.0  ;;  %v6284_v45 = vpop.f32.mrb[148].mxu0 }
 0x5b6   : > { %v6285_v62 = vpop.f32.mrb[149].mxu0 }
 0x5b7   : > { %v3206_v61 = vpack.c.bf16 %v3115_v20, %v3114_v22  ;;  %v6286_v23 = vadd.f32 %v6285_v62, %v6284_v45  ;;  %v6287_v35 = vpop.f32.mrb[150].mxu0  ;;  %v9378_v22 = vld [vmem:[#allocation61_spill] sm:$0xff] }
 0x5b8   : > { %v6288_v11 = vpop.f32.mrb[151].mxu0 }
 0x5b9   : > { %v3020_v42 = vadd.f32 %v6286_v23, %v9369_v56  ;;  %v6289_v28 = vadd.f32 %v6288_v11, %v6287_v35  ;;  %3931 = vmatpush1.bf16.msra.mxu1 %v3206_v61 }
 0x5ba   : > { %3932 = vmatprep.subr.bf16.mxu1 %v9361_v36 }
 0x5bb   : > { %v3023_v44 = vadd.f32 %v6289_v28, %v9370_v58  ;;  %v3116_v52 = vmax.f32 %v3020_v42, 0.0  ;;  %v9379_v28 = vld [vmem:[#allocation62_spill] sm:$0xff] }
 0x5bd   : > { %v3117_v14 = vmax.f32 %v3023_v44, 0.0  ;;  %v6290_v3 = vpop.f32.mrb[152].mxu0 }
 0x5be   : > { %v6291_v40 = vpop.f32.mrb[153].mxu0 }
 0x5bf   : > { %v3207_v18 = vpack.c.bf16 %v3117_v14, %v3116_v52  ;;  %v6292_v33 = vadd.f32 %v6291_v40, %v6290_v3  ;;  %v6293_v55 = vpop.f32.mrb[154].mxu0  ;;  %v9380_v52 = vld [vmem:[#allocation63_spill] sm:$0xff] }
 0x5c0   : > { %v6294_v21 = vpop.f32.mrb[155].mxu0 }
 0x5c1   : > { %v3028_v8 = vadd.f32 %v6292_v33, %v9371_v26  ;;  %v6295_v50 = vadd.f32 %v6294_v21, %v6293_v55  ;;  %3933 = vmatpush1.bf16.msra.mxu1 %v3207_v18 }
 0x5c2   : > { %3934 = vmatprep.subr.bf16.mxu1 %v9361_v36 }
 0x5c3   : > { %v3031_v32 = vadd.f32 %v6295_v50, %v9372_v16  ;;  %v3118_v54 = vmax.f32 %v3028_v8, 0.0  ;;  %v9381_v50 = vld [vmem:[#allocation64_spill] sm:$0xff] }
 0x5c5   : > { %v3119_v19 = vmax.f32 %v3031_v32, 0.0  ;;  %v6296_v60 = vpop.f32.mrb[156].mxu0 }
 0x5c6   : > { %v6297_v5 = vpop.f32.mrb[157].mxu0 }
 0x5c7   : > { %v3208_v17 = vpack.c.bf16 %v3119_v19, %v3118_v54  ;;  %v6298_v27 = vadd.f32 %v6297_v5, %v6296_v60  ;;  %v6299_v53 = vpop.f32.mrb[158].mxu0  ;;  %v9382_v54 = vld [vmem:[#allocation65_spill] sm:$0xff] }
 0x5c8   : > { %v6300_v10 = vpop.f32.mrb[159].mxu0 }
 0x5c9   : > { %v3036_v29 = vadd.f32 %v6298_v27, %v9373_v51  ;;  %v6301_v1 = vadd.f32 %v6300_v10, %v6299_v53  ;;  %3935 = vmatpush1.bf16.msra.mxu1 %v3208_v17 }
 0x5ca   : > { %3936 = vmatprep.subr.bf16.mxu1 %v9361_v36 }
 0x5cb   : > { %v3039_v39 = vadd.f32 %v6301_v1, %v9374_v63  ;;  %v3120_v6 = vmax.f32 %v3036_v29, 0.0  ;;  %v9383_v1 = vld [vmem:[#allocation66_spill] sm:$0xff] }
 0x5cd   : > { %v3121_v24 = vmax.f32 %v3039_v39, 0.0  ;;  %v6302_v48 = vpop.f32.mrb[160].mxu0 }
 0x5ce   : > { %v6303_v41 = vpop.f32.mrb[161].mxu0 }
 0x5cf   : > { %v3209_v47 = vpack.c.bf16 %v3121_v24, %v3120_v6  ;;  %v6304_v15 = vadd.f32 %v6303_v41, %v6302_v48  ;;  %v6305_v9 = vpop.f32.mrb[162].mxu0  ;;  %v9384_v6 = vld [vmem:[#allocation67_spill] sm:$0xff] }
 0x5d0   : > { %v6306_v34 = vpop.f32.mrb[163].mxu0 }
 0x5d1   : > { %v3044_v38 = vadd.f32 %v6304_v15, %v9375_v59  ;;  %v6307_v7 = vadd.f32 %v6306_v34, %v6305_v9  ;;  %3937 = vmatpush1.bf16.msra.mxu1 %v3209_v47 }
 0x5d2   : > { %3938 = vmatprep.subr.bf16.mxu1 %v9361_v36 }
 0x5d3   : > { %v3047_v31 = vadd.f32 %v6307_v7, %v9376_v46  ;;  %v3122_v37 = vmax.f32 %v3044_v38, 0.0  ;;  %v2758_v38 = vpop.permute.xlu0 %2757 }
 0x5d5   : > { %v3123_v25 = vmax.f32 %v3047_v31, 0.0  ;;  %v6308_v43 = vpop.f32.mrb[164].mxu0 }
 0x5d6   : > { %v6309_v49 = vpop.f32.mrb[165].mxu0 }
 0x5d7   : > { %v3210_v2 = vpack.c.bf16 %v3123_v25, %v3122_v37  ;;  %v6310_v12 = vadd.f32 %v6309_v49, %v6308_v43  ;;  %v6311_v13 = vpop.f32.mrb[166].mxu0  ;;  %v2763_v37 = vpop.permute.xlu1 %2762 }
 0x5d8   : > { %v6312_v57 = vpop.f32.mrb[167].mxu0 }
 0x5d9   : > { %v3052_v30 = vadd.f32 %v6310_v12, %v9377_v4  ;;  %v6313_v0 = vadd.f32 %v6312_v57, %v6311_v13  ;;  %3939 = vmatpush1.bf16.msra.mxu1 %v3210_v2 }
 0x5da   : > { %3940 = vmatprep.subr.bf16.mxu1 %v9361_v36 }
 0x5db   : > { %v3055_v20 = vadd.f32 %v6313_v0, %v9378_v22  ;;  %v3124_v45 = vmax.f32 %v3052_v30, 0.0  ;;  %v2768_v30 = vpop.permute.xlu0 %2767 }
 0x5dd   : > { %v3125_v62 = vmax.f32 %v3055_v20, 0.0  ;;  %v6314_v61 = vpop.f32.mrb[168].mxu0 }
 0x5de   : > { %v6315_v23 = vpop.f32.mrb[169].mxu0 }
 0x5df   : > { %v3211_v35 = vpack.c.bf16 %v3125_v62, %v3124_v45  ;;  %v6316_v11 = vadd.f32 %v6315_v23, %v6314_v61  ;;  %v6317_v56 = vpop.f32.mrb[170].mxu0  ;;  %v2773_v45 = vpop.permute.xlu1 %2772 }
 0x5e0   : > { %v6318_v42 = vpop.f32.mrb[171].mxu0 }
 0x5e1   : > { %v3060_v58 = vadd.f32 %v6316_v11, %v9379_v28  ;;  %v6319_v44 = vadd.f32 %v6318_v42, %v6317_v56  ;;  %3941 = vmatpush1.bf16.msra.mxu1 %v3211_v35 }
 0x5e2   : > { %3942 = vmatprep.subr.bf16.mxu1 %v9361_v36 }
 0x5e3   : > { %v3063_v14 = vadd.f32 %v6319_v44, %v9380_v52  ;;  %v3126_v3 = vmax.f32 %v3060_v58, 0.0  ;;  %v2778_v58 = vpop.permute.xlu0 %2777 }
 0x5e5   : > { %v3127_v40 = vmax.f32 %v3063_v14, 0.0  ;;  %v6320_v18 = vpop.f32.mrb[172].mxu0 }
 0x5e6   : > { %v6321_v33 = vpop.f32.mrb[173].mxu0 }
 0x5e7   : > { %v3212_v55 = vpack.c.bf16 %v3127_v40, %v3126_v3  ;;  %v6322_v21 = vadd.f32 %v6321_v33, %v6320_v18  ;;  %v6323_v26 = vpop.f32.mrb[174].mxu0  ;;  %v2783_v3 = vpop.permute.xlu1 %2782 }
 0x5e8   : > { %v6324_v8 = vpop.f32.mrb[175].mxu0 }
 0x5e9   : > { %v3068_v16 = vadd.f32 %v6322_v21, %v9381_v50  ;;  %v6325_v32 = vadd.f32 %v6324_v8, %v6323_v26  ;;  %3943 = vmatpush1.bf16.msra.mxu1 %v3212_v55  ;;  %v6926_v21 = vld [vmem:[#allocation7 + $0xa00] ss:$16 sps:$4 sm:$0xff]   ;;  %v6929_v26 = vld [vmem:[#allocation7 + $0xa24] ss:$16 sps:$4 sm:$0xff]  }
 0x5ea   : > { %3944 = vmatprep.subr.bf16.mxu1 %v9361_v36  ;;  %v6931_v8 = vld [vmem:[#allocation7 + $0xa20] ss:$16 sps:$4 sm:$0xff]   ;;  %v6932_v50 = vld [vmem:[#allocation7 + $0xa44] ss:$16 sps:$4 sm:$0xff]  }
 0x5eb   : > { %v3071_v19 = vadd.f32 %v6325_v32, %v9382_v54  ;;  %v3128_v60 = vmax.f32 %v3068_v16, 0.0  ;;  %v6934_v16 = vld [vmem:[#allocation7 + $0xa40] ss:$16 sps:$4 sm:$0xff]   ;;  %v6935_v32 = vld [vmem:[#allocation7 + $0xa64] ss:$16 sps:$4 sm:$0xff]  }
 0x5ec   : > { %v6937_v54 = vld [vmem:[#allocation7 + $0xa60] ss:$16 sps:$4 sm:$0xff]  }
 0x5ed   : > { %v3129_v5 = vmax.f32 %v3071_v19, 0.0  ;;  %v6326_v17 = vpop.f32.mrb[176].mxu0  ;;  %v6938_v19 = vld [vmem:[#allocation7 + $0xa84] ss:$16 sps:$4 sm:$0xff]  }
 0x5ee   : > { %v6327_v27 = vpop.f32.mrb[177].mxu0 }
 0x5ef   : > { %v3213_v53 = vpack.c.bf16 %v3129_v5, %v3128_v60  ;;  %v6328_v10 = vadd.f32 %v6327_v27, %v6326_v17  ;;  %v6329_v51 = vpop.f32.mrb[178].mxu0  ;;  %v6940_v60 = vld [vmem:[#allocation7 + $0xa80] ss:$16 sps:$4 sm:$0xff]   ;;  %v6941_v5 = vld [vmem:[#allocation7 + $0xaa4] ss:$16 sps:$4 sm:$0xff]  }
 0x5f0   : > { %v6330_v29 = vpop.f32.mrb[179].mxu0  ;;  %v6943_v17 = vld [vmem:[#allocation7 + $0xaa0] ss:$16 sps:$4 sm:$0xff]   ;;  %v6944_v27 = vld [vmem:[#allocation7 + $0xac4] ss:$16 sps:$4 sm:$0xff]  }
 0x5f1   : > { %v3076_v63 = vadd.f32 %v6328_v10, %v9383_v1  ;;  %v6331_v39 = vadd.f32 %v6330_v29, %v6329_v51  ;;  %3945 = vmatpush1.bf16.msra.mxu1 %v3213_v53  ;;  %v6946_v53 = vld [vmem:[#allocation7 + $0xac0] ss:$16 sps:$4 sm:$0xff]   ;;  %v6947_v10 = vld [vmem:[#allocation7 + $0xae4] ss:$16 sps:$4 sm:$0xff]  }
 0x5f2   : > { %3946 = vmatprep.subr.bf16.mxu1 %v9361_v36  ;;  %v6949_v51 = vld [vmem:[#allocation7 + $0xae0] ss:$16 sps:$4 sm:$0xff]   ;;  %v6950_v29 = vld [vmem:[#allocation7 + $0xb04] ss:$16 sps:$4 sm:$0xff]  }
 0x5f3   : > { %v3079_v24 = vadd.f32 %v6331_v39, %v9384_v6  ;;  %v3130_v48 = vmax.f32 %v3076_v63, 0.0  ;;  %v6952_v1 = vld [vmem:[#allocation7 + $0xb00] ss:$16 sps:$4 sm:$0xff]   ;;  %v6953_v63 = vld [vmem:[#allocation7 + $0xb24] ss:$16 sps:$4 sm:$0xff]  }
 0x5f4   : > { %v6955_v39 = vld [vmem:[#allocation7 + $0xb20] ss:$16 sps:$4 sm:$0xff]   ;;  %v6956_v6 = vld [vmem:[#allocation7 + $0xb44] ss:$16 sps:$4 sm:$0xff]  }
 0x5f5   : > { %v3131_v41 = vmax.f32 %v3079_v24, 0.0  ;;  %v6332_v47 = vpop.f32.mrb[180].mxu0  ;;  %v6958_v24 = vld [vmem:[#allocation7 + $0xb40] ss:$16 sps:$4 sm:$0xff]  }
 0x5f6   : > { %v6333_v15 = vpop.f32.mrb[181].mxu0 }
 0x5f7   : > { %v3214_v9 = vpack.c.bf16 %v3131_v41, %v3130_v48  ;;  %v6334_v34 = vadd.f32 %v6333_v15, %v6332_v47  ;;  %v6335_v59 = vpop.f32.mrb[182].mxu0  ;;  %v6959_v48 = vld [vmem:[#allocation7 + $0xb64] ss:$16 sps:$4 sm:$0xff]   ;;  %v6961_v41 = vld [vmem:[#allocation7 + $0xb60] ss:$16 sps:$4 sm:$0xff]  }
 0x5f8   : > { %v6336_v7 = vpop.f32.mrb[183].mxu0  ;;  %v6962_v47 = vld [vmem:[#allocation7 + $0xb84] ss:$16 sps:$4 sm:$0xff]   ;;  %v6964_v15 = vld [vmem:[#allocation7 + $0xb80] ss:$16 sps:$4 sm:$0xff]  }
 0x5f9   : > { %v3084_v46 = vadd.f32 %v6334_v34, %v2758_v38  ;;  %v6337_v31 = vadd.f32 %v6336_v7, %v6335_v59  ;;  %3947 = vmatpush1.bf16.msra.mxu1 %v3214_v9  ;;  %v6965_v9 = vld [vmem:[#allocation7 + $0xba4] ss:$16 sps:$4 sm:$0xff]   ;;  %v6967_v34 = vld [vmem:[#allocation7 + $0xba0] ss:$16 sps:$4 sm:$0xff]  }
 0x5fa   : > { %3948 = vmatprep.subr.bf16.mxu1 %v9361_v36  ;;  %v6968_v59 = vld [vmem:[#allocation7 + $0xbc4] ss:$16 sps:$4 sm:$0xff]   ;;  %v6970_v38 = vld [vmem:[#allocation7 + $0xbc0] ss:$16 sps:$4 sm:$0xff]  }
 0x5fb   : > { %v3087_v25 = vadd.f32 %v6337_v31, %v2763_v37  ;;  %v3132_v43 = vmax.f32 %v3084_v46, 0.0  ;;  %v6971_v7 = vld [vmem:[#allocation7 + $0xbe4] ss:$16 sps:$4 sm:$0xff]   ;;  %v6973_v46 = vld [vmem:[#allocation7 + $0xbe0] ss:$16 sps:$4 sm:$0xff]  }
 0x5fc   : > { %v6974_v31 = vld [vmem:[#allocation7 + $0xc04] ss:$16 sps:$4 sm:$0xff]   ;;  %v6976_v37 = vld [vmem:[#allocation7 + $0xc00] ss:$16 sps:$4 sm:$0xff]  }
 0x5fd   : > { %v3133_v49 = vmax.f32 %v3087_v25, 0.0  ;;  %v6338_v2 = vpop.f32.mrb[184].mxu0  ;;  %v6977_v25 = vld [vmem:[#allocation7 + $0xc24] ss:$16 sps:$4 sm:$0xff]  }
 0x5fe   : > { %v6339_v12 = vpop.f32.mrb[185].mxu0 }
 0x5ff   : > { %v3215_v13 = vpack.c.bf16 %v3133_v49, %v3132_v43  ;;  %v6340_v57 = vadd.f32 %v6339_v12, %v6338_v2  ;;  %v6341_v4 = vpop.f32.mrb[186].mxu0  ;;  %v6979_v43 = vld [vmem:[#allocation7 + $0xc20] ss:$16 sps:$4 sm:$0xff]   ;;  %v6980_v49 = vld [vmem:[#allocation7 + $0xc44] ss:$16 sps:$4 sm:$0xff]  }
 0x600   : > { %v6342_v0 = vpop.f32.mrb[187].mxu0  ;;  %v6982_v2 = vld [vmem:[#allocation7 + $0xc40] ss:$16 sps:$4 sm:$0xff]   ;;  %v6983_v12 = vld [vmem:[#allocation7 + $0xc64] ss:$16 sps:$4 sm:$0xff]  }
 0x601   : > { %v3092_v22 = vadd.f32 %v6340_v57, %v2768_v30  ;;  %v6343_v20 = vadd.f32 %v6342_v0, %v6341_v4  ;;  %3949 = vmatpush1.bf16.msra.mxu1 %v3215_v13  ;;  %v6985_v13 = vld [vmem:[#allocation7 + $0xc60] ss:$16 sps:$4 sm:$0xff]   ;;  %v6986_v57 = vld [vmem:[#allocation7 + $0xc84] ss:$16 sps:$4 sm:$0xff]  }
 0x602   : > { %3950 = vmatprep.subr.bf16.mxu1 %v9361_v36  ;;  %v6988_v4 = vld [vmem:[#allocation7 + $0xc80] ss:$16 sps:$4 sm:$0xff]   ;;  %v6989_v30 = vld [vmem:[#allocation7 + $0xca4] ss:$16 sps:$4 sm:$0xff]  }
 0x603   : > { %v3095_v62 = vadd.f32 %v6343_v20, %v2773_v45  ;;  %v3134_v61 = vmax.f32 %v3092_v22, 0.0  ;;  %v6991_v0 = vld [vmem:[#allocation7 + $0xca0] ss:$16 sps:$4 sm:$0xff]   ;;  %v6992_v22 = vld [vmem:[#allocation7 + $0xcc4] ss:$16 sps:$4 sm:$0xff]  }
 0x604   : > { %v6994_v20 = vld [vmem:[#allocation7 + $0xcc0] ss:$16 sps:$4 sm:$0xff]   ;;  %v6995_v45 = vld [vmem:[#allocation7 + $0xce4] ss:$16 sps:$4 sm:$0xff]  }
 0x605   : > { %v3135_v23 = vmax.f32 %v3095_v62, 0.0  ;;  %v6344_v35 = vpop.f32.mrb[188].mxu0  ;;  %v8826_v62 = vpop.permute.xlu0 %3364 }
 0x606   : > { %v6345_v11 = vpop.f32.mrb[189].mxu0 }
 0x607   : > { %v3216_v56 = vpack.c.bf16 %v3135_v23, %v3134_v61  ;;  %v6346_v42 = vadd.f32 %v6345_v11, %v6344_v35  ;;  %v6347_v28 = vpop.f32.mrb[190].mxu0  ;;  %v8828_v61 = vpop.permute.xlu1 %3369  ;;  %v6997_v23 = vld [vmem:[#allocation7 + $0xce0] ss:$16 sps:$4 sm:$0xff]   ;;  %v6998_v35 = vld [vmem:[#allocation7 + $0xd04] ss:$16 sps:$4 sm:$0xff]  }
 0x608   : > { %v6348_v44 = vpop.f32.mrb[191].mxu0 }
 0x609   : > { %v3100_v52 = vadd.f32 %v6346_v42, %v2778_v58  ;;  %v6349_v14 = vadd.f32 %v6348_v44, %v6347_v28  ;;  %3951 = vmatpush1.bf16.msra.mxu1 %v3216_v56  ;;  %v3285_v11 = vpop.permute.xlu0 %3284  ;;  %v7000_v42 = vld [vmem:[#allocation7 + $0xd00] ss:$16 sps:$4 sm:$0xff]   ;;  %v7001_v58 = vld [vmem:[#allocation7 + $0xd24] ss:$16 sps:$4 sm:$0xff]  }
 0x60a   : > { %3952 = vmatprep.subr.bf16.mxu1 %v9361_v36 }
 0x60b   : > { %v3103_v40 = vadd.f32 %v6349_v14, %v2783_v3  ;;  %v3136_v18 = vmax.f32 %v3100_v52, 0.0  ;;  %v3290_v56 = vpop.permute.xlu1 %3289  ;;  %v7003_v14 = vld [vmem:[#allocation7 + $0xd20] ss:$16 sps:$4 sm:$0xff]  }
 0x60d   : > { %v3137_v33 = vmax.f32 %v3103_v40, 0.0  ;;  %v8830_v28 = vpop.permute.xlu0 %3374  ;;  %v7004_v40 = vld [vmem:[#allocation7 + $0xd44] ss:$16 sps:$4 sm:$0xff]  }
 0x60f   : > { %v3217_v55 = vpack.c.bf16 %v3137_v33, %v3136_v18  ;;  %v8832_v44 = vpop.permute.xlu1 %3379 }
 0x611   : > { %3953 = vmatpush1.bf16.msra.mxu1 %v3217_v55  ;;  %v3295_v52 = vpop.permute.xlu0 %3294  ;;  %v7006_v55 = vld [vmem:[#allocation7 + $0xd40] ss:$16 sps:$4 sm:$0xff]  }
 0x613   : > { %v3300_v3 = vpop.permute.xlu1 %3299 }
 0x614   : > { %3955 = vmatmul.mubr.bf16.vlgmr.msra.gmra.mrb[128].mxu1 %v6926_v21  ;;  %v7007_v21 = vld [vmem:[#allocation7 + $0xd64] ss:$16 sps:$4 sm:$0xff]  }
 0x615   : > { %3962 = vmatprep.mubr.bf16.mxu1 %v6929_v26  ;;  %v8834_v18 = vpop.permute.xlu0 %3384 }
 0x617   : > { %v8836_v33 = vpop.permute.xlu1 %3389 }
 0x619   : > { %v3305_v26 = vpop.permute.xlu0 %3304 }
 0x61c   : > { %3963 = vmatmul.mubr.bf16.gmra.mrb[132].mxu1 %v6931_v8  ;;  %v3310_v8 = vpop.permute.xlu1 %3309 }
 0x61d   : > { %3970 = vmatprep.mubr.bf16.mxu1 %v6932_v50 }
 0x624   : > { %3971 = vmatmul.mubr.bf16.gmra.mrb[136].mxu1 %v6934_v16 }
 0x625   : > { %3978 = vmatprep.mubr.bf16.mxu1 %v6935_v32 }
 0x62c   : > { %3979 = vmatmul.mubr.bf16.gmra.mrb[140].mxu1 %v6937_v54  ;;  %v7009_v54 = vld [vmem:[#allocation7 + $0xd60] ss:$16 sps:$4 sm:$0xff]  }
 0x62d   : > { %3986 = vmatprep.mubr.bf16.mxu1 %v6938_v19  ;;  %v8838_v19 = vpop.permute.xlu0 %3394 }
 0x634   : > { %3987 = vmatmul.mubr.bf16.gmra.mrb[144].mxu1 %v6940_v60 }
 0x635   : > { %3994 = vmatprep.mubr.bf16.mxu1 %v6941_v5  ;;  %v7010_v5 = vld [vmem:[#allocation7 + $0xd84] ss:$16 sps:$4 sm:$0xff]  }
 0x63c   : > { %3995 = vmatmul.mubr.bf16.gmra.mrb[148].mxu1 %v6943_v17  ;;  %v7024_v17 = vld [vmem:[#allocation7 + $0xe04] ss:$16 sps:$4 sm:$0xff]  }
 0x63d   : > { %4002 = vmatprep.mubr.bf16.mxu1 %v6944_v27  ;;  %4829 = vmatprep.mubr.bf16.mxu0 %v7024_v17 }
 0x644   : > { %4003 = vmatmul.mubr.bf16.gmra.mrb[152].mxu1 %v6946_v53 }
 0x645   : > { %4010 = vmatprep.mubr.bf16.mxu1 %v6947_v10  ;;  %v8840_v10 = vpop.permute.xlu1 %3399 }
 0x64c   : > { %4011 = vmatmul.mubr.bf16.gmra.mrb[156].mxu1 %v6949_v51 }
 0x64d   : > { %4018 = vmatprep.mubr.bf16.mxu1 %v6950_v29 }
 0x654   : > { %4019 = vmatmul.mubr.bf16.gmra.mrb[160].mxu1 %v6952_v1 }
 0x655   : > { %4026 = vmatprep.mubr.bf16.mxu1 %v6953_v63  ;;  %v3315_v63 = vpop.permute.xlu0 %3314 }
 0x65c   : > { %4027 = vmatmul.mubr.bf16.gmra.mrb[164].mxu1 %v6955_v39 }
 0x65d   : > { %4034 = vmatprep.mubr.bf16.mxu1 %v6956_v6 }
 0x664   : > { %4035 = vmatmul.mubr.bf16.gmra.mrb[168].mxu1 %v6958_v24 }
 0x665   : > { %4042 = vmatprep.mubr.bf16.mxu1 %v6959_v48  ;;  %v7012_v48 = vld [vmem:[#allocation7 + $0xd80] ss:$16 sps:$4 sm:$0xff]  }
 0x66c   : > { %4043 = vmatmul.mubr.bf16.gmra.mrb[172].mxu1 %v6961_v41  ;;  %v3320_v41 = vpop.permute.xlu1 %3319 }
 0x66d   : > { %4050 = vmatprep.mubr.bf16.mxu1 %v6962_v47 }
 0x674   : > { %4051 = vmatmul.mubr.bf16.gmra.mrb[176].mxu1 %v6964_v15  ;;  %v7013_v15 = vld [vmem:[#allocation7 + $0xda4] ss:$16 sps:$4 sm:$0xff]  }
 0x675   : > { %4058 = vmatprep.mubr.bf16.mxu1 %v6965_v9 }
 0x67c   : > { %4059 = vmatmul.mubr.bf16.gmra.mrb[180].mxu1 %v6967_v34 }
 0x67d   : > { %4066 = vmatprep.mubr.bf16.mxu1 %v6968_v59 }
 0x684   : > { %4067 = vmatmul.mubr.bf16.gmra.mrb[184].mxu1 %v6970_v38 }
 0x685   : > { %4074 = vmatprep.mubr.bf16.mxu1 %v6971_v7  ;;  %v8844_v7 = vpop.permute.xlu0 %3404 }
 0x68c   : > { %4075 = vmatmul.mubr.bf16.gmra.mrb[188].mxu1 %v6973_v46 }
 0x68d   : > { %4082 = vmatprep.mubr.bf16.mxu1 %v6974_v31  ;;  %v8848_v31 = vpop.permute.xlu1 %3409 }
 0x694   : > { %4083 = vmatmul.mubr.bf16.gmra.mrb[192].mxu1 %v6976_v37 }
 0x695   : > { %4090 = vmatprep.mubr.bf16.mxu1 %v6977_v25 }
 0x69c   : > { %4091 = vmatmul.mubr.bf16.gmra.mrb[196].mxu1 %v6979_v43 }
 0x69d   : > { %4098 = vmatprep.mubr.bf16.mxu1 %v6980_v49  ;;  %v7015_v49 = vld [vmem:[#allocation7 + $0xda0] ss:$16 sps:$4 sm:$0xff]  }
 0x6a4   : > { %4099 = vmatmul.mubr.bf16.gmra.mrb[200].mxu1 %v6982_v2 }
 0x6a5   : > { %4106 = vmatprep.mubr.bf16.mxu1 %v6983_v12  ;;  %v7016_v12 = vld [vmem:[#allocation7 + $0xdc4] ss:$16 sps:$4 sm:$0xff]  }
 0x6ac   : > { %4107 = vmatmul.mubr.bf16.gmra.mrb[204].mxu1 %v6985_v13 }
 0x6ad   : > { %4114 = vmatprep.mubr.bf16.mxu1 %v6986_v57 }
 0x6b4   : > { %4115 = vmatmul.mubr.bf16.gmra.mrb[208].mxu1 %v6988_v4  ;;  %v3325_v4 = vpop.permute.xlu0 %3324 }
 0x6b5   : > { %4122 = vmatprep.mubr.bf16.mxu1 %v6989_v30 }
 0x6bc   : > { %4123 = vmatmul.mubr.bf16.gmra.mrb[212].mxu1 %v6991_v0 }
 0x6bd   : > { %4130 = vmatprep.mubr.bf16.mxu1 %v6992_v22  ;;  %v3330_v22 = vpop.permute.xlu1 %3329 }
 0x6c4   : > { %4131 = vmatmul.mubr.bf16.gmra.mrb[216].mxu1 %v6994_v20 }
 0x6c5   : > { %4138 = vmatprep.mubr.bf16.mxu1 %v6995_v45 }
 0x6cc   : > { %4139 = vmatmul.mubr.bf16.gmra.mrb[220].mxu1 %v6997_v23 }
 0x6cd   : > { %4146 = vmatprep.mubr.bf16.mxu1 %v6998_v35 }
 0x6d4   : > { %4147 = vmatmul.mubr.bf16.gmra.mrb[224].mxu1 %v7000_v42 }
 0x6d5   : > { %4154 = vmatprep.mubr.bf16.mxu1 %v7001_v58  ;;  %v7019_v58 = vld [vmem:[#allocation7 + $0xde4] ss:$16 sps:$4 sm:$0xff]  }
 0x6dc   : > { %4155 = vmatmul.mubr.bf16.gmra.mrb[228].mxu1 %v7003_v14 }
 0x6dd   : > { %4162 = vmatprep.mubr.bf16.mxu1 %v7004_v40 }
 0x6e4   : > { %4163 = vmatmul.mubr.bf16.gmra.mrb[232].mxu1 %v7006_v55 }
 0x6e5   : > { %4170 = vmatprep.mubr.bf16.mxu1 %v7007_v21 }
 0x6e7   : > { %v3956_v50 = vpop.f32.mrb[128].mxu1 }
 0x6e8   : > { %v3957_v16 = vadd.f32 %v3956_v50, %v3285_v11  ;;  %v3958_v32 = vpop.f32.mrb[129].mxu1  ;;  %v7018_v11 = vld [vmem:[#allocation7 + $0xdc0] ss:$16 sps:$4 sm:$0xff]  }
 0x6e9   : > { %v3959_v60 = vpop.f32.mrb[130].mxu1 }
 0x6ea   : > { %v3960_v27 = vadd.f32 %v3959_v60, %v3290_v56  ;;  %v3961_v53 = vpop.f32.mrb[131].mxu1  ;;  %v4211_v51 = vmax.f32 %v3957_v16, 0.0  ;;  %v8852_v56 = vpop.permute.xlu0 %3414 }
 0x6ec   : > { %v4212_v29 = vmax.f32 %v3960_v27, 0.0  ;;  %4171 = vmatmul.mubr.bf16.gmra.mrb[236].mxu1 %v7009_v54  ;;  %v7021_v54 = vld [vmem:[#allocation7 + $0xde0] ss:$16 sps:$4 sm:$0xff]  }
 0x6ed   : > { %4178 = vmatprep.mubr.bf16.mxu1 %v7010_v5 }
 0x6ee   : > { %v8842_v1 = vpack.c.bf16 %v4212_v29, %v4211_v51 }
 0x6ef   : > { %v3964_v39 = vpop.f32.mrb[132].mxu1 }
 0x6f0   : > { %v3965_v6 = vadd.f32 %v3964_v39, %v3295_v52  ;;  %v3966_v24 = vpop.f32.mrb[133].mxu1 }
 0x6f1   : > { %v3967_v47 = vpop.f32.mrb[134].mxu1 }
 0x6f2   : > { %v3968_v9 = vadd.f32 %v3967_v47, %v3300_v3  ;;  %v3969_v34 = vpop.f32.mrb[135].mxu1  ;;  %v4213_v59 = vmax.f32 %v3965_v6, 0.0  ;;  %v8854_v3 = vpop.permute.xlu1 %3419 }
 0x6f4   : > { %v4214_v38 = vmax.f32 %v3968_v9, 0.0  ;;  %4179 = vmatmul.mubr.bf16.gmra.mrb[240].mxu1 %v7012_v48 }
 0x6f5   : > { %4186 = vmatprep.mubr.bf16.mxu1 %v7013_v15 }
 0x6f6   : > { %v8846_v46 = vpack.c.bf16 %v4214_v38, %v4213_v59  ;;  %v3340_v60 = vpop.permute.xlu1 %3339 }
 0x6f7   : > { %v3972_v37 = vpop.f32.mrb[136].mxu1 }
 0x6f8   : > { %v3973_v25 = vadd.f32 %v3972_v37, %v3305_v26  ;;  %v3974_v43 = vpop.f32.mrb[137].mxu1  ;;  %v8858_v26 = vld [vmem:[#allocation7 + $0xfc0] sm:$0xff] }
 0x6f9   : > { %v3975_v2 = vpop.f32.mrb[138].mxu1  ;;  %v5774_v17 = vcombine.high %v8858_v26, %v8858_v26 }
 0x6fa   : > { %v3976_v13 = vadd.f32 %v3975_v2, %v3310_v8  ;;  %v3977_v57 = vpop.f32.mrb[139].mxu1  ;;  %v4215_v30 = vmax.f32 %v3973_v25, 0.0  ;;  %v3335_v8 = vpop.permute.xlu0 %3334 }
 0x6fb   : > { %v8866_v6 = vpop.permute.xlu1 %3429 }
 0x6fc   : > { %v4216_v0 = vmax.f32 %v3976_v13, 0.0  ;;  %4187 = vmatmul.mubr.bf16.gmra.mrb[244].mxu1 %v7015_v49 }
 0x6fd   : > { %4194 = vmatprep.mubr.bf16.mxu1 %v7016_v12 }
 0x6fe   : > { %v8850_v20 = vpack.c.bf16 %v4216_v0, %v4215_v30 }
 0x6ff   : > { %v3980_v45 = vpop.f32.mrb[140].mxu1  ;;  %v3350_v37 = vpop.permute.xlu1 %3349 }
 0x700   : > { %v3981_v23 = vadd.f32 %v3980_v45, %v3315_v63  ;;  %v3982_v35 = vpop.f32.mrb[141].mxu1  ;;  %v8862_v63 = vpop.permute.xlu0 %3424 }
 0x701   : > { %v3983_v42 = vpop.f32.mrb[142].mxu1 }
 0x702   : > { %v3984_v52 = vadd.f32 %v3983_v42, %v3320_v41  ;;  %v3985_v14 = vpop.f32.mrb[143].mxu1  ;;  %v4217_v40 = vmax.f32 %v3981_v23, 0.0 }
 0x703   : > { %v8872_v30 = vpop.permute.xlu1 %3439 }
 0x704   : > { %v4218_v55 = vmax.f32 %v3984_v52, 0.0  ;;  %4195 = vmatmul.mubr.bf16.gmra.mrb[248].mxu1 %v7018_v11  ;;  %v3345_v34 = vpop.permute.xlu0 %3344 }
 0x705   : > { %4202 = vmatprep.mubr.bf16.mxu1 %v7019_v58 }
 0x706   : > { %v8856_v21 = vpack.c.bf16 %v4218_v55, %v4217_v40 }
 0x707   : > { %v3988_v50 = vpop.f32.mrb[144].mxu1  ;;  %v3360_v58 = vpop.permute.xlu1 %3359 }
 0x708   : > { %v3989_v16 = vadd.f32 %v3988_v50, %v3325_v4  ;;  %v3990_v32 = vpop.f32.mrb[145].mxu1  ;;  %v8870_v12 = vpop.permute.xlu0 %3434 }
 0x709   : > { %v3991_v5 = vpop.f32.mrb[146].mxu1 }
 0x70a   : > { %v3992_v27 = vadd.f32 %v3991_v5, %v3330_v22  ;;  %v3993_v53 = vpop.f32.mrb[147].mxu1  ;;  %v4219_v51 = vmax.f32 %v3989_v16, 0.0 }
 0x70c   : > { %v4220_v29 = vmax.f32 %v3992_v27, 0.0  ;;  %4203 = vmatmul.mubr.bf16.gmra.mrb[252].mxu1 %v7021_v54  ;;  %v3355_v23 = vpop.permute.xlu0 %3354 }
 0x70d   : > { %5139 = vmatprep.mubr.bf16.mxu1 %v5774_v17 }
 0x70e   : > { %v8864_v39 = vpack.c.bf16 %v4220_v29, %v4219_v51 }
 0x70f   : > { %v3996_v24 = vpop.f32.mrb[148].mxu1 }
 0x710   : > { %v3997_v48 = vadd.f32 %v3996_v24, %v3335_v8  ;;  %v3998_v41 = vpop.f32.mrb[149].mxu1 }
 0x711   : > { %v3999_v47 = vpop.f32.mrb[150].mxu1 }
 0x712   : > { %v4000_v15 = vadd.f32 %v3999_v47, %v3340_v60  ;;  %v4001_v9 = vpop.f32.mrb[151].mxu1  ;;  %v4221_v59 = vmax.f32 %v3997_v48, 0.0 }
 0x714   : > { %v4222_v38 = vmax.f32 %v4000_v15, 0.0 }
 0x716   : > { %v8868_v25 = vpack.c.bf16 %v4222_v38, %v4221_v59 }
 0x717   : > { %v4004_v43 = vpop.f32.mrb[152].mxu1 }
 0x718   : > { %v4005_v49 = vadd.f32 %v4004_v43, %v3345_v34  ;;  %v4006_v2 = vpop.f32.mrb[153].mxu1 }
 0x719   : > { %v4007_v13 = vpop.f32.mrb[154].mxu1 }
 0x71a   : > { %v4008_v57 = vadd.f32 %v4007_v13, %v3350_v37  ;;  %v4009_v4 = vpop.f32.mrb[155].mxu1  ;;  %v4223_v0 = vmax.f32 %v4005_v49, 0.0 }
 0x71c   : > { %v4224_v22 = vmax.f32 %v4008_v57, 0.0 }
 0x71e   : > { %v8874_v45 = vpack.c.bf16 %v4224_v22, %v4223_v0  ;;  %v8892_v22 = vpop.permute.xlu0 %3524 }
 0x71f   : > { %v4012_v35 = vpop.f32.mrb[156].mxu1 }
 0x720   : > { %v4013_v11 = vadd.f32 %v4012_v35, %v3355_v23  ;;  %v4014_v42 = vpop.f32.mrb[157].mxu1  ;;  %v8894_v35 = vpop.permute.xlu1 %3529 }
 0x721   : > { %v4015_v52 = vpop.f32.mrb[158].mxu1 }
 0x722   : > { %v4016_v14 = vadd.f32 %v4015_v52, %v3360_v58  ;;  %v4017_v40 = vpop.f32.mrb[159].mxu1  ;;  %v4225_v55 = vmax.f32 %v4013_v11, 0.0  ;;  %v3445_v52 = vpop.permute.xlu0 %3444 }
 0x724   : > { %v4226_v8 = vmax.f32 %v4016_v14, 0.0 }
 0x726   : > { %v8876_v50 = vpack.c.bf16 %v4226_v8, %v4225_v55  ;;  %v8900_v55 = vpop.permute.xlu1 %3449 }
 0x727   : > { %v4020_v16 = vpop.f32.mrb[160].mxu1 }
 0x728   : > { %v4021_v32 = vadd.f32 %v4020_v16, %v8826_v62  ;;  %v4022_v54 = vpop.f32.mrb[161].mxu1 }
 0x729   : > { %v4023_v60 = vpop.f32.mrb[162].mxu1  ;;  %v8903_v54 = vpop.permute.xlu0 %3534 }
 0x72a   : > { %v4024_v5 = vadd.f32 %v4023_v60, %v8828_v61  ;;  %v4025_v17 = vpop.f32.mrb[163].mxu1  ;;  %v4227_v27 = vmax.f32 %v4021_v32, 0.0 }
 0x72c   : > { %v4228_v53 = vmax.f32 %v4024_v5, 0.0  ;;  %v8908_v5 = vpop.permute.xlu1 %3539 }
 0x72e   : > { %v4283_v51 = vpack.c.bf16 %v4228_v53, %v4227_v27 }
 0x72f   : > { %v4028_v29 = vpop.f32.mrb[164].mxu1 }
 0x730   : > { %v4029_v24 = vadd.f32 %v4028_v29, %v8830_v28  ;;  %v4030_v48 = vpop.f32.mrb[165].mxu1  ;;  %6350 = vmatprep.subr.bf16.mxu0 %v4283_v51  ;;  %6550 = vmatprep.subr.bf16.mxu1 %v4283_v51  ;;  %v3455_v51 = vpop.permute.xlu0 %3454 }
 0x731   : > { %v4031_v41 = vpop.f32.mrb[166].mxu1  ;;  %6351 = vmatpush3.bf16.msra.mxu0 %v8842_v1  ;;  %6551 = vmatpush3.bf16.msra.mxu1 %v8842_v1  ;;  %v3460_v48 = vpop.permute.xlu1 %3459 }
 0x732   : > { %v4032_v62 = vadd.f32 %v4031_v41, %v8832_v44  ;;  %v4033_v47 = vpop.f32.mrb[167].mxu1  ;;  %v4229_v15 = vmax.f32 %v4029_v24, 0.0 }
 0x734   : > { %v4230_v61 = vmax.f32 %v4032_v62, 0.0 }
 0x736   : > { %v4284_v9 = vpack.c.bf16 %v4230_v61, %v4229_v15  ;;  %v8914_v15 = vpop.permute.xlu0 %3544 }
 0x737   : > { %v4036_v34 = vpop.f32.mrb[168].mxu1 }
 0x738   : > { %v4037_v59 = vadd.f32 %v4036_v34, %v8834_v18  ;;  %v4038_v38 = vpop.f32.mrb[169].mxu1  ;;  %6352 = vmatprep.subr.bf16.mxu0 %v4284_v9  ;;  %6552 = vmatprep.subr.bf16.mxu1 %v4284_v9  ;;  %v8916_v9 = vpop.permute.xlu1 %3549 }
 0x739   : > { %v4039_v28 = vpop.f32.mrb[170].mxu1  ;;  %6353 = vmatpush3.bf16.msra.mxu0 %v8846_v46  ;;  %6553 = vmatpush3.bf16.msra.mxu1 %v8846_v46 }
 0x73a   : > { %v4040_v37 = vadd.f32 %v4039_v28, %v8836_v33  ;;  %v4041_v1 = vpop.f32.mrb[171].mxu1  ;;  %v4231_v43 = vmax.f32 %v4037_v59, 0.0  ;;  %v3465_v28 = vpop.permute.xlu0 %3464 }
 0x73c   : > { %v4232_v44 = vmax.f32 %v4040_v37, 0.0 }
 0x73e   : > { %v4285_v49 = vpack.c.bf16 %v4232_v44, %v4231_v43  ;;  %v3470_v43 = vpop.permute.xlu1 %3469 }
 0x73f   : > { %v4044_v2 = vpop.f32.mrb[172].mxu1 }
 0x740   : > { %v4045_v13 = vadd.f32 %v4044_v2, %v8838_v19  ;;  %v4046_v57 = vpop.f32.mrb[173].mxu1  ;;  %6354 = vmatprep.subr.bf16.mxu0 %v4285_v49  ;;  %6554 = vmatprep.subr.bf16.mxu1 %v4285_v49 }
 0x741   : > { %v4047_v18 = vpop.f32.mrb[174].mxu1  ;;  %6355 = vmatpush3.bf16.msra.mxu0 %v8850_v20  ;;  %6555 = vmatpush3.bf16.msra.mxu1 %v8850_v20  ;;  %v5773_v57 = vcombine.low %v8858_v26, %v8858_v26 }
 0x742   : > { %v4048_v4 = vadd.f32 %v4047_v18, %v8840_v10  ;;  %v4049_v46 = vpop.f32.mrb[175].mxu1  ;;  %v4233_v0 = vmax.f32 %v4045_v13, 0.0  ;;  %v8924_v18 = vld [vmem:[#allocation7 + $0xfc8] sm:$0xff] }
 0x743   : > { %v5776_v46 = vcombine.high %v8924_v18, %v8924_v18 }
 0x744   : > { %v4234_v33 = vmax.f32 %v4048_v4, 0.0  ;;  %v7027_v4 = vld [vmem:[#allocation7 + $0xe24] ss:$16 sps:$4 sm:$0xff]  }
 0x746   : > { %v4286_v23 = vpack.c.bf16 %v4234_v33, %v4233_v0 }
 0x747   : > { %v4052_v11 = vpop.f32.mrb[176].mxu1 }
 0x748   : > { %v4053_v19 = vadd.f32 %v4052_v11, %v8844_v7  ;;  %v4054_v42 = vpop.f32.mrb[177].mxu1  ;;  %6356 = vmatprep.subr.bf16.mxu0 %v4286_v23  ;;  %6556 = vmatprep.subr.bf16.mxu1 %v4286_v23  ;;  %v8933_v23 = vpop.permute.xlu1 %3559 }
 0x749   : > { %v4055_v58 = vpop.f32.mrb[178].mxu1  ;;  %6357 = vmatpush3.bf16.msra.mxu0 %v8856_v21  ;;  %6557 = vmatpush3.bf16.msra.mxu1 %v8856_v21 }
 0x74a   : > { %v4056_v10 = vadd.f32 %v4055_v58, %v8848_v31  ;;  %v4057_v20 = vpop.f32.mrb[179].mxu1  ;;  %v4235_v14 = vmax.f32 %v4053_v19, 0.0 }
 0x74b   : > { %v7029_v20 = vld [vmem:[#allocation7 + $0xe20] ss:$16 sps:$4 sm:$0xff]  }
 0x74c   : > { %v4236_v40 = vmax.f32 %v4056_v10, 0.0 }
 0x74e   : > { %v4287_v8 = vpack.c.bf16 %v4236_v40, %v4235_v14  ;;  %v7030_v40 = vld [vmem:[#allocation7 + $0xe44] ss:$16 sps:$4 sm:$0xff]  }
 0x74f   : > { %v4060_v16 = vpop.f32.mrb[180].mxu1 }
 0x750   : > { %v4061_v7 = vadd.f32 %v4060_v16, %v8852_v56  ;;  %v4062_v32 = vpop.f32.mrb[181].mxu1  ;;  %6358 = vmatprep.subr.bf16.mxu0 %v4287_v8  ;;  %6558 = vmatprep.subr.bf16.mxu1 %v4287_v8 }
 0x751   : > { %v4063_v60 = vpop.f32.mrb[182].mxu1  ;;  %6359 = vmatpush3.bf16.msra.mxu0 %v8864_v39  ;;  %6559 = vmatpush3.bf16.msra.mxu1 %v8864_v39 }
 0x752   : > { %v4064_v31 = vadd.f32 %v4063_v60, %v8854_v3  ;;  %v4065_v21 = vpop.f32.mrb[183].mxu1  ;;  %v4237_v17 = vmax.f32 %v4061_v7, 0.0 }
 0x754   : > { %v4238_v27 = vmax.f32 %v4064_v31, 0.0 }
 0x756   : > { %v4288_v53 = vpack.c.bf16 %v4238_v27, %v4237_v17 }
 0x757   : > { %v4068_v56 = vpop.f32.mrb[184].mxu1 }
 0x758   : > { %v4069_v29 = vadd.f32 %v4068_v56, %v8862_v63  ;;  %v4070_v24 = vpop.f32.mrb[185].mxu1  ;;  %6360 = vmatprep.subr.bf16.mxu0 %v4288_v53  ;;  %6560 = vmatprep.subr.bf16.mxu1 %v4288_v53  ;;  %v7032_v53 = vld [vmem:[#allocation7 + $0xe40] ss:$16 sps:$4 sm:$0xff]   ;;  %v7033_v56 = vld [vmem:[#allocation7 + $0xe64] ss:$16 sps:$4 sm:$0xff]  }
 0x759   : > { %v4071_v41 = vpop.f32.mrb[186].mxu1  ;;  %6361 = vmatpush3.bf16.msra.mxu0 %v8868_v25  ;;  %6561 = vmatpush3.bf16.msra.mxu1 %v8868_v25 }
 0x75a   : > { %v4072_v3 = vadd.f32 %v4071_v41, %v8866_v6  ;;  %v4073_v39 = vpop.f32.mrb[187].mxu1  ;;  %v4239_v62 = vmax.f32 %v4069_v29, 0.0 }
 0x75c   : > { %v4240_v47 = vmax.f32 %v4072_v3, 0.0 }
 0x75e   : > { %v4289_v61 = vpack.c.bf16 %v4240_v47, %v4239_v62 }
 0x75f   : > { %v4076_v63 = vpop.f32.mrb[188].mxu1 }
 0x760   : > { %v4077_v34 = vadd.f32 %v4076_v63, %v8870_v12  ;;  %v4078_v59 = vpop.f32.mrb[189].mxu1  ;;  %6362 = vmatprep.subr.bf16.mxu0 %v4289_v61  ;;  %6562 = vmatprep.subr.bf16.mxu1 %v4289_v61  ;;  %v7022_v12 = vld [vmem:[#allocation7 + $0xe00] ss:$16 sps:$4 sm:$0xff]  }
 0x761   : > { %v4079_v38 = vpop.f32.mrb[190].mxu1  ;;  %6363 = vmatpush3.bf16.msra.mxu0 %v8874_v45  ;;  %6563 = vmatpush3.bf16.msra.mxu1 %v8874_v45  ;;  %v8926_v45 = vpop.permute.xlu0 %3554 }
 0x762   : > { %v4080_v6 = vadd.f32 %v4079_v38, %v8872_v30  ;;  %v4081_v25 = vpop.f32.mrb[191].mxu1  ;;  %v4241_v37 = vmax.f32 %v4077_v34, 0.0  ;;  %v7035_v34 = vld [vmem:[#allocation7 + $0xe60] ss:$16 sps:$4 sm:$0xff]  }
 0x764   : > { %v4242_v1 = vmax.f32 %v4080_v6, 0.0  ;;  %v7036_v6 = vld [vmem:[#allocation7 + $0xe84] ss:$16 sps:$4 sm:$0xff]  }
 0x765   : > { %v3475_v42 = vpop.permute.xlu0 %3474 }
 0x766   : > { %v4290_v44 = vpack.c.bf16 %v4242_v1, %v4241_v37 }
 0x767   : > { %v4084_v49 = vpop.f32.mrb[192].mxu1 }
 0x768   : > { %v4085_v2 = vadd.f32 %v4084_v49, %v3445_v52  ;;  %v4086_v13 = vpop.f32.mrb[193].mxu1  ;;  %6364 = vmatprep.subr.bf16.mxu0 %v4290_v44  ;;  %6564 = vmatprep.subr.bf16.mxu1 %v4290_v44  ;;  %v3480_v52 = vpop.permute.xlu1 %3479 }
 0x769   : > { %v4087_v30 = vpop.f32.mrb[194].mxu1  ;;  %6365 = vmatpush3.bf16.msra.mxu0 %v8876_v50  ;;  %6565 = vmatpush3.bf16.msra.mxu1 %v8876_v50  ;;  %v8937_v32 = vpop.permute.xlu0 %3564 }
 0x76a   : > { %v4088_v0 = vadd.f32 %v4087_v30, %v8900_v55  ;;  %v4089_v33 = vpop.f32.mrb[195].mxu1  ;;  %v4243_v11 = vmax.f32 %v4085_v2, 0.0 }
 0x76c   : > { %v4244_v26 = vmax.f32 %v4088_v0, 0.0  ;;  %4830 = vmatmul.mubr.bf16.vlgmr.msra.gmra.mrb[192].mxu0 %v7022_v12  ;;  %5140 = vmatmul.mubr.bf16.vlgmr.msra.gmra.mrb[0].mxu1 %v5773_v57  ;;  %v8941_v31 = vpop.permute.xlu1 %3569  ;;  %v7038_v57 = vld [vmem:[#allocation7 + $0xe80] ss:$16 sps:$4 sm:$0xff]  }
 0x76d   : > { %4837 = vmatprep.mubr.bf16.mxu0 %v7027_v4  ;;  %5179 = vmatprep.mubr.bf16.mxu1 %v5776_v46  ;;  %v7039_v46 = vld [vmem:[#allocation7 + $0xea4] ss:$16 sps:$4 sm:$0xff]  }
 0x76e   : > { %v8935_v19 = vpack.c.bf16 %v4244_v26, %v4243_v11 }
 0x76f   : > { %v4092_v58 = vpop.f32.mrb[196].mxu1 }
 0x770   : > { %v4093_v50 = vadd.f32 %v4092_v58, %v3455_v51  ;;  %v4094_v10 = vpop.f32.mrb[197].mxu1  ;;  %v3490_v39 = vpop.permute.xlu1 %3489 }
 0x771   : > { %v4095_v14 = vpop.f32.mrb[198].mxu1 }
 0x772   : > { %v4096_v55 = vadd.f32 %v4095_v14, %v3460_v48  ;;  %v4097_v8 = vpop.f32.mrb[199].mxu1  ;;  %v4245_v16 = vmax.f32 %v4093_v50, 0.0  ;;  %v3485_v48 = vpop.permute.xlu0 %3484  ;;  %v7041_v14 = vld [vmem:[#allocation7 + $0xea0] ss:$16 sps:$4 sm:$0xff]  }
 0x774   : > { %v4246_v7 = vmax.f32 %v4096_v55, 0.0  ;;  %4838 = vmatmul.mubr.bf16.gmra.mrb[196].mxu0 %v7029_v20  ;;  %v8947_v37 = vpop.permute.xlu1 %3579  ;;  %v7042_v55 = vld [vmem:[#allocation7 + $0xec4] ss:$16 sps:$4 sm:$0xff]  }
 0x775   : > { %4845 = vmatprep.mubr.bf16.mxu0 %v7030_v40 }
 0x776   : > { %v8939_v60 = vpack.c.bf16 %v4246_v7, %v4245_v16  ;;  %v8945_v59 = vpop.permute.xlu0 %3574 }
 0x777   : > { %v4100_v21 = vpop.f32.mrb[200].mxu1 }
 0x778   : > { %v4101_v17 = vadd.f32 %v4100_v21, %v3465_v28  ;;  %v4102_v27 = vpop.f32.mrb[201].mxu1  ;;  %v3500_v30 = vpop.permute.xlu1 %3499 }
 0x779   : > { %v4103_v51 = vpop.f32.mrb[202].mxu1 }
 0x77a   : > { %v4104_v29 = vadd.f32 %v4103_v51, %v3470_v43  ;;  %v4105_v24 = vpop.f32.mrb[203].mxu1  ;;  %v4247_v41 = vmax.f32 %v4101_v17, 0.0  ;;  %v3495_v49 = vpop.permute.xlu0 %3494 }
 0x77b   : > { %v7044_v24 = vld [vmem:[#allocation7 + $0xec0] ss:$16 sps:$4 sm:$0xff]  }
 0x77c   : > { %v4248_v3 = vmax.f32 %v4104_v29, 0.0  ;;  %4846 = vmatmul.mubr.bf16.gmra.mrb[200].mxu0 %v7032_v53  ;;  %v8955_v50 = vpop.permute.xlu1 %3589 }
 0x77d   : > { %4853 = vmatprep.mubr.bf16.mxu0 %v7033_v56 }
 0x77e   : > { %v8943_v62 = vpack.c.bf16 %v4248_v3, %v4247_v41  ;;  %v7045_v3 = vld [vmem:[#allocation7 + $0xee4] ss:$16 sps:$4 sm:$0xff]  }
 0x77f   : > { %v4108_v47 = vpop.f32.mrb[204].mxu1 }
 0x780   : > { %v4109_v61 = vadd.f32 %v4108_v47, %v3475_v42  ;;  %v4110_v63 = vpop.f32.mrb[205].mxu1  ;;  %v8951_v42 = vpop.permute.xlu0 %3584 }
 0x781   : > { %v4111_v38 = vpop.f32.mrb[206].mxu1  ;;  %v3510_v27 = vpop.permute.xlu1 %3509 }
 0x782   : > { %v4112_v25 = vadd.f32 %v4111_v38, %v3480_v52  ;;  %v4113_v28 = vpop.f32.mrb[207].mxu1  ;;  %v4249_v1 = vmax.f32 %v4109_v61, 0.0 }
 0x784   : > { %v4250_v43 = vmax.f32 %v4112_v25, 0.0  ;;  %4854 = vmatmul.mubr.bf16.gmra.mrb[204].mxu0 %v7035_v34  ;;  %v3505_v7 = vpop.permute.xlu0 %3504 }
 0x785   : > { %4861 = vmatprep.mubr.bf16.mxu0 %v7036_v6  ;;  %v8961_v61 = vpop.permute.xlu1 %3599 }
 0x786   : > { %v8949_v44 = vpack.c.bf16 %v4250_v43, %v4249_v1  ;;  %v7047_v43 = vld [vmem:[#allocation7 + $0xee0] ss:$16 sps:$4 sm:$0xff]  }
 0x787   : > { %v4116_v2 = vpop.f32.mrb[208].mxu1 }
 0x788   : > { %v4117_v13 = vadd.f32 %v4116_v2, %v3485_v48  ;;  %v4118_v12 = vpop.f32.mrb[209].mxu1  ;;  %v8959_v48 = vpop.permute.xlu0 %3594 }
 0x789   : > { %v4119_v4 = vpop.f32.mrb[210].mxu1 }
 0x78a   : > { %v4120_v0 = vadd.f32 %v4119_v4, %v3490_v39  ;;  %v4121_v33 = vpop.f32.mrb[211].mxu1  ;;  %v4251_v11 = vmax.f32 %v4117_v13, 0.0  ;;  %v7048_v13 = vld [vmem:[#allocation7 + $0xf04] ss:$16 sps:$4 sm:$0xff]  }
 0x78c   : > { %v4252_v26 = vmax.f32 %v4120_v0, 0.0  ;;  %4862 = vmatmul.mubr.bf16.gmra.mrb[208].mxu0 %v7038_v57  ;;  %v3515_v6 = vpop.permute.xlu0 %3514 }
 0x78d   : > { %4869 = vmatprep.mubr.bf16.mxu0 %v7039_v46 }
 0x78e   : > { %v8953_v58 = vpack.c.bf16 %v4252_v26, %v4251_v11  ;;  %v7050_v26 = vld [vmem:[#allocation7 + $0xf00] ss:$16 sps:$4 sm:$0xff]  }
 0x78f   : > { %v4124_v10 = vpop.f32.mrb[212].mxu1 }
 0x790   : > { %v4125_v20 = vadd.f32 %v4124_v10, %v3495_v49  ;;  %v4126_v52 = vpop.f32.mrb[213].mxu1  ;;  %v3520_v49 = vpop.permute.xlu1 %3519 }
 0x791   : > { %v4127_v40 = vpop.f32.mrb[214].mxu1 }
 0x792   : > { %v4128_v8 = vadd.f32 %v4127_v40, %v3500_v30  ;;  %v4129_v16 = vpop.f32.mrb[215].mxu1  ;;  %v4253_v21 = vmax.f32 %v4125_v20, 0.0  ;;  %v7051_v20 = vld [vmem:[#allocation7 + $0xf24] ss:$16 sps:$4 sm:$0xff]  }
 0x794   : > { %v4254_v17 = vmax.f32 %v4128_v8, 0.0  ;;  %4870 = vmatmul.mubr.bf16.gmra.mrb[212].mxu0 %v7041_v14 }
 0x795   : > { %4877 = vmatprep.mubr.bf16.mxu0 %v7042_v55 }
 0x796   : > { %v8957_v53 = vpack.c.bf16 %v4254_v17, %v4253_v21  ;;  %v7053_v17 = vld [vmem:[#allocation7 + $0xf20] ss:$16 sps:$4 sm:$0xff]  }
 0x797   : > { %v4132_v51 = vpop.f32.mrb[216].mxu1 }
 0x798   : > { %v4133_v56 = vadd.f32 %v4132_v51, %v3505_v7  ;;  %v4134_v29 = vpop.f32.mrb[217].mxu1 }
 0x799   : > { %v4135_v41 = vpop.f32.mrb[218].mxu1 }
 0x79a   : > { %v4136_v39 = vadd.f32 %v4135_v41, %v3510_v27  ;;  %v4137_v47 = vpop.f32.mrb[219].mxu1  ;;  %v4255_v63 = vmax.f32 %v4133_v56, 0.0  ;;  %v7054_v27 = vld [vmem:[#allocation7 + $0xf44] ss:$16 sps:$4 sm:$0xff]  }
 0x79c   : > { %v4256_v34 = vmax.f32 %v4136_v39, 0.0  ;;  %4878 = vmatmul.mubr.bf16.gmra.mrb[216].mxu0 %v7044_v24  ;;  %v7056_v39 = vld [vmem:[#allocation7 + $0xf40] ss:$16 sps:$4 sm:$0xff]  }
 0x79d   : > { %4885 = vmatprep.mubr.bf16.mxu0 %v7045_v3 }
 0x79e   : > { %v8963_v38 = vpack.c.bf16 %v4256_v34, %v4255_v63 }
 0x79f   : > { %v4140_v25 = vpop.f32.mrb[220].mxu1 }
 0x7a0   : > { %v4141_v28 = vadd.f32 %v4140_v25, %v3515_v6  ;;  %v4142_v1 = vpop.f32.mrb[221].mxu1 }
 0x7a1   : > { %v4143_v2 = vpop.f32.mrb[222].mxu1 }
 0x7a2   : > { %v4144_v12 = vadd.f32 %v4143_v2, %v3520_v49  ;;  %v4145_v57 = vpop.f32.mrb[223].mxu1  ;;  %v4257_v30 = vmax.f32 %v4141_v28, 0.0 }
 0x7a4   : > { %v4258_v4 = vmax.f32 %v4144_v12, 0.0  ;;  %4886 = vmatmul.mubr.bf16.gmra.mrb[220].mxu0 %v7047_v43  ;;  %v7059_v43 = vld [vmem:[#allocation7 + $0xf60] ss:$16 sps:$4 sm:$0xff]  }
 0x7a5   : > { %4893 = vmatprep.mubr.bf16.mxu0 %v7048_v13 }
 0x7a6   : > { %v8965_v46 = vpack.c.bf16 %v4258_v4, %v4257_v30  ;;  %v4359_v30 = vld [vmem:[#allocation7 + $0xfa0] sm:$0xff] }
 0x7a7   : > { %v4148_v0 = vpop.f32.mrb[224].mxu1 }
 0x7a8   : > { %v4149_v33 = vadd.f32 %v4148_v0, %v8892_v22  ;;  %v4150_v11 = vpop.f32.mrb[225].mxu1 }
 0x7a9   : > { %v4151_v10 = vpop.f32.mrb[226].mxu1 }
 0x7aa   : > { %v4152_v52 = vadd.f32 %v4151_v10, %v8894_v35  ;;  %v4153_v14 = vpop.f32.mrb[227].mxu1  ;;  %v4259_v40 = vmax.f32 %v4149_v33, 0.0  ;;  %v7062_v33 = vld [vmem:[#allocation7 + $0xf80] ss:$16 sps:$4 sm:$0xff]  }
 0x7ac   : > { %v4260_v55 = vmax.f32 %v4152_v52, 0.0  ;;  %4894 = vmatmul.mubr.bf16.gmra.mrb[224].mxu0 %v7050_v26 }
 0x7ad   : > { %4901 = vmatprep.mubr.bf16.mxu0 %v7051_v20 }
 0x7ae   : > { %v4299_v8 = vpack.c.bf16 %v4260_v55, %v4259_v40  ;;  %v5769_v55 = vcombine.low %v4359_v30, %v4359_v30 }
 0x7af   : > { %v4156_v16 = vpop.f32.mrb[228].mxu1 }
 0x7b0   : > { %v4157_v7 = vadd.f32 %v4156_v16, %v8903_v54  ;;  %v4158_v21 = vpop.f32.mrb[229].mxu1  ;;  %6450 = vmatprep.subr.bf16.mxu0 %v4299_v8  ;;  %6572 = vmatprep.subr.bf16.mxu1 %v4299_v8 }
 0x7b1   : > { %v4159_v22 = vpop.f32.mrb[230].mxu1  ;;  %6451 = vmatpush3.bf16.msra.mxu0 %v8935_v19  ;;  %6573 = vmatpush3.bf16.msra.mxu1 %v8935_v19  ;;  %v7057_v19 = vld [vmem:[#allocation7 + $0xf64] ss:$16 sps:$4 sm:$0xff]  }
 0x7b2   : > { %v4160_v35 = vadd.f32 %v4159_v22, %v8908_v5  ;;  %v4161_v51 = vpop.f32.mrb[231].mxu1  ;;  %v4261_v56 = vmax.f32 %v4157_v7, 0.0 }
 0x7b4   : > { %v4262_v29 = vmax.f32 %v4160_v35, 0.0  ;;  %4902 = vmatmul.mubr.bf16.gmra.mrb[228].mxu0 %v7053_v17 }
 0x7b5   : > { %4909 = vmatprep.mubr.bf16.mxu0 %v7054_v27 }
 0x7b6   : > { %v4300_v24 = vpack.c.bf16 %v4262_v29, %v4261_v56 }
 0x7b7   : > { %v4164_v41 = vpop.f32.mrb[232].mxu1 }
 0x7b8   : > { %v4165_v54 = vadd.f32 %v4164_v41, %v8914_v15  ;;  %v4166_v3 = vpop.f32.mrb[233].mxu1  ;;  %6452 = vmatprep.subr.bf16.mxu0 %v4300_v24  ;;  %6574 = vmatprep.subr.bf16.mxu1 %v4300_v24 }
 0x7b9   : > { %v4167_v47 = vpop.f32.mrb[234].mxu1  ;;  %6453 = vmatpush3.bf16.msra.mxu0 %v8939_v60  ;;  %6575 = vmatpush3.bf16.msra.mxu1 %v8939_v60  ;;  %v7060_v60 = vld [vmem:[#allocation7 + $0xf84] ss:$16 sps:$4 sm:$0xff]  }
 0x7ba   : > { %v4168_v5 = vadd.f32 %v4167_v47, %v8916_v9  ;;  %v4169_v63 = vpop.f32.mrb[235].mxu1  ;;  %v4263_v34 = vmax.f32 %v4165_v54, 0.0 }
 0x7bb   : > { %v7073_v63 = vld [vmem:[#allocation7 + $0xe48] ss:$16 sps:$4 sm:$0xff]  }
 0x7bc   : > { %v4264_v6 = vmax.f32 %v4168_v5, 0.0  ;;  %4910 = vmatmul.mubr.bf16.gmra.mrb[232].mxu0 %v7056_v39  ;;  %v7070_v5 = vld [vmem:[#allocation7 + $0xe2c] ss:$16 sps:$4 sm:$0xff]  }
 0x7bd   : > { %4917 = vmatprep.mubr.bf16.mxu0 %v7057_v19  ;;  %v7065_v19 = vld [vmem:[#allocation7 + $0xe08] ss:$16 sps:$4 sm:$0xff]  }
 0x7be   : > { %v4301_v25 = vpack.c.bf16 %v4264_v6, %v4263_v34  ;;  %v7078_v34 = vld [vmem:[#allocation7 + $0xe6c] ss:$16 sps:$4 sm:$0xff]   ;;  %v7076_v6 = vld [vmem:[#allocation7 + $0xe68] ss:$16 sps:$4 sm:$0xff]  }
 0x7bf   : > { %v4172_v28 = vpop.f32.mrb[236].mxu1 }
 0x7c0   : > { %v4173_v15 = vadd.f32 %v4172_v28, %v8926_v45  ;;  %v4174_v1 = vpop.f32.mrb[237].mxu1  ;;  %6454 = vmatprep.subr.bf16.mxu0 %v4301_v25  ;;  %6576 = vmatprep.subr.bf16.mxu1 %v4301_v25  ;;  %v7079_v25 = vld [vmem:[#allocation7 + $0xe88] ss:$16 sps:$4 sm:$0xff]  }
 0x7c1   : > { %v4175_v49 = vpop.f32.mrb[238].mxu1  ;;  %6455 = vmatpush3.bf16.msra.mxu0 %v8943_v62  ;;  %6577 = vmatpush3.bf16.msra.mxu1 %v8943_v62  ;;  %v7082_v28 = vld [vmem:[#allocation7 + $0xea8] ss:$16 sps:$4 sm:$0xff]  }
 0x7c2   : > { %v4176_v9 = vadd.f32 %v4175_v49, %v8933_v23  ;;  %v4177_v2 = vpop.f32.mrb[239].mxu1  ;;  %v4265_v13 = vmax.f32 %v4173_v15, 0.0  ;;  %v5770_v23 = vcombine.high %v4359_v30, %v4359_v30  ;;  %v7087_v15 = vld [vmem:[#allocation7 + $0xecc] ss:$16 sps:$4 sm:$0xff]   ;;  %v7085_v1 = vld [vmem:[#allocation7 + $0xec8] ss:$16 sps:$4 sm:$0xff]  }
 0x7c3   : > { %v7088_v49 = vld [vmem:[#allocation7 + $0xee8] ss:$16 sps:$4 sm:$0xff]   ;;  %v7096_v2 = vld [vmem:[#allocation7 + $0xf2c] ss:$16 sps:$4 sm:$0xff]  }
 0x7c4   : > { %v4266_v12 = vmax.f32 %v4176_v9, 0.0  ;;  %4918 = vmatmul.mubr.bf16.gmra.mrb[236].mxu0 %v7059_v43  ;;  %v7090_v43 = vld [vmem:[#allocation7 + $0xeec] ss:$16 sps:$4 sm:$0xff]   ;;  %v7091_v9 = vld [vmem:[#allocation7 + $0xf08] ss:$16 sps:$4 sm:$0xff]  }
 0x7c5   : > { %4925 = vmatprep.mubr.bf16.mxu0 %v7060_v60  ;;  %v7093_v60 = vld [vmem:[#allocation7 + $0xf0c] ss:$16 sps:$4 sm:$0xff]  }
 0x7c6   : > { %v4302_v57 = vpack.c.bf16 %v4266_v12, %v4265_v13  ;;  %v7094_v13 = vld [vmem:[#allocation7 + $0xf28] ss:$16 sps:$4 sm:$0xff]   ;;  %v7099_v12 = vld [vmem:[#allocation7 + $0xf4c] ss:$16 sps:$4 sm:$0xff]  }
 0x7c7   : > { %v4180_v45 = vpop.f32.mrb[240].mxu1  ;;  %v7102_v30 = vld [vmem:[#allocation7 + $0xf6c] ss:$16 sps:$4 sm:$0xff]  }
 0x7c8   : > { %v4181_v4 = vadd.f32 %v4180_v45, %v8937_v32  ;;  %v4182_v0 = vpop.f32.mrb[241].mxu1  ;;  %6456 = vmatprep.subr.bf16.mxu0 %v4302_v57  ;;  %6578 = vmatprep.subr.bf16.mxu1 %v4302_v57  ;;  %v7097_v57 = vld [vmem:[#allocation7 + $0xf48] ss:$16 sps:$4 sm:$0xff]  }
 0x7c9   : > { %v4183_v11 = vpop.f32.mrb[242].mxu1  ;;  %6457 = vmatpush3.bf16.msra.mxu0 %v8949_v44  ;;  %6579 = vmatpush3.bf16.msra.mxu1 %v8949_v44  ;;  %v7067_v44 = vld [vmem:[#allocation7 + $0xe0c] ss:$16 sps:$4 sm:$0xff]  }
 0x7ca   : > { %v4184_v62 = vadd.f32 %v4183_v11, %v8941_v31  ;;  %v4185_v26 = vpop.f32.mrb[243].mxu1  ;;  %v4267_v10 = vmax.f32 %v4181_v4, 0.0  ;;  %v7100_v11 = vld [vmem:[#allocation7 + $0xf68] ss:$16 sps:$4 sm:$0xff]  }
 0x7cc   : > { %v4268_v20 = vmax.f32 %v4184_v62, 0.0  ;;  %4926 = vmatmul.mubr.bf16.gmra.mrb[240].mxu0 %v7062_v33 }
 0x7cd   : > { %4933 = vmatprep.mubr.bf16.mxu0 %v5770_v23 }
 0x7ce   : > { %v4303_v52 = vpack.c.bf16 %v4268_v20, %v4267_v10  ;;  %v7105_v10 = vld [vmem:[#allocation7 + $0xf8c] ss:$16 sps:$4 sm:$0xff]  }
 0x7cf   : > { %v4188_v14 = vpop.f32.mrb[244].mxu1 }
 0x7d0   : > { %v4189_v32 = vadd.f32 %v4188_v14, %v8945_v59  ;;  %v4190_v40 = vpop.f32.mrb[245].mxu1  ;;  %6458 = vmatprep.subr.bf16.mxu0 %v4303_v52  ;;  %6580 = vmatprep.subr.bf16.mxu1 %v4303_v52 }
 0x7d1   : > { %v4191_v8 = vpop.f32.mrb[246].mxu1  ;;  %6459 = vmatpush3.bf16.msra.mxu0 %v8953_v58  ;;  %6581 = vmatpush3.bf16.msra.mxu1 %v8953_v58  ;;  %v4360_v40 = vld [vmem:[#allocation7 + $0xfa8] sm:$0xff] }
 0x7d2   : > { %v4192_v31 = vadd.f32 %v4191_v8, %v8947_v37  ;;  %v4193_v16 = vpop.f32.mrb[247].mxu1  ;;  %v4269_v7 = vmax.f32 %v4189_v32, 0.0 }
 0x7d4   : > { %v4270_v21 = vmax.f32 %v4192_v31, 0.0  ;;  %4934 = vmatmul.mubr.bf16.gmra.mrb[244].mxu0 %v5769_v55 }
 0x7d5   : > { %4973 = vmatprep.mubr.bf16.mxu0 %v7067_v44  ;;  %v7103_v44 = vld [vmem:[#allocation7 + $0xf88] ss:$16 sps:$4 sm:$0xff]  }
 0x7d6   : > { %v4304_v17 = vpack.c.bf16 %v4270_v21, %v4269_v7  ;;  %v5772_v7 = vcombine.high %v4360_v40, %v4360_v40  ;;  %v9010_v21 = vpop.permute.xlu1 %4395 }
 0x7d7   : > { %v4196_v22 = vpop.f32.mrb[248].mxu1 }
 0x7d8   : > { %v4197_v59 = vadd.f32 %v4196_v22, %v8951_v42  ;;  %v4198_v27 = vpop.f32.mrb[249].mxu1  ;;  %6460 = vmatprep.subr.bf16.mxu0 %v4304_v17  ;;  %6582 = vmatprep.subr.bf16.mxu1 %v4304_v17 }
 0x7d9   : > { %v4199_v35 = vpop.f32.mrb[250].mxu1  ;;  %6461 = vmatpush3.bf16.msra.mxu0 %v8957_v53  ;;  %6583 = vmatpush3.bf16.msra.mxu1 %v8957_v53 }
 0x7da   : > { %v4200_v58 = vadd.f32 %v4199_v35, %v8955_v50  ;;  %v4201_v37 = vpop.f32.mrb[251].mxu1  ;;  %v4271_v51 = vmax.f32 %v4197_v59, 0.0  ;;  %v9014_v27 = vpop.permute.xlu1 %4405 }
 0x7dc   : > { %v4272_v56 = vmax.f32 %v4200_v58, 0.0  ;;  %v5771_v58 = vcombine.low %v4360_v40, %v4360_v40 }
 0x7de   : > { %v4305_v29 = vpack.c.bf16 %v4272_v56, %v4271_v51 }
 0x7df   : > { %v4204_v24 = vpop.f32.mrb[252].mxu1 }
 0x7e0   : > { %v4205_v41 = vadd.f32 %v4204_v24, %v8959_v48  ;;  %v4206_v54 = vpop.f32.mrb[253].mxu1  ;;  %6462 = vmatprep.subr.bf16.mxu0 %v4305_v29  ;;  %6584 = vmatprep.subr.bf16.mxu1 %v4305_v29  ;;  %v5775_v48 = vcombine.low %v8924_v18, %v8924_v18  ;;  %v7081_v18 = vld [vmem:[#allocation7 + $0xe8c] ss:$16 sps:$4 sm:$0xff]   ;;  %v9020_v24 = vpop.permute.xlu1 %4415 }
 0x7e1   : > { %v4207_v42 = vpop.f32.mrb[254].mxu1  ;;  %6463 = vmatpush3.bf16.msra.mxu0 %v8963_v38  ;;  %6585 = vmatpush3.bf16.msra.mxu1 %v8963_v38  ;;  %v7075_v38 = vld [vmem:[#allocation7 + $0xe4c] ss:$16 sps:$4 sm:$0xff]  }
 0x7e2   : > { %v4208_v3 = vadd.f32 %v4207_v42, %v8961_v61  ;;  %v4209_v53 = vpop.f32.mrb[255].mxu1  ;;  %v4273_v39 = vmax.f32 %v4205_v41, 0.0  ;;  %v7072_v61 = vld [vmem:[#allocation7 + $0xe28] ss:$16 sps:$4 sm:$0xff]  }
 0x7e4   : > { %v4274_v50 = vmax.f32 %v4208_v3, 0.0 }
 0x7e6   : > { %v4306_v47 = vpack.c.bf16 %v4274_v50, %v4273_v39  ;;  %v4426_v50 = vpop.permute.xlu1 %4425 }
 0x7e8   : > { %6464 = vmatprep.subr.bf16.mxu0 %v4306_v47  ;;  %6586 = vmatprep.subr.bf16.mxu1 %v4306_v47 }
 0x7e9   : > { %6465 = vmatpush3.bf16.msra.mxu0 %v8965_v46  ;;  %6587 = vmatpush3.bf16.msra.mxu1 %v8965_v46  ;;  %v7084_v46 = vld [vmem:[#allocation7 + $0xeac] ss:$16 sps:$4 sm:$0xff]  }
 0x7ea   : > { %5278 = vmatprep.subr.bf16.mxu1 %v9361_v36 }
 0x7ec   : > { %4974 = vmatmul.mubr.bf16.vlgmr.msra.gmra.mrb[248].mxu0 %v7065_v19  ;;  %5180 = vmatmul.mubr.bf16.vlgmr.msra.gmra.mrb[4].mxu1 %v5775_v48 }
 0x7ed   : > { %4981 = vmatprep.mubr.bf16.mxu0 %v7070_v5 }
 0x7f4   : > { %4982 = vmatmul.mubr.bf16.gmra.mrb[252].mxu0 %v7072_v61 }
 0x7f5   : > { %4989 = vmatprep.mubr.bf16.mxu0 %v7075_v38 }
 0x7fc   : > { %4990 = vmatmul.mubr.bf16.gmra.mrb[0].mxu0 %v7073_v63 }
 0x7fd   : > { %4997 = vmatprep.mubr.bf16.mxu0 %v7078_v34 }
 0x804   : > { %4998 = vmatmul.mubr.bf16.gmra.mrb[4].mxu0 %v7076_v6 }
 0x805   : > { %5005 = vmatprep.mubr.bf16.mxu0 %v7081_v18 }
 0x80c   : > { %5006 = vmatmul.mubr.bf16.gmra.mrb[8].mxu0 %v7079_v25 }
 0x80d   : > { %5013 = vmatprep.mubr.bf16.mxu0 %v7084_v46 }
 0x814   : > { %5014 = vmatmul.mubr.bf16.gmra.mrb[12].mxu0 %v7082_v28 }
 0x815   : > { %5021 = vmatprep.mubr.bf16.mxu0 %v7087_v15 }
 0x81c   : > { %5022 = vmatmul.mubr.bf16.gmra.mrb[16].mxu0 %v7085_v1 }
 0x81d   : > { %5029 = vmatprep.mubr.bf16.mxu0 %v7090_v43 }
 0x824   : > { %5030 = vmatmul.mubr.bf16.gmra.mrb[20].mxu0 %v7088_v49 }
 0x825   : > { %5037 = vmatprep.mubr.bf16.mxu0 %v7093_v60 }
 0x82c   : > { %5038 = vmatmul.mubr.bf16.gmra.mrb[24].mxu0 %v7091_v9 }
 0x82d   : > { %5045 = vmatprep.mubr.bf16.mxu0 %v7096_v2 }
 0x834   : > { %5046 = vmatmul.mubr.bf16.gmra.mrb[28].mxu0 %v7094_v13 }
 0x835   : > { %5053 = vmatprep.mubr.bf16.mxu0 %v7099_v12 }
 0x83c   : > { %5054 = vmatmul.mubr.bf16.gmra.mrb[32].mxu0 %v7097_v57 }
 0x83d   : > { %5061 = vmatprep.mubr.bf16.mxu0 %v7102_v30 }
 0x83f   : > { %v6366_v45 = vpop.f32.mrb[192].mxu0  ;;  %v6566_v4 = vpop.f32.mrb[0].mxu1 }
 0x840   : > { %v6367_v0 = vpop.f32.mrb[193].mxu0  ;;  %v6567_v33 = vpop.f32.mrb[1].mxu1 }
 0x841   : > { %v9002_v23 = vadd.f32 %v6367_v0, %v6366_v45  ;;  %v9004_v62 = vadd.f32 %v6567_v33, %v6566_v4  ;;  %v6369_v26 = vpop.f32.mrb[194].mxu0  ;;  %v6569_v20 = vpop.f32.mrb[2].mxu1 }
 0x842   : > { %v6370_v52 = vpop.f32.mrb[195].mxu0  ;;  %v6570_v14 = vpop.f32.mrb[3].mxu1 }
 0x843   : > { %v9006_v32 = vadd.f32 %v6370_v52, %v6369_v26  ;;  %v9046_v52 = vpop.permute.xlu1 %4435 }
 0x844   : > { %5062 = vmatmul.mubr.bf16.gmra.mrb[36].mxu0 %v7100_v11 }
 0x845   : > { %5069 = vmatprep.mubr.bf16.mxu0 %v7105_v10 }
 0x847   : > { %v6372_v55 = vpop.f32.mrb[196].mxu0 }
 0x848   : > { %v6373_v8 = vpop.f32.mrb[197].mxu0 }
 0x849   : > { %v9008_v31 = vadd.f32 %v6373_v8, %v6372_v55  ;;  %v6375_v16 = vpop.f32.mrb[198].mxu0 }
 0x84a   : > { %v6376_v17 = vpop.f32.mrb[199].mxu0 }
 0x84b   : > { %v9012_v22 = vadd.f32 %v6376_v17, %v6375_v16  ;;  %v9052_v16 = vpop.permute.xlu1 %4445 }
 0x84c   : > { %5070 = vmatmul.mubr.bf16.gmra.mrb[40].mxu0 %v7103_v44 }
 0x84d   : > { %5077 = vmatprep.mubr.bf16.mxu0 %v5772_v7 }
 0x84f   : > { %v6378_v59 = vpop.f32.mrb[200].mxu0 }
 0x850   : > { %v6379_v35 = vpop.f32.mrb[201].mxu0 }
 0x851   : > { %v9016_v37 = vadd.f32 %v6379_v35, %v6378_v59  ;;  %v6381_v51 = vpop.f32.mrb[202].mxu0 }
 0x852   : > { %v6382_v56 = vpop.f32.mrb[203].mxu0 }
 0x853   : > { %v9018_v29 = vadd.f32 %v6382_v56, %v6381_v51  ;;  %v9058_v56 = vpop.permute.xlu1 %4455 }
 0x854   : > { %5078 = vmatmul.mubr.bf16.gmra.mrb[44].mxu0 %v5771_v58 }
 0x857   : > { %v6384_v41 = vpop.f32.mrb[204].mxu0 }
 0x858   : > { %v6385_v54 = vpop.f32.mrb[205].mxu0 }
 0x859   : > { %v9022_v42 = vadd.f32 %v6385_v54, %v6384_v41  ;;  %v6387_v3 = vpop.f32.mrb[206].mxu0 }
 0x85a   : > { %v6388_v53 = vpop.f32.mrb[207].mxu0 }
 0x85b   : > { %v6389_v39 = vadd.f32 %v6388_v53, %v6387_v3 }
 0x85d   : > { %v9024_v47 = vadd.f32 %v6389_v39, %v4426_v50  ;;  %v9062_v39 = vpop.permute.xlu1 %4465 }
 0x85f   : > { %v6390_v19 = vpop.f32.mrb[208].mxu0 }
 0x860   : > { %v6391_v48 = vpop.f32.mrb[209].mxu0 }
 0x861   : > { %v9026_v5 = vadd.f32 %v6391_v48, %v6390_v19  ;;  %v6393_v61 = vpop.f32.mrb[210].mxu0 }
 0x862   : > { %v6394_v38 = vpop.f32.mrb[211].mxu0 }
 0x863   : > { %v9028_v63 = vadd.f32 %v6394_v38, %v6393_v61  ;;  %v9066_v61 = vpop.permute.xlu1 %4475 }
 0x867   : > { %v6396_v34 = vpop.f32.mrb[212].mxu0 }
 0x868   : > { %v6397_v6 = vpop.f32.mrb[213].mxu0 }
 0x869   : > { %v9030_v18 = vadd.f32 %v6397_v6, %v6396_v34  ;;  %v6399_v25 = vpop.f32.mrb[214].mxu0 }
 0x86a   : > { %v6400_v46 = vpop.f32.mrb[215].mxu0 }
 0x86b   : > { %v9032_v28 = vadd.f32 %v6400_v46, %v6399_v25 }
 0x86f   : > { %v6402_v15 = vpop.f32.mrb[216].mxu0 }
 0x870   : > { %v6403_v1 = vpop.f32.mrb[217].mxu0 }
 0x871   : > { %v9034_v43 = vadd.f32 %v6403_v1, %v6402_v15  ;;  %v6405_v49 = vpop.f32.mrb[218].mxu0  ;;  %v9072_v15 = vpop.permute.xlu1 %4485 }
 0x872   : > { %v6406_v60 = vpop.f32.mrb[219].mxu0 }
 0x873   : > { %v9036_v9 = vadd.f32 %v6406_v60, %v6405_v49 }
 0x877   : > { %v6408_v2 = vpop.f32.mrb[220].mxu0 }
 0x878   : > { %v6409_v13 = vpop.f32.mrb[221].mxu0 }
 0x879   : > { %v9038_v12 = vadd.f32 %v6409_v13, %v6408_v2  ;;  %v6411_v57 = vpop.f32.mrb[222].mxu0 }
 0x87a   : > { %v6412_v30 = vpop.f32.mrb[223].mxu0 }
 0x87b   : > { %v9040_v45 = vadd.f32 %v6412_v30, %v6411_v57  ;;  %v9076_v57 = vpop.permute.xlu1 %4495 }
 0x87f   : > { %v6414_v4 = vpop.f32.mrb[224].mxu0  ;;  %v9078_v30 = vpop.permute.xlu1 %4505 }
 0x880   : > { %v6415_v0 = vpop.f32.mrb[225].mxu0 }
 0x881   : > { %v9042_v33 = vadd.f32 %v6415_v0, %v6414_v4  ;;  %v6417_v11 = vpop.f32.mrb[226].mxu0  ;;  %v7110_v4 = vld [vmem:[#allocation7 + $0xfe4] ss:$16 sps:$4 sm:$0xff]  }
 0x882   : > { %v6418_v26 = vpop.f32.mrb[227].mxu0  ;;  %5781 = vmatprep.mubr.msk.bf16.mxu1 %vm5267_vm0, %v7110_v4  ;;  %v5189_v4 = vld [vmem:[%s7524_s9 + $0x10] sm:$0xff] }
 0x883   : > { %v9044_v10 = vadd.f32 %v6418_v26, %v6417_v11  ;;  %v9081_v0 = vpop.permute.xlu1 %4515  ;;  %v4391_v11 = vpop.permute.xlu0 %4390 }
 0x887   : > { %v6420_v20 = vpop.f32.mrb[228].mxu0  ;;  %v5091_v26 = vpop.permute.xlu1 %5090 }
 0x888   : > { %v6421_v14 = vpop.f32.mrb[229].mxu0 }
 0x889   : > { %v9048_v40 = vadd.f32 %v6421_v14, %v6420_v20  ;;  %v6423_v55 = vpop.f32.mrb[230].mxu0 }
 0x88a   : > { %v6424_v8 = vpop.f32.mrb[231].mxu0 }
 0x88b   : > { %v9050_v44 = vadd.f32 %v6424_v8, %v6423_v55 }
 0x88f   : > { %v6426_v7 = vpop.f32.mrb[232].mxu0 }
 0x890   : > { %v6427_v17 = vpop.f32.mrb[233].mxu0 }
 0x891   : > { %v9054_v59 = vadd.f32 %v6427_v17, %v6426_v7  ;;  %v6429_v35 = vpop.f32.mrb[234].mxu0  ;;  %v5188_v7 = vld [vmem:[%s7524_s9 + $0x8] sm:$0xff]  ;;  %v4832_v17 = vadd.f32 %v9002_v23, %v4391_v11  ;;  %v4401_v11 = vpop.permute.xlu0 %4400 }
 0x892   : > { %v6430_v58 = vpop.f32.mrb[235].mxu0 }
 0x893   : > { %v9056_v51 = vadd.f32 %v6430_v58, %v6429_v35  ;;  %v5142_v35 = vadd.f32 %v9004_v62, %v5091_v26  ;;  %v4840_v26 = vadd.f32 %v9008_v31, %v4401_v11  ;;  %v5197_v31 = vmul.f32 %v5189_v4, %v5188_v7 }
 0x897   : > { %v6432_v41 = vpop.f32.mrb[236].mxu0 }
 0x898   : > { %v6433_v54 = vpop.f32.mrb[237].mxu0 }
 0x899   : > { %v9060_v3 = vadd.f32 %v6433_v54, %v6432_v41  ;;  %v6435_v53 = vpop.f32.mrb[238].mxu0 }
 0x89a   : > { %v6436_v50 = vpop.f32.mrb[239].mxu0 }
 0x89b   : > { %v9064_v19 = vadd.f32 %v6436_v50, %v6435_v53  ;;  %v4835_v50 = vadd.f32 %v9006_v32, %v9010_v21  ;;  %v5187_v21 = vld [vmem:[%s7524_s9] sm:$0xff]  ;;  %s5361_s9 = sshll.u32 %s9091_s24, 4  ;;  %s9188_s9 = int_to_ptr.vmem [resolvable:$true] %s5361_s9 }
 0x89c   : > { %s7213_s29 = scalar_lea.vmem %s9188_s9, 512  ;;  %p7220_p0 = scmp.lt.s32.totalorder %s9188_s9, %s7218_s19 }
 0x89d   : > { %p7214_p4 = scmp.ne.s32.totalorder %s9188_s9, %s7213_s29  ;;  %p7221_p3 = scmp.lt.s32.totalorder %s7219_s8, %s7213_s29 }
 0x89f   : > { %v6438_v48 = vpop.f32.mrb[240].mxu0  ;;  %p7215_p5 = pnand %p7214_p4, %p9385_p6  ;;  %p7222_p2 = por %p7221_p3, %p7220_p0 }
 0x8a0   : > { %v6439_v38 = vpop.f32.mrb[241].mxu0 }
 0x8a1   : > { %v9068_v34 = vadd.f32 %v6439_v38, %v6438_v48  ;;  %v6441_v6 = vpop.f32.mrb[242].mxu0  ;;  %p7216_p13 = pneg %p7215_p5 }
 0x8a2   : > { %v6442_v25 = vpop.f32.mrb[243].mxu0 }
 0x8a3   : > { %v9070_v46 = vadd.f32 %v6442_v25, %v6441_v6  ;;  %p7223_p7 = pnand %p7222_p2, %p7216_p13 }
 0x8a7   : > { %v6444_v1 = vpop.f32.mrb[244].mxu0 }
 0x8a8   : > { %v6445_v49 = vpop.f32.mrb[245].mxu0 }
 0x8a9   : > { %v9074_v60 = vadd.f32 %v6445_v49, %v6444_v1  ;;  %v6447_v2 = vpop.f32.mrb[246].mxu0  ;;  %v9089_v49 = vmul.f32 -0.48860252, %v5188_v7 }
 0x8aa   : > { %v6448_v13 = vpop.f32.mrb[247].mxu0 }
 0x8bf   : > { %v6466_v20 = vpop.f32.mrb[248].mxu0  ;;  %v6588_v14 = vpop.f32.mrb[4].mxu1 }
 0x8c0   : > { %v6467_v55 = vpop.f32.mrb[249].mxu0  ;;  %v6589_v8 = vpop.f32.mrb[5].mxu1 }
 0x8c1   : > { %v6468_v58 = vadd.f32 %v6467_v55, %v6466_v20  ;;  %v6590_v41 = vadd.f32 %v6589_v8, %v6588_v14  ;;  %v6469_v54 = vpop.f32.mrb[250].mxu0  ;;  %v6591_v53 = vpop.f32.mrb[6].mxu1  ;;  %v4843_v8 = vadd.f32 %v9012_v22, %v9014_v27  ;;  %v5193_v22 = vmul.f32 %v5187_v21, %v5187_v21 }
 0x8c2   : > { %v6470_v48 = vpop.f32.mrb[251].mxu0  ;;  %v6592_v38 = vpop.f32.mrb[7].mxu1  ;;  %v5195_v53 = vmul.f32 %v5189_v4, %v5189_v4 }
 0x8c3   : > { %v4976_v6 = vadd.f32 %v6468_v58, %v4832_v17  ;;  %v5182_v25 = vadd.f32 %v6590_v41, %v5142_v35  ;;  %v6471_v1 = vadd.f32 %v6470_v48, %v6469_v54  ;;  %v9100_v17 = vmul.f32 0.48860252, %v5189_v4 }
 0x8c4   : > { %v9102_v54 = vmul.f32 -0.48860252, %v5187_v21  ;;  %v5196_v48 = vmul.f32 %v5188_v7, %v5187_v21  ;;  %v5201_v27 = vmul.f32 2.0, %v5195_v53 }
 0x8c5   : > { %5344 = vst [vmem:[%s9091_s24] sm:$0xff] %v5182_v25  ;;  %v4979_v23 = vadd.f32 %v6471_v1, %v4835_v50  ;;  %v5211_v62 = vmul.f32 0.2820948, %v4976_v6  ;;  %v4411_v1 = vpop.permute.xlu0 %4410 }
 0x8c7   : > { %v5212_v2 = vmul.f32 %v9089_v49, %v4979_v23  ;;  %v6472_v13 = vpop.f32.mrb[252].mxu0 }
 0x8c8   : > { %v6473_v32 = vpop.f32.mrb[253].mxu0 }
 0x8c9   : > { %v5238_v20 = vpack.c.bf16 %v5212_v2, %v5211_v62  ;;  %v6474_v14 = vadd.f32 %v6473_v32, %v6472_v13  ;;  %v6475_v55 = vpop.f32.mrb[254].mxu0  ;;  %v4848_v62 = vadd.f32 %v9016_v37, %v4411_v1  ;;  %v4851_v32 = vadd.f32 %v9018_v29, %v9020_v24  ;;  %v4421_v24 = vpop.permute.xlu0 %4420 }
 0x8ca   : > { %v6476_v35 = vpop.f32.mrb[255].mxu0  ;;  %v5198_v29 = vmul.f32 %v5189_v4, %v5187_v21 }
 0x8cb   : > { %v4984_v58 = vadd.f32 %v6474_v14, %v4840_v26  ;;  %v6477_v41 = vadd.f32 %v6476_v35, %v6475_v55  ;;  %5279 = vmatpush1.bf16.msra.mxu1 %v5238_v20  ;;  %v9110_v26 = vmul.f32 1.0925485, %v5196_v48  ;;  %v9112_v14 = vmul.f32 -1.0925485, %v5197_v31 }
 0x8cc   : > { %5280 = vmatprep.subr.bf16.mxu1 %v9361_v36  ;;  %v5194_v35 = vmul.f32 %v5188_v7, %v5188_v7  ;;  %v4856_v31 = vadd.f32 %v9022_v42, %v4421_v24 }
 0x8cd   : > { %v4987_v50 = vadd.f32 %v6477_v41, %v4843_v8  ;;  %v5213_v38 = vmul.f32 %v9100_v17, %v4984_v58  ;;  %v5202_v58 = vsub.f32 %v5201_v27, %v5193_v22 }
 0x8cf   : > { %v5214_v6 = vmul.f32 %v9102_v54, %v4987_v50  ;;  %v6478_v25 = vpop.f32.mrb[0].mxu0 }
 0x8d0   : > { %v6479_v23 = vpop.f32.mrb[1].mxu0 }
 0x8d1   : > { %v5239_v2 = vpack.c.bf16 %v5214_v6, %v5213_v38  ;;  %v6480_v13 = vadd.f32 %v6479_v23, %v6478_v25  ;;  %v6481_v11 = vpop.f32.mrb[2].mxu0  ;;  %v5203_v38 = vsub.f32 %v5202_v58, %v5194_v35 }
 0x8d2   : > { %v6482_v20 = vpop.f32.mrb[3].mxu0 }
 0x8d3   : > { %v4992_v55 = vadd.f32 %v6480_v13, %v4848_v62  ;;  %v6483_v8 = vadd.f32 %v6482_v20, %v6481_v11  ;;  %5281 = vmatpush1.bf16.msra.mxu1 %v5239_v2  ;;  %v9118_v27 = vmul.f32 0.31539157, %v5203_v38  ;;  %v9120_v2 = vmul.f32 -1.0925485, %v5198_v29 }
 0x8d4   : > { %5282 = vmatprep.subr.bf16.mxu1 %v9361_v36  ;;  %v5206_v11 = vsub.f32 %v5193_v22, %v5194_v35 }
 0x8d5   : > { %v4995_v41 = vadd.f32 %v6483_v8, %v4851_v32  ;;  %v5215_v37 = vmul.f32 %v9110_v26, %v4992_v55  ;;  %v4431_v32 = vpop.permute.xlu0 %4430 }
 0x8d6   : > { %v4864_v55 = vadd.f32 %v9026_v5, %v4431_v32  ;;  %v9129_v38 = vmul.f32 0.54627424, %v5206_v11 }
 0x8d7   : > { %v5216_v53 = vmul.f32 %v9112_v14, %v4995_v41  ;;  %v6484_v50 = vpop.f32.mrb[4].mxu0 }
 0x8d8   : > { %v6485_v48 = vpop.f32.mrb[5].mxu0 }
 0x8d9   : > { %v5240_v6 = vpack.c.bf16 %v5216_v53, %v5215_v37  ;;  %v6486_v25 = vadd.f32 %v6485_v48, %v6484_v50  ;;  %v6487_v1 = vpop.f32.mrb[6].mxu0  ;;  %v4867_v53 = vadd.f32 %v9028_v63, %v9046_v52  ;;  %v4441_v5 = vpop.permute.xlu0 %4440  ;;  %v4875_v52 = vadd.f32 %v9032_v28, %v9052_v16 }
 0x8da   : > { %v6488_v23 = vpop.f32.mrb[7].mxu0  ;;  %v4883_v28 = vadd.f32 %v9036_v9, %v9058_v56  ;;  %v4891_v9 = vadd.f32 %v9040_v45, %v9062_v39  ;;  %v4899_v45 = vadd.f32 %v9044_v10, %v9066_v61  ;;  %v4907_v10 = vadd.f32 %v9050_v44, %v9072_v15 }
 0x8db   : > { %v5000_v7 = vadd.f32 %v6486_v25, %v4856_v31  ;;  %v6489_v62 = vadd.f32 %v6488_v23, %v6487_v1  ;;  %5283 = vmatpush1.bf16.msra.mxu1 %v5240_v6  ;;  %v4872_v31 = vadd.f32 %v9030_v18, %v4441_v5  ;;  %v4915_v44 = vadd.f32 %v9056_v51, %v9076_v57 }
 0x8dc   : > { %5284 = vmatprep.subr.bf16.mxu1 %v9361_v36  ;;  %v4923_v51 = vadd.f32 %v9064_v19, %v9078_v30  ;;  %v4931_v19 = vadd.f32 %v9070_v46, %v9081_v0 }
 0x8dd   : > { %v5003_v13 = vadd.f32 %v6489_v62, %v9024_v47  ;;  %v5217_v4 = vmul.f32 %v9118_v27, %v5000_v7 }
 0x8df   : > { %v5218_v21 = vmul.f32 %v9120_v2, %v5003_v13  ;;  %v6490_v42 = vpop.f32.mrb[8].mxu0 }
 0x8e0   : > { %v6491_v20 = vpop.f32.mrb[9].mxu0 }
 0x8e1   : > { %v5241_v8 = vpack.c.bf16 %v5218_v21, %v5217_v4  ;;  %v6492_v58 = vadd.f32 %v6491_v20, %v6490_v42  ;;  %v6493_v41 = vpop.f32.mrb[10].mxu0  ;;  %v4451_v42 = vpop.permute.xlu0 %4450 }
 0x8e2   : > { %v6494_v37 = vpop.f32.mrb[11].mxu0  ;;  %v4880_v11 = vadd.f32 %v9034_v43, %v4451_v42 }
 0x8e3   : > { %v5008_v50 = vadd.f32 %v6492_v58, %v4864_v55  ;;  %v6495_v47 = vadd.f32 %v6494_v37, %v6493_v41  ;;  %5285 = vmatpush1.bf16.msra.mxu1 %v5241_v8 }
 0x8e4   : > { %5286 = vmatprep.subr.bf16.mxu1 %v9361_v36 }
 0x8e5   : > { %v5011_v29 = vadd.f32 %v6495_v47, %v4867_v53  ;;  %v5219_v22 = vmul.f32 %v9129_v38, %v5008_v50  ;;  %v4461_v47 = vpop.permute.xlu0 %4460 }
 0x8e7   : > { %v5220_v35 = vmul.f32 0.2820948, %v5011_v29  ;;  %v6496_v24 = vpop.f32.mrb[12].mxu0  ;;  %v4888_v29 = vadd.f32 %v9038_v12, %v4461_v47 }
 0x8e8   : > { %v6497_v48 = vpop.f32.mrb[13].mxu0 }
 0x8e9   : > { %v5242_v6 = vpack.c.bf16 %v5220_v35, %v5219_v22  ;;  %v6498_v25 = vadd.f32 %v6497_v48, %v6496_v24  ;;  %v6499_v1 = vpop.f32.mrb[14].mxu0 }
 0x8ea   : > { %v6500_v63 = vpop.f32.mrb[15].mxu0 }
 0x8eb   : > { %v5016_v23 = vadd.f32 %v6498_v25, %v4872_v31  ;;  %v6501_v7 = vadd.f32 %v6500_v63, %v6499_v1  ;;  %5287 = vmatpush1.bf16.msra.mxu1 %v5242_v6  ;;  %v4471_v63 = vpop.permute.xlu0 %4470 }
 0x8ec   : > { %5288 = vmatprep.subr.bf16.mxu1 %v9361_v36 }
 0x8ed   : > { %v5019_v62 = vadd.f32 %v6501_v7, %v4875_v52  ;;  %v5221_v13 = vmul.f32 %v9089_v49, %v5016_v23  ;;  %v4896_v52 = vadd.f32 %v9042_v33, %v4471_v63 }
 0x8ef   : > { %v5222_v4 = vmul.f32 %v9100_v17, %v5019_v62  ;;  %v6502_v21 = vpop.f32.mrb[16].mxu0 }
 0x8f0   : > { %v6503_v18 = vpop.f32.mrb[17].mxu0 }
 0x8f1   : > { %v5243_v32 = vpack.c.bf16 %v5222_v4, %v5221_v13  ;;  %v6504_v20 = vadd.f32 %v6503_v18, %v6502_v21  ;;  %v6505_v55 = vpop.f32.mrb[18].mxu0 }
 0x8f2   : > { %v6506_v8 = vpop.f32.mrb[19].mxu0 }
 0x8f3   : > { %v5024_v16 = vadd.f32 %v6504_v20, %v4880_v11  ;;  %v6507_v58 = vadd.f32 %v6506_v8, %v6505_v55  ;;  %5289 = vmatpush1.bf16.msra.mxu1 %v5243_v32  ;;  %v4481_v32 = vpop.permute.xlu0 %4480 }
 0x8f4   : > { %5290 = vmatprep.subr.bf16.mxu1 %v9361_v36  ;;  %v4904_v20 = vadd.f32 %v9048_v40, %v4481_v32 }
 0x8f5   : > { %v5027_v41 = vadd.f32 %v6507_v58, %v4883_v28  ;;  %v5223_v37 = vmul.f32 %v9102_v54, %v5024_v16 }
 0x8f7   : > { %v5224_v53 = vmul.f32 %v9110_v26, %v5027_v41  ;;  %v6508_v50 = vpop.f32.mrb[20].mxu0  ;;  %v4491_v47 = vpop.permute.xlu0 %4490 }
 0x8f8   : > { %v6509_v43 = vpop.f32.mrb[21].mxu0  ;;  %v4912_v40 = vadd.f32 %v9054_v59, %v4491_v47 }
 0x8f9   : > { %v5244_v22 = vpack.c.bf16 %v5224_v53, %v5223_v37  ;;  %v6510_v35 = vadd.f32 %v6509_v43, %v6508_v50  ;;  %v6511_v24 = vpop.f32.mrb[22].mxu0 }
 0x8fa   : > { %v6512_v5 = vpop.f32.mrb[23].mxu0 }
 0x8fb   : > { %v5032_v56 = vadd.f32 %v6510_v35, %v4888_v29  ;;  %v6513_v48 = vadd.f32 %v6512_v5, %v6511_v24  ;;  %5291 = vmatpush1.bf16.msra.mxu1 %v5244_v22 }
 0x8fc   : > { %5292 = vmatprep.subr.bf16.mxu1 %v9361_v36 }
 0x8fd   : > { %v5035_v31 = vadd.f32 %v6513_v48, %v4891_v9  ;;  %v5225_v6 = vmul.f32 %v9112_v14, %v5032_v56 }
 0x8ff   : > { %v5226_v25 = vmul.f32 %v9118_v27, %v5035_v31  ;;  %v6514_v1 = vpop.f32.mrb[24].mxu0  ;;  %v4501_v31 = vpop.permute.xlu0 %4500 }
 0x900   : > { %v6515_v12 = vpop.f32.mrb[25].mxu0 }
 0x901   : > { %v5245_v23 = vpack.c.bf16 %v5226_v25, %v5225_v6  ;;  %v6516_v7 = vadd.f32 %v6515_v12, %v6514_v1  ;;  %v6517_v62 = vpop.f32.mrb[26].mxu0  ;;  %v4920_v6 = vadd.f32 %v9060_v3, %v4501_v31 }
 0x902   : > { %v6518_v13 = vpop.f32.mrb[27].mxu0 }
 0x903   : > { %v5040_v39 = vadd.f32 %v6516_v7, %v4896_v52  ;;  %v6519_v4 = vadd.f32 %v6518_v13, %v6517_v62  ;;  %5293 = vmatpush1.bf16.msra.mxu1 %v5245_v23  ;;  %v4511_v62 = vpop.permute.xlu0 %4510 }
 0x904   : > { %5294 = vmatprep.subr.bf16.mxu1 %v9361_v36  ;;  %v4928_v13 = vadd.f32 %v9068_v34, %v4511_v62 }
 0x905   : > { %v5043_v21 = vadd.f32 %v6519_v4, %v4899_v45  ;;  %v5227_v42 = vmul.f32 %v9120_v2, %v5040_v39 }
 0x907   : > { %v5228_v18 = vmul.f32 %v9129_v38, %v5043_v21  ;;  %v6520_v11 = vpop.f32.mrb[28].mxu0  ;;  %v4521_v32 = vpop.permute.xlu0 %4520 }
 0x908   : > { %v6521_v33 = vpop.f32.mrb[29].mxu0 }
 0x909   : > { %v5246_v55 = vpack.c.bf16 %v5228_v18, %v5227_v42  ;;  %v6522_v8 = vadd.f32 %v6521_v33, %v6520_v11  ;;  %v6523_v28 = vpop.f32.mrb[30].mxu0  ;;  %v4936_v33 = vadd.f32 %v9074_v60, %v4521_v32 }
 0x90a   : > { %v6524_v16 = vpop.f32.mrb[31].mxu0 }
 0x90b   : > { %v5048_v61 = vadd.f32 %v6522_v8, %v4904_v20  ;;  %v6525_v58 = vadd.f32 %v6524_v16, %v6523_v28  ;;  %5295 = vmatpush1.bf16.msra.mxu1 %v5246_v55 }
 0x90c   : > { %5296 = vmatprep.subr.bf16.mxu1 %v9361_v36 }
 0x90d   : > { %v5051_v41 = vadd.f32 %v6525_v58, %v4907_v10  ;;  %v5229_v37 = vmul.f32 0.2820948, %v5048_v61 }
 0x90f   : > { %v5230_v53 = vmul.f32 %v9089_v49, %v5051_v41  ;;  %v6526_v50 = vpop.f32.mrb[32].mxu0 }
 0x910   : > { %v6527_v43 = vpop.f32.mrb[33].mxu0 }
 0x911   : > { %v5247_v29 = vpack.c.bf16 %v5230_v53, %v5229_v37  ;;  %v6528_v22 = vadd.f32 %v6527_v43, %v6526_v50  ;;  %v6529_v35 = vpop.f32.mrb[34].mxu0 }
 0x912   : > { %v6530_v24 = vpop.f32.mrb[35].mxu0 }
 0x913   : > { %v5056_v15 = vadd.f32 %v6528_v22, %v4912_v40  ;;  %v6531_v5 = vadd.f32 %v6530_v24, %v6529_v35  ;;  %5297 = vmatpush1.bf16.msra.mxu1 %v5247_v29 }
 0x914   : > { %5298 = vmatprep.subr.bf16.mxu1 %v9361_v36 }
 0x915   : > { %v5059_v9 = vadd.f32 %v6531_v5, %v4915_v44  ;;  %v5231_v49 = vmul.f32 %v9100_v17, %v5056_v15 }
 0x917   : > { %v5232_v56 = vmul.f32 %v9102_v54, %v5059_v9  ;;  %v6532_v48 = vpop.f32.mrb[36].mxu0 }
 0x918   : > { %v6533_v59 = vpop.f32.mrb[37].mxu0 }
 0x919   : > { %v5248_v25 = vpack.c.bf16 %v5232_v56, %v5231_v49  ;;  %v6534_v1 = vadd.f32 %v6533_v59, %v6532_v48  ;;  %v6535_v63 = vpop.f32.mrb[38].mxu0 }
 0x91a   : > { %v6536_v12 = vpop.f32.mrb[39].mxu0 }
 0x91b   : > { %v5064_v57 = vadd.f32 %v6534_v1, %v4920_v6  ;;  %v6537_v52 = vadd.f32 %v6536_v12, %v6535_v63  ;;  %5299 = vmatpush1.bf16.msra.mxu1 %v5248_v25 }
 0x91c   : > { %5300 = vmatprep.subr.bf16.mxu1 %v9361_v36 }
 0x91d   : > { %v5067_v17 = vadd.f32 %v6537_v52, %v4923_v51  ;;  %v5233_v54 = vmul.f32 %v9110_v26, %v5064_v57 }
 0x91f   : > { %v5234_v23 = vmul.f32 %v9112_v14, %v5067_v17  ;;  %v6538_v7 = vpop.f32.mrb[40].mxu0 }
 0x920   : > { %v6539_v3 = vpop.f32.mrb[41].mxu0 }
 0x921   : > { %v5249_v45 = vpack.c.bf16 %v5234_v23, %v5233_v54  ;;  %v6540_v39 = vadd.f32 %v6539_v3, %v6538_v7  ;;  %v6541_v4 = vpop.f32.mrb[42].mxu0 }
 0x922   : > { %v6542_v21 = vpop.f32.mrb[43].mxu0 }
 0x923   : > { %v5072_v30 = vadd.f32 %v6540_v39, %v4928_v13  ;;  %v6543_v42 = vadd.f32 %v6542_v21, %v6541_v4  ;;  %5301 = vmatpush1.bf16.msra.mxu1 %v5249_v45 }
 0x924   : > { %5302 = vmatprep.subr.bf16.mxu1 %v9361_v36 }
 0x925   : > { %v5075_v26 = vadd.f32 %v6543_v42, %v4931_v19  ;;  %v5235_v14 = vmul.f32 %v9118_v27, %v5072_v30  ;;  %v5210_v27 = vld [vmem:[#allocation7 + $0x1000] sm:$0xff] }
 0x926   : > { %v5780_v61 = vcombine.high %v5210_v27, %v5210_v27  ;;  %v5779_v60 = vcombine.low %v5210_v27, %v5210_v27 }
 0x927   : > { %v5236_v18 = vmul.f32 %v9120_v2, %v5075_v26  ;;  %v6544_v11 = vpop.f32.mrb[44].mxu0  ;;  %v7108_v2 = vld [vmem:[#allocation7 + $0xfe0] ss:$16 sps:$4 sm:$0xff]  }
 0x928   : > { %v6545_v34 = vpop.f32.mrb[45].mxu0 }
 0x929   : > { %v5250_v20 = vpack.c.bf16 %v5236_v18, %v5235_v14  ;;  %v6546_v55 = vadd.f32 %v6545_v34, %v6544_v11  ;;  %v6547_v8 = vpop.f32.mrb[46].mxu0 }
 0x92a   : > { %v6548_v28 = vpop.f32.mrb[47].mxu0 }
 0x92b   : > { %v5080_v46 = vadd.f32 %v6546_v55, %v4936_v33  ;;  %5303 = vmatpush1.bf16.msra.mxu1 %v5250_v20 }
 0x92c   : > { %5304 = vmatprep.subr.bf16.mxu1 %v9361_v36 }
 0x92d   : > { %v5237_v0 = vmul.f32 %v9129_v38, %v5080_v46 }
 0x92f   : > { %v5251_v16 = vpack.c.bf16 %v5237_v0, %v5237_v0 }
 0x931   : > { %v5276_v10 = vsel %vm5274_vm1, %v5251_v16, 0 }
 0x932   : > { %5305 = vmatpush1.bf16.msra.mxu1 %v5276_v10 }
 0x935   : > { %5311 = vmatmul.mubr.bf16.vlgmr.msra.gmra.mrb[8].mxu1 %v7108_v2 }
 0x936   : > { %5782 = vmatprep.mubr.msk.bf16.mxu1 %vm5267_vm0, %v5780_v61 }
 0x93d   : > { %5319 = vmatmul.mubr.bf16.gmra.mrb[12].mxu1 %v5779_v60 }
 0xa08   : > { %v5312_v58 = vpop.f32.mrb[8].mxu1 }
 0xa09   : > { %v5783_v41 = vmul.f32 -1.442695, %v5312_v58  ;;  %v5314_v37 = vpop.f32.mrb[9].mxu1 }
 0xa0a   : > { %v5315_v53 = vpop.f32.mrb[10].mxu1 }
 0xa0b   : > { %7113 = vpow2.f32 %v5783_v41  ;;  %v5784_v36 = vmul.f32 -1.442695, %v5315_v53  ;;  %v5317_v50 = vpop.f32.mrb[11].mxu1 }
 0xa0d   : > { %7115 = vpow2.f32 %v5784_v36 }
 0xa10   : > { %v5320_v38 = vpop.f32.mrb[12].mxu1 }
 0xa11   : > { %v5785_v47 = vmul.f32 -1.442695, %v5320_v38  ;;  %v5322_v43 = vpop.f32.mrb[13].mxu1 }
 0xa12   : > { %v5323_v40 = vpop.f32.mrb[14].mxu1 }
 0xa13   : > { %7117 = vpow2.f32 %v5785_v47  ;;  %v5324_v29 = vpop.f32.mrb[15].mxu1 }
 0xa15   : > { %v7114_v22 = vpop.eup %7113 }
 0xa16   : > { %v5335_v35 = vadd.f32 1.0, %v7114_v22 }
 0xa17   : > { %v7116_v24 = vpop.eup %7115 }
 0xa18   : > { %7119 = vrcp.f32 %v5335_v35  ;;  %v5336_v44 = vadd.f32 1.0, %v7116_v24 }
 0xa1a   : > { %7121 = vrcp.f32 %v5336_v44 }
 0xa1d   : > { %v7118_v15 = vpop.eup %7117 }
 0xa1e   : > { %v5337_v5 = vadd.f32 1.0, %v7118_v15 }
 0xa20   : > { %7123 = vrcp.f32 %v5337_v5 }
 0xa22   : > { %v7120_v9 = vpop.eup %7119 }
 0xa23   : > { %5345 = vst [vmem:[%s9091_s24 + $0x8] sm:$0xff] %v7120_v9 }
 0xa24   : > { %v7122_v49 = vpop.eup %7121 }
 0xa25   : > { %5346 = vst [vmem:[%s9091_s24 + $0x10] sm:$0xff] %v7122_v49 }
 0xa2a   : > { %v7124_v56 = vpop.eup %7123 }
 0xa2b   : > { %5347 = vst [vmem:[%s9091_s24 + $0x18] sm:$0xff] %v7124_v56 }
 0xa2c   : > { %7226 = shalt.err (!%p7223_p7)
}
 0xa2d   : > { %s7227_s25 = scalar_lea.hbm %s9193_s0, 512  ;;  %s7231_s20 = scalar_lea.hbm %s9242_s4, 1024 }
 0xa2e   : > { %p7228_p9 = scmp.ne.s32.totalorder %s9193_s0, %s7227_s25  ;;  %p7232_p8 = scmp.lt.u32.totalorder %s9193_s0, %s9242_s4 }
 0xa2f   : > { %p7233_p11 = scmp.lt.u32.totalorder %s7231_s20, %s7227_s25  ;;  %p7235_p4 = scmp.lt.u32.totalorder %s7227_s25, %s9193_s0 }
 0xa30   : > { %p7229_p10 = pnand %p7228_p9, %p9385_p6 }
 0xa31   : > { %p7234_p1 = por %p7233_p11, %p7232_p8 }
 0xa32   : > { %p7230_p12 = pneg %p7229_p10 }
 0xa33   : > { %p7236_p5 = por %p7235_p4, %p7234_p1 }
 0xa35   : > { %p7237_p13 = pnand %p7236_p5, %p7230_p12 }
 0xa37   : > { %7240 = shalt.err (!%p7237_p13)
}
 0xa38   : > { %s7300_s14 = smov 128   ;;  %s7301_s12 = smov 256  }
 0xa39   : > { %s7302_s13 = smov 8  }
 0xa3a   : > { %6604 = dma.vmem_to_hbm [thread:$0]  (%p9385_p6), %s9188_s9, 512, %s9193_s0, %s5349_s2, %s7300_s14, %s7301_s12, %s7302_s13  }
 0xa3b PF: > { %s5376_s24 = sand.u32 1, %s7275_s15   ;;  %p9386_p0 = scmp.ne.s32.totalorder %s9256_s28, 0 }
 0xa3c   : > { %p9387_p3 = scmp.ge.s32.totalorder %s7287_s18, 2  ;;  %s5377_s10 = scalar_lea.sflag [#allocation4], %s5376_s24 }
 0xa3e   : > { %p6618_p2 = pnand %p9387_p3, %p9386_p0 }
 0xa40   : > { %7270 = dma.done.wait (!%p6618_p2), %s5377_s10, 512  }
 0xa41   : > { %7272 = vsyncadd (!%p6618_p2), %s5377_s10, 4294966784  ;;  %s9388_s30 = sld [smem:[#allocation13_spill]]  ;;  %p20_p7 = scmp.ge.s32.totalorder %s7353_s21, 4  }
 0xa42   : > { %s9389_s15 = smov %s7279_s16  ;;  %s9390_s16 = smov %s7283_s17 }
 0xa43   : > { %s9392_s18 = smov %s7353_s21  ;;  %22 = sbr.rel (!%p20_p7) target bundleno = 10 (0xa), region = 98 }
 0xa47   : > { %s9391_s17 = smov %s9388_s30 }
 0xa4a   :  { %5382 = vsyncpa [#allocation3], 1 }
 0xa4b   :  { %5384 = vsyncpa [#allocation3 + $0x1], 1 }
 0xa4c   :  { %5385 = vsyncpa [#allocation6], 1 }
 0xa4d   :  { %5387 = vsyncpa [#allocation6 + $0x1], 1 }
 0xa4e   :  { %5388 = vsyncpa [#allocation4], 1 }
 0xa4f   :  { %5390 = vsyncpa [#allocation4 + $0x1], 1 }

</bundles_post_ra>
